<compile_context>
chip_gen: v5e
topology: v5e:2x2
jax: 0.10.0
libtpu: 0.0.40
codegen_flags: <defaults>
</compile_context>

<pallas_src>
import jax
import jax.numpy as jnp
from jax.experimental import pallas as pl
from jax.experimental.pallas import tpu as pltpu

CLAMP_MIN = -0.5   # global `min` in the reference script
CLAMP_MAX = 1.0    # global `max` in the reference script
KH = KW = 3
CROP = 1           # padding = -1  =>  crop 1 pixel per side before the VALID conv


def conv_clamp_kernel(x_ref, w_ref, b_ref, o_ref, col_ref):
    # x_ref  : (B, H*W, Cin)           spatially-flattened NHWC batch tile
    # w_ref  : (KH*KW*TAP, Cout)       weights, each tap zero-padded to TAP (=128) lanes
    # b_ref  : (1, Cout)
    # o_ref  : (B, Hout, Wout, Cout)   NHWC output tile
    # col_ref: (B*Hout*W, KH*KW*TAP)   im2col scratch in row-window form (W-Wout junk
    #                                  rows per output row, discarded at store time)
    B, HW, Cin = x_ref.shape
    _, Hout, Wout, Cout = o_ref.shape
    K, _ = w_ref.shape
    TAP = K // (KH * KW)               # 128-lane-aligned per-tap slot width
    W = Wout + 2 * CROP + (KW - 1)     # original input width
    M = Hout * W                       # im2col rows per image (incl. junk columns)

    # Hoisted zero pad for the unused lanes of each tap slot (created once, not per tap).
    zpad = None
    if TAP > Cin:
        zpad = jnp.zeros((M, TAP - Cin), dtype=x_ref.dtype)

    # im2col staging: for tap (kh, kw), output pixel (i, j) reads flattened input row
    # (CROP+i+kh)*W + (CROP+j+kw) = (i*W + j) + start, so one contiguous 2-D slice of
    # x covers the whole tap -> aligned, full 128-lane stores into col_ref.
    for b in range(B):
        for kh in range(KH):
            for kw in range(KW):
                tap = kh * KW + kw
                start = (CROP + kh) * W + (CROP + kw)
                src = x_ref[b, start:start + M, :]                 # (M, Cin)
                if zpad is not None:
                    src = jnp.concatenate([src, zpad], axis=-1)    # (M, TAP)
                col_ref[b * M:(b + 1) * M, tap * TAP:(tap + 1) * TAP] = src

    # Single MXU matmul with f32 accumulation; bias + clamp on the dense 2-D layout.
    acc = jnp.dot(col_ref[...], w_ref[...], preferred_element_type=jnp.float32)
    acc = acc + b_ref[...]
    acc = jnp.clip(acc, CLAMP_MIN, CLAMP_MAX)   # clamp_min then clamp_max (min < max)
    res = acc.astype(o_ref.dtype)

    # Scatter valid rows (j < Wout) back to NHWC; per-(b, i) row starts are W-strided
    # and 8-aligned (W multiple of 8 here), so these are plain vreg picks + stores.
    for b in range(B):
        for i in range(Hout):
            r0 = (b * Hout + i) * W
            o_ref[b, i, :, :] = res[r0:r0 + Wout, :]


def prepare_weights(w_oihw, compute_dtype=jnp.float32):
    """One-time layout prep: OIHW -> (KH*KW*TAP, Cout); each tap zero-padded to a
    128-lane-aligned slot so every im2col tap store is an unmasked full-width vst."""
    Cout, Cin, kh, kw = w_oihw.shape
    tap = ((Cin + 127) // 128) * 128
    w_hwio = jnp.transpose(w_oihw, (2, 3, 1, 0))                       # (KH,KW,Cin,Cout)
    w_pad = jnp.pad(w_hwio, ((0, 0), (0, 0), (0, tap - Cin), (0, 0)))  # (KH,KW,TAP,Cout)
    return w_pad.reshape(kh * kw * tap, Cout).astype(compute_dtype)


def _pick_batch_tile(n, target=8):
    bt = min(n, target)
    while n % bt:
        bt -= 1
    return bt


def conv2d_neg_pad_clamp_nhwc(x_nhwc, w_km, bias, *, batch_tile=None,
                              compute_dtype=jnp.float32):
    """Conv2d(kernel=3, padding=-1) + clamp; NHWC in, NHWC out."""
    N, H, W, Cin = x_nhwc.shape
    K, Cout = w_km.shape
    Hout = H - 2 * CROP - (KH - 1)
    Wout = W - 2 * CROP - (KW - 1)

    bt = batch_tile if batch_tile is not None else _pick_batch_tile(N)
    assert N % bt == 0, (N, bt)

    # Spatial flatten is contiguous (free in XLA); compute path stays NHWC end-to-end.
    x_flat = x_nhwc.reshape(N, H * W, Cin).astype(compute_dtype)
    bias2d = bias.reshape(1, Cout).astype(jnp.float32)

    out = pl.pallas_call(
        conv_clamp_kernel,
        out_shape=jax.ShapeDtypeStruct((N, Hout, Wout, Cout), x_nhwc.dtype),
        grid_spec=pltpu.PrefetchScalarGridSpec(
            num_scalar_prefetch=0,
            grid=(N // bt,),
            in_specs=[
                pl.BlockSpec((bt, H * W, Cin), lambda n: (n, 0, 0)),
                pl.BlockSpec((K, Cout), lambda n: (0, 0)),
                pl.BlockSpec((1, Cout), lambda n: (0, 0)),
            ],
            out_specs=pl.BlockSpec((bt, Hout, Wout, Cout), lambda n: (n, 0, 0, 0)),
            scratch_shapes=[
                pltpu.VMEM((bt * Hout * W, K), compute_dtype),
            ],
        ),
        compiler_params=pltpu.CompilerParams(
            dimension_semantics=("parallel",)),
    )(x_flat, w_km, bias2d)
    return out


def reference_nhwc(x_nhwc, w_oihw, bias):
    x_crop = x_nhwc[:, CROP:-CROP, CROP:-CROP, :]
    w_hwio = jnp.transpose(w_oihw, (2, 3, 1, 0))
    y = jax.lax.conv_general_dilated(
        x_crop, w_hwio, window_strides=(1, 1), padding="VALID",
        dimension_numbers=("NHWC", "HWIO", "NHWC"))
    y = y + bias[None, None, None, :]
    return jnp.clip(y, CLAMP_MIN, CLAMP_MAX)


if __name__ == "__main__":
    key = jax.random.PRNGKey(0)
    k_x, k_w, k_b = jax.random.split(key, 3)

    N, Cin, H, W = 2, 64, 16, 16          # Cin=64, Cout=32 fixed by the module
    Cout = 32

    # Torch-layout tensors (spec fidelity).
    x_nchw = jax.random.normal(k_x, (N, Cin, H, W), dtype=jnp.float32)
    fan_in = Cin * KH * KW
    bound = 1.0 / (fan_in ** 0.5)
    w_oihw = jax.random.uniform(k_w, (Cout, Cin, KH, KW), jnp.float32, -bound, bound)
    b = jax.random.uniform(k_b, (Cout,), jnp.float32, -bound, bound)

    # One-time layout prep (outside the per-call compute path).
    x_nhwc = jnp.transpose(x_nchw, (0, 2, 3, 1))
    w_km = prepare_weights(w_oihw)

    out = conv2d_neg_pad_clamp_nhwc(x_nhwc, w_km, b)
    out = jax.block_until_ready(out)

    ref = reference_nhwc(x_nhwc, w_oihw, b)
    assert out.shape == ref.shape == (N, H - 4, W - 4, Cout), (out.shape, ref.shape)
    assert jnp.allclose(out, ref, atol=1e-4, rtol=1e-4)

    print("KERNEL_OK")
</pallas_src>

<mosaic_0001>
module attributes {stable_mosaic.version = 11 : i64} {
  func.func @conv_clamp_kernel(%arg0: i32, %arg1: memref<2x256x64xf32, #tpu.memory_space<vmem>>, %arg2: memref<1152x32xf32, #tpu.memory_space<vmem>>, %arg3: memref<1x32xf32, #tpu.memory_space<vmem>>, %arg4: memref<2x12x12x32xf32, #tpu.memory_space<vmem>>, %arg5: memref<384x1152xf32, #tpu.memory_space<vmem>>) attributes {dimension_semantics = [#tpu.dimension_semantics<parallel>], iteration_bounds = array<i64: 1>, scalar_prefetch = 0 : i64, scratch_operands = 1 : i64, tpu.core_type = #tpu.core_type<tc>, window_params = [{transform_indices = @transform_0, window_bounds = array<i64: 2, 256, 64>}, {pipeline_mode = #tpu.pipeline_mode<synchronous>, transform_indices = @transform_1, window_bounds = array<i64: 1152, 32>}, {pipeline_mode = #tpu.pipeline_mode<synchronous>, transform_indices = @transform_2, window_bounds = array<i64: 1, 32>}, {transform_indices = @transform_3, window_bounds = array<i64: 2, 12, 12, 32>}]} {
    %cst = arith.constant 0.000000e+00 : f32
    %0 = vector.broadcast %cst : f32 to vector<192x64xf32>
    %c0 = arith.constant 0 : index
    %c17 = arith.constant 17 : index
    %c0_0 = arith.constant 0 : index
    %1 = vector.load %arg1[%c0, %c17, %c0_0] : memref<2x256x64xf32, #tpu.memory_space<vmem>>, vector<1x192x64xf32>
    %2 = vector.shape_cast %1 : vector<1x192x64xf32> to vector<192x64xf32>
    %3 = tpu.concatenate %2, %0 in 1 : vector<192x64xf32>, vector<192x64xf32> -> vector<192x128xf32>
    %c0_1 = arith.constant 0 : index
    %c0_2 = arith.constant 0 : index
    %4 = vector.load %arg5[%c0_1, %c0_2] : memref<384x1152xf32, #tpu.memory_space<vmem>>, vector<192x128xf32>
    tpu.vector_store %arg5[%c0_1, %c0_2], %3 {strides = array<i32>} : memref<384x1152xf32, #tpu.memory_space<vmem>>, vector<192x128xf32>,
    %c0_3 = arith.constant 0 : index
    %c18 = arith.constant 18 : index
    %c0_4 = arith.constant 0 : index
    %5 = vector.load %arg1[%c0_3, %c18, %c0_4] : memref<2x256x64xf32, #tpu.memory_space<vmem>>, vector<1x192x64xf32>
    %6 = vector.shape_cast %5 : vector<1x192x64xf32> to vector<192x64xf32>
    %7 = tpu.concatenate %6, %0 in 1 : vector<192x64xf32>, vector<192x64xf32> -> vector<192x128xf32>
    %c0_5 = arith.constant 0 : index
    %c128 = arith.constant 128 : index
    %8 = vector.load %arg5[%c0_5, %c128] : memref<384x1152xf32, #tpu.memory_space<vmem>>, vector<192x128xf32>
    tpu.vector_store %arg5[%c0_5, %c128], %7 {strides = array<i32>} : memref<384x1152xf32, #tpu.memory_space<vmem>>, vector<192x128xf32>,
    %c0_6 = arith.constant 0 : index
    %c19 = arith.constant 19 : index
    %c0_7 = arith.constant 0 : index
    %9 = vector.load %arg1[%c0_6, %c19, %c0_7] : memref<2x256x64xf32, #tpu.memory_space<vmem>>, vector<1x192x64xf32>
    %10 = vector.shape_cast %9 : vector<1x192x64xf32> to vector<192x64xf32>
    %11 = tpu.concatenate %10, %0 in 1 : vector<192x64xf32>, vector<192x64xf32> -> vector<192x128xf32>
    %c0_8 = arith.constant 0 : index
    %c256 = arith.constant 256 : index
    %12 = vector.load %arg5[%c0_8, %c256] : memref<384x1152xf32, #tpu.memory_space<vmem>>, vector<192x128xf32>
    tpu.vector_store %arg5[%c0_8, %c256], %11 {strides = array<i32>} : memref<384x1152xf32, #tpu.memory_space<vmem>>, vector<192x128xf32>,
    %c0_9 = arith.constant 0 : index
    %c33 = arith.constant 33 : index
    %c0_10 = arith.constant 0 : index
    %13 = vector.load %arg1[%c0_9, %c33, %c0_10] : memref<2x256x64xf32, #tpu.memory_space<vmem>>, vector<1x192x64xf32>
    %14 = vector.shape_cast %13 : vector<1x192x64xf32> to vector<192x64xf32>
    %15 = tpu.concatenate %14, %0 in 1 : vector<192x64xf32>, vector<192x64xf32> -> vector<192x128xf32>
    %c0_11 = arith.constant 0 : index
    %c384 = arith.constant 384 : index
    %16 = vector.load %arg5[%c0_11, %c384] : memref<384x1152xf32, #tpu.memory_space<vmem>>, vector<192x128xf32>
    tpu.vector_store %arg5[%c0_11, %c384], %15 {strides = array<i32>} : memref<384x1152xf32, #tpu.memory_space<vmem>>, vector<192x128xf32>,
    %c0_12 = arith.constant 0 : index
    %c34 = arith.constant 34 : index
    %c0_13 = arith.constant 0 : index
    %17 = vector.load %arg1[%c0_12, %c34, %c0_13] : memref<2x256x64xf32, #tpu.memory_space<vmem>>, vector<1x192x64xf32>
    %18 = vector.shape_cast %17 : vector<1x192x64xf32> to vector<192x64xf32>
    %19 = tpu.concatenate %18, %0 in 1 : vector<192x64xf32>, vector<192x64xf32> -> vector<192x128xf32>
    %c0_14 = arith.constant 0 : index
    %c512 = arith.constant 512 : index
    %20 = vector.load %arg5[%c0_14, %c512] : memref<384x1152xf32, #tpu.memory_space<vmem>>, vector<192x128xf32>
    tpu.vector_store %arg5[%c0_14, %c512], %19 {strides = array<i32>} : memref<384x1152xf32, #tpu.memory_space<vmem>>, vector<192x128xf32>,
    %c0_15 = arith.constant 0 : index
    %c35 = arith.constant 35 : index
    %c0_16 = arith.constant 0 : index
    %21 = vector.load %arg1[%c0_15, %c35, %c0_16] : memref<2x256x64xf32, #tpu.memory_space<vmem>>, vector<1x192x64xf32>
    %22 = vector.shape_cast %21 : vector<1x192x64xf32> to vector<192x64xf32>
    %23 = tpu.concatenate %22, %0 in 1 : vector<192x64xf32>, vector<192x64xf32> -> vector<192x128xf32>
    %c0_17 = arith.constant 0 : index
    %c640 = arith.constant 640 : index
    %24 = vector.load %arg5[%c0_17, %c640] : memref<384x1152xf32, #tpu.memory_space<vmem>>, vector<192x128xf32>
    tpu.vector_store %arg5[%c0_17, %c640], %23 {strides = array<i32>} : memref<384x1152xf32, #tpu.memory_space<vmem>>, vector<192x128xf32>,
    %c0_18 = arith.constant 0 : index
    %c49 = arith.constant 49 : index
    %c0_19 = arith.constant 0 : index
    %25 = vector.load %arg1[%c0_18, %c49, %c0_19] : memref<2x256x64xf32, #tpu.memory_space<vmem>>, vector<1x192x64xf32>
    %26 = vector.shape_cast %25 : vector<1x192x64xf32> to vector<192x64xf32>
    %27 = tpu.concatenate %26, %0 in 1 : vector<192x64xf32>, vector<192x64xf32> -> vector<192x128xf32>
    %c0_20 = arith.constant 0 : index
    %c768 = arith.constant 768 : index
    %28 = vector.load %arg5[%c0_20, %c768] : memref<384x1152xf32, #tpu.memory_space<vmem>>, vector<192x128xf32>
    tpu.vector_store %arg5[%c0_20, %c768], %27 {strides = array<i32>} : memref<384x1152xf32, #tpu.memory_space<vmem>>, vector<192x128xf32>,
    %c0_21 = arith.constant 0 : index
    %c50 = arith.constant 50 : index
    %c0_22 = arith.constant 0 : index
    %29 = vector.load %arg1[%c0_21, %c50, %c0_22] : memref<2x256x64xf32, #tpu.memory_space<vmem>>, vector<1x192x64xf32>
    %30 = vector.shape_cast %29 : vector<1x192x64xf32> to vector<192x64xf32>
    %31 = tpu.concatenate %30, %0 in 1 : vector<192x64xf32>, vector<192x64xf32> -> vector<192x128xf32>
    %c0_23 = arith.constant 0 : index
    %c896 = arith.constant 896 : index
    %32 = vector.load %arg5[%c0_23, %c896] : memref<384x1152xf32, #tpu.memory_space<vmem>>, vector<192x128xf32>
    tpu.vector_store %arg5[%c0_23, %c896], %31 {strides = array<i32>} : memref<384x1152xf32, #tpu.memory_space<vmem>>, vector<192x128xf32>,
    %c0_24 = arith.constant 0 : index
    %c51 = arith.constant 51 : index
    %c0_25 = arith.constant 0 : index
    %33 = vector.load %arg1[%c0_24, %c51, %c0_25] : memref<2x256x64xf32, #tpu.memory_space<vmem>>, vector<1x192x64xf32>
    %34 = vector.shape_cast %33 : vector<1x192x64xf32> to vector<192x64xf32>
    %35 = tpu.concatenate %34, %0 in 1 : vector<192x64xf32>, vector<192x64xf32> -> vector<192x128xf32>
    %c0_26 = arith.constant 0 : index
    %c1024 = arith.constant 1024 : index
    %36 = vector.load %arg5[%c0_26, %c1024] : memref<384x1152xf32, #tpu.memory_space<vmem>>, vector<192x128xf32>
    tpu.vector_store %arg5[%c0_26, %c1024], %35 {strides = array<i32>} : memref<384x1152xf32, #tpu.memory_space<vmem>>, vector<192x128xf32>,
    %c1 = arith.constant 1 : index
    %c17_27 = arith.constant 17 : index
    %c0_28 = arith.constant 0 : index
    %37 = vector.load %arg1[%c1, %c17_27, %c0_28] : memref<2x256x64xf32, #tpu.memory_space<vmem>>, vector<1x192x64xf32>
    %38 = vector.shape_cast %37 : vector<1x192x64xf32> to vector<192x64xf32>
    %39 = tpu.concatenate %38, %0 in 1 : vector<192x64xf32>, vector<192x64xf32> -> vector<192x128xf32>
    %c192 = arith.constant 192 : index
    %c0_29 = arith.constant 0 : index
    %40 = vector.load %arg5[%c192, %c0_29] : memref<384x1152xf32, #tpu.memory_space<vmem>>, vector<192x128xf32>
    tpu.vector_store %arg5[%c192, %c0_29], %39 {strides = array<i32>} : memref<384x1152xf32, #tpu.memory_space<vmem>>, vector<192x128xf32>,
    %c1_30 = arith.constant 1 : index
    %c18_31 = arith.constant 18 : index
    %c0_32 = arith.constant 0 : index
    %41 = vector.load %arg1[%c1_30, %c18_31, %c0_32] : memref<2x256x64xf32, #tpu.memory_space<vmem>>, vector<1x192x64xf32>
    %42 = vector.shape_cast %41 : vector<1x192x64xf32> to vector<192x64xf32>
    %43 = tpu.concatenate %42, %0 in 1 : vector<192x64xf32>, vector<192x64xf32> -> vector<192x128xf32>
    %c192_33 = arith.constant 192 : index
    %c128_34 = arith.constant 128 : index
    %44 = vector.load %arg5[%c192_33, %c128_34] : memref<384x1152xf32, #tpu.memory_space<vmem>>, vector<192x128xf32>
    tpu.vector_store %arg5[%c192_33, %c128_34], %43 {strides = array<i32>} : memref<384x1152xf32, #tpu.memory_space<vmem>>, vector<192x128xf32>,
    %c1_35 = arith.constant 1 : index
    %c19_36 = arith.constant 19 : index
    %c0_37 = arith.constant 0 : index
    %45 = vector.load %arg1[%c1_35, %c19_36, %c0_37] : memref<2x256x64xf32, #tpu.memory_space<vmem>>, vector<1x192x64xf32>
    %46 = vector.shape_cast %45 : vector<1x192x64xf32> to vector<192x64xf32>
    %47 = tpu.concatenate %46, %0 in 1 : vector<192x64xf32>, vector<192x64xf32> -> vector<192x128xf32>
    %c192_38 = arith.constant 192 : index
    %c256_39 = arith.constant 256 : index
    %48 = vector.load %arg5[%c192_38, %c256_39] : memref<384x1152xf32, #tpu.memory_space<vmem>>, vector<192x128xf32>
    tpu.vector_store %arg5[%c192_38, %c256_39], %47 {strides = array<i32>} : memref<384x1152xf32, #tpu.memory_space<vmem>>, vector<192x128xf32>,
    %c1_40 = arith.constant 1 : index
    %c33_41 = arith.constant 33 : index
    %c0_42 = arith.constant 0 : index
    %49 = vector.load %arg1[%c1_40, %c33_41, %c0_42] : memref<2x256x64xf32, #tpu.memory_space<vmem>>, vector<1x192x64xf32>
    %50 = vector.shape_cast %49 : vector<1x192x64xf32> to vector<192x64xf32>
    %51 = tpu.concatenate %50, %0 in 1 : vector<192x64xf32>, vector<192x64xf32> -> vector<192x128xf32>
    %c192_43 = arith.constant 192 : index
    %c384_44 = arith.constant 384 : index
    %52 = vector.load %arg5[%c192_43, %c384_44] : memref<384x1152xf32, #tpu.memory_space<vmem>>, vector<192x128xf32>
    tpu.vector_store %arg5[%c192_43, %c384_44], %51 {strides = array<i32>} : memref<384x1152xf32, #tpu.memory_space<vmem>>, vector<192x128xf32>,
    %c1_45 = arith.constant 1 : index
    %c34_46 = arith.constant 34 : index
    %c0_47 = arith.constant 0 : index
    %53 = vector.load %arg1[%c1_45, %c34_46, %c0_47] : memref<2x256x64xf32, #tpu.memory_space<vmem>>, vector<1x192x64xf32>
    %54 = vector.shape_cast %53 : vector<1x192x64xf32> to vector<192x64xf32>
    %55 = tpu.concatenate %54, %0 in 1 : vector<192x64xf32>, vector<192x64xf32> -> vector<192x128xf32>
    %c192_48 = arith.constant 192 : index
    %c512_49 = arith.constant 512 : index
    %56 = vector.load %arg5[%c192_48, %c512_49] : memref<384x1152xf32, #tpu.memory_space<vmem>>, vector<192x128xf32>
    tpu.vector_store %arg5[%c192_48, %c512_49], %55 {strides = array<i32>} : memref<384x1152xf32, #tpu.memory_space<vmem>>, vector<192x128xf32>,
    %c1_50 = arith.constant 1 : index
    %c35_51 = arith.constant 35 : index
    %c0_52 = arith.constant 0 : index
    %57 = vector.load %arg1[%c1_50, %c35_51, %c0_52] : memref<2x256x64xf32, #tpu.memory_space<vmem>>, vector<1x192x64xf32>
    %58 = vector.shape_cast %57 : vector<1x192x64xf32> to vector<192x64xf32>
    %59 = tpu.concatenate %58, %0 in 1 : vector<192x64xf32>, vector<192x64xf32> -> vector<192x128xf32>
    %c192_53 = arith.constant 192 : index
    %c640_54 = arith.constant 640 : index
    %60 = vector.load %arg5[%c192_53, %c640_54] : memref<384x1152xf32, #tpu.memory_space<vmem>>, vector<192x128xf32>
    tpu.vector_store %arg5[%c192_53, %c640_54], %59 {strides = array<i32>} : memref<384x1152xf32, #tpu.memory_space<vmem>>, vector<192x128xf32>,
    %c1_55 = arith.constant 1 : index
    %c49_56 = arith.constant 49 : index
    %c0_57 = arith.constant 0 : index
    %61 = vector.load %arg1[%c1_55, %c49_56, %c0_57] : memref<2x256x64xf32, #tpu.memory_space<vmem>>, vector<1x192x64xf32>
    %62 = vector.shape_cast %61 : vector<1x192x64xf32> to vector<192x64xf32>
    %63 = tpu.concatenate %62, %0 in 1 : vector<192x64xf32>, vector<192x64xf32> -> vector<192x128xf32>
    %c192_58 = arith.constant 192 : index
    %c768_59 = arith.constant 768 : index
    %64 = vector.load %arg5[%c192_58, %c768_59] : memref<384x1152xf32, #tpu.memory_space<vmem>>, vector<192x128xf32>
    tpu.vector_store %arg5[%c192_58, %c768_59], %63 {strides = array<i32>} : memref<384x1152xf32, #tpu.memory_space<vmem>>, vector<192x128xf32>,
    %c1_60 = arith.constant 1 : index
    %c50_61 = arith.constant 50 : index
    %c0_62 = arith.constant 0 : index
    %65 = vector.load %arg1[%c1_60, %c50_61, %c0_62] : memref<2x256x64xf32, #tpu.memory_space<vmem>>, vector<1x192x64xf32>
    %66 = vector.shape_cast %65 : vector<1x192x64xf32> to vector<192x64xf32>
    %67 = tpu.concatenate %66, %0 in 1 : vector<192x64xf32>, vector<192x64xf32> -> vector<192x128xf32>
    %c192_63 = arith.constant 192 : index
    %c896_64 = arith.constant 896 : index
    %68 = vector.load %arg5[%c192_63, %c896_64] : memref<384x1152xf32, #tpu.memory_space<vmem>>, vector<192x128xf32>
    tpu.vector_store %arg5[%c192_63, %c896_64], %67 {strides = array<i32>} : memref<384x1152xf32, #tpu.memory_space<vmem>>, vector<192x128xf32>,
    %c1_65 = arith.constant 1 : index
    %c51_66 = arith.constant 51 : index
    %c0_67 = arith.constant 0 : index
    %69 = vector.load %arg1[%c1_65, %c51_66, %c0_67] : memref<2x256x64xf32, #tpu.memory_space<vmem>>, vector<1x192x64xf32>
    %70 = vector.shape_cast %69 : vector<1x192x64xf32> to vector<192x64xf32>
    %71 = tpu.concatenate %70, %0 in 1 : vector<192x64xf32>, vector<192x64xf32> -> vector<192x128xf32>
    %c192_68 = arith.constant 192 : index
    %c1024_69 = arith.constant 1024 : index
    %72 = vector.load %arg5[%c192_68, %c1024_69] : memref<384x1152xf32, #tpu.memory_space<vmem>>, vector<192x128xf32>
    tpu.vector_store %arg5[%c192_68, %c1024_69], %71 {strides = array<i32>} : memref<384x1152xf32, #tpu.memory_space<vmem>>, vector<192x128xf32>,
    %c0_70 = arith.constant 0 : index
    %c0_71 = arith.constant 0 : index
    %73 = vector.load %arg5[%c0_70, %c0_71] : memref<384x1152xf32, #tpu.memory_space<vmem>>, vector<384x1152xf32>
    %c0_72 = arith.constant 0 : index
    %c0_73 = arith.constant 0 : index
    %74 = vector.load %arg2[%c0_72, %c0_73] : memref<1152x32xf32, #tpu.memory_space<vmem>>, vector<1152x32xf32>
    %cst_74 = arith.constant dense<0.000000e+00> : vector<384x32xf32>
    %75 = tpu.matmul %73, %74, %cst_74 {dimension_numbers = #tpu.dot_dimension_numbers<[1], [0], [0], [1], [0, 0, 1, 1], [], []>} : vector<384x1152xf32>, vector<1152x32xf32>, vector<384x32xf32> -> vector<384x32xf32>
    %c0_75 = arith.constant 0 : index
    %c0_76 = arith.constant 0 : index
    %76 = vector.load %arg3[%c0_75, %c0_76] : memref<1x32xf32, #tpu.memory_space<vmem>>, vector<1x32xf32>
    %77 = vector.broadcast %76 : vector<1x32xf32> to vector<384x32xf32>
    %78 = arith.addf %75, %77 : vector<384x32xf32>
    %cst_77 = arith.constant -5.000000e-01 : f32
    %cst_78 = arith.constant 1.000000e+00 : f32
    %79 = vector.broadcast %cst_77 : f32 to vector<384x32xf32>
    %80 = arith.maximumf %79, %78 : vector<384x32xf32>
    %81 = vector.broadcast %cst_78 : f32 to vector<384x32xf32>
    %82 = arith.minimumf %81, %80 : vector<384x32xf32>
    %83 = vector.extract_strided_slice %82 {offsets = [0, 0], sizes = [12, 32], strides = [1, 1]} : vector<384x32xf32> to vector<12x32xf32>
    %c0_79 = arith.constant 0 : index
    %c0_80 = arith.constant 0 : index
    %c0_81 = arith.constant 0 : index
    %c0_82 = arith.constant 0 : index
    %84 = vector.load %arg4[%c0_79, %c0_80, %c0_81, %c0_82] : memref<2x12x12x32xf32, #tpu.memory_space<vmem>>, vector<1x1x12x32xf32>
    %85 = vector.shape_cast %84 : vector<1x1x12x32xf32> to vector<12x32xf32>
    %86 = vector.shape_cast %83 : vector<12x32xf32> to vector<1x1x12x32xf32>
    tpu.vector_store %arg4[%c0_79, %c0_80, %c0_81, %c0_82], %86 {strides = array<i32>} : memref<2x12x12x32xf32, #tpu.memory_space<vmem>>, vector<1x1x12x32xf32>,
    %87 = vector.extract_strided_slice %82 {offsets = [16, 0], sizes = [12, 32], strides = [1, 1]} : vector<384x32xf32> to vector<12x32xf32>
    %c0_83 = arith.constant 0 : index
    %c1_84 = arith.constant 1 : index
    %c0_85 = arith.constant 0 : index
    %c0_86 = arith.constant 0 : index
    %88 = vector.load %arg4[%c0_83, %c1_84, %c0_85, %c0_86] : memref<2x12x12x32xf32, #tpu.memory_space<vmem>>, vector<1x1x12x32xf32>
    %89 = vector.shape_cast %88 : vector<1x1x12x32xf32> to vector<12x32xf32>
    %90 = vector.shape_cast %87 : vector<12x32xf32> to vector<1x1x12x32xf32>
    tpu.vector_store %arg4[%c0_83, %c1_84, %c0_85, %c0_86], %90 {strides = array<i32>} : memref<2x12x12x32xf32, #tpu.memory_space<vmem>>, vector<1x1x12x32xf32>,
    %91 = vector.extract_strided_slice %82 {offsets = [32, 0], sizes = [12, 32], strides = [1, 1]} : vector<384x32xf32> to vector<12x32xf32>
    %c0_87 = arith.constant 0 : index
    %c2 = arith.constant 2 : index
    %c0_88 = arith.constant 0 : index
    %c0_89 = arith.constant 0 : index
    %92 = vector.load %arg4[%c0_87, %c2, %c0_88, %c0_89] : memref<2x12x12x32xf32, #tpu.memory_space<vmem>>, vector<1x1x12x32xf32>
    %93 = vector.shape_cast %92 : vector<1x1x12x32xf32> to vector<12x32xf32>
    %94 = vector.shape_cast %91 : vector<12x32xf32> to vector<1x1x12x32xf32>
    tpu.vector_store %arg4[%c0_87, %c2, %c0_88, %c0_89], %94 {strides = array<i32>} : memref<2x12x12x32xf32, #tpu.memory_space<vmem>>, vector<1x1x12x32xf32>,
    %95 = vector.extract_strided_slice %82 {offsets = [48, 0], sizes = [12, 32], strides = [1, 1]} : vector<384x32xf32> to vector<12x32xf32>
    %c0_90 = arith.constant 0 : index
    %c3 = arith.constant 3 : index
    %c0_91 = arith.constant 0 : index
    %c0_92 = arith.constant 0 : index
    %96 = vector.load %arg4[%c0_90, %c3, %c0_91, %c0_92] : memref<2x12x12x32xf32, #tpu.memory_space<vmem>>, vector<1x1x12x32xf32>
    %97 = vector.shape_cast %96 : vector<1x1x12x32xf32> to vector<12x32xf32>
    %98 = vector.shape_cast %95 : vector<12x32xf32> to vector<1x1x12x32xf32>
    tpu.vector_store %arg4[%c0_90, %c3, %c0_91, %c0_92], %98 {strides = array<i32>} : memref<2x12x12x32xf32, #tpu.memory_space<vmem>>, vector<1x1x12x32xf32>,
    %99 = vector.extract_strided_slice %82 {offsets = [64, 0], sizes = [12, 32], strides = [1, 1]} : vector<384x32xf32> to vector<12x32xf32>
    %c0_93 = arith.constant 0 : index
    %c4 = arith.constant 4 : index
    %c0_94 = arith.constant 0 : index
    %c0_95 = arith.constant 0 : index
    %100 = vector.load %arg4[%c0_93, %c4, %c0_94, %c0_95] : memref<2x12x12x32xf32, #tpu.memory_space<vmem>>, vector<1x1x12x32xf32>
    %101 = vector.shape_cast %100 : vector<1x1x12x32xf32> to vector<12x32xf32>
    %102 = vector.shape_cast %99 : vector<12x32xf32> to vector<1x1x12x32xf32>
    tpu.vector_store %arg4[%c0_93, %c4, %c0_94, %c0_95], %102 {strides = array<i32>} : memref<2x12x12x32xf32, #tpu.memory_space<vmem>>, vector<1x1x12x32xf32>,
    %103 = vector.extract_strided_slice %82 {offsets = [80, 0], sizes = [12, 32], strides = [1, 1]} : vector<384x32xf32> to vector<12x32xf32>
    %c0_96 = arith.constant 0 : index
    %c5 = arith.constant 5 : index
    %c0_97 = arith.constant 0 : index
    %c0_98 = arith.constant 0 : index
    %104 = vector.load %arg4[%c0_96, %c5, %c0_97, %c0_98] : memref<2x12x12x32xf32, #tpu.memory_space<vmem>>, vector<1x1x12x32xf32>
    %105 = vector.shape_cast %104 : vector<1x1x12x32xf32> to vector<12x32xf32>
    %106 = vector.shape_cast %103 : vector<12x32xf32> to vector<1x1x12x32xf32>
    tpu.vector_store %arg4[%c0_96, %c5, %c0_97, %c0_98], %106 {strides = array<i32>} : memref<2x12x12x32xf32, #tpu.memory_space<vmem>>, vector<1x1x12x32xf32>,
    %107 = vector.extract_strided_slice %82 {offsets = [96, 0], sizes = [12, 32], strides = [1, 1]} : vector<384x32xf32> to vector<12x32xf32>
    %c0_99 = arith.constant 0 : index
    %c6 = arith.constant 6 : index
    %c0_100 = arith.constant 0 : index
    %c0_101 = arith.constant 0 : index
    %108 = vector.load %arg4[%c0_99, %c6, %c0_100, %c0_101] : memref<2x12x12x32xf32, #tpu.memory_space<vmem>>, vector<1x1x12x32xf32>
    %109 = vector.shape_cast %108 : vector<1x1x12x32xf32> to vector<12x32xf32>
    %110 = vector.shape_cast %107 : vector<12x32xf32> to vector<1x1x12x32xf32>
    tpu.vector_store %arg4[%c0_99, %c6, %c0_100, %c0_101], %110 {strides = array<i32>} : memref<2x12x12x32xf32, #tpu.memory_space<vmem>>, vector<1x1x12x32xf32>,
    %111 = vector.extract_strided_slice %82 {offsets = [112, 0], sizes = [12, 32], strides = [1, 1]} : vector<384x32xf32> to vector<12x32xf32>
    %c0_102 = arith.constant 0 : index
    %c7 = arith.constant 7 : index
    %c0_103 = arith.constant 0 : index
    %c0_104 = arith.constant 0 : index
    %112 = vector.load %arg4[%c0_102, %c7, %c0_103, %c0_104] : memref<2x12x12x32xf32, #tpu.memory_space<vmem>>, vector<1x1x12x32xf32>
    %113 = vector.shape_cast %112 : vector<1x1x12x32xf32> to vector<12x32xf32>
    %114 = vector.shape_cast %111 : vector<12x32xf32> to vector<1x1x12x32xf32>
    tpu.vector_store %arg4[%c0_102, %c7, %c0_103, %c0_104], %114 {strides = array<i32>} : memref<2x12x12x32xf32, #tpu.memory_space<vmem>>, vector<1x1x12x32xf32>,
    %115 = vector.extract_strided_slice %82 {offsets = [128, 0], sizes = [12, 32], strides = [1, 1]} : vector<384x32xf32> to vector<12x32xf32>
    %c0_105 = arith.constant 0 : index
    %c8 = arith.constant 8 : index
    %c0_106 = arith.constant 0 : index
    %c0_107 = arith.constant 0 : index
    %116 = vector.load %arg4[%c0_105, %c8, %c0_106, %c0_107] : memref<2x12x12x32xf32, #tpu.memory_space<vmem>>, vector<1x1x12x32xf32>
    %117 = vector.shape_cast %116 : vector<1x1x12x32xf32> to vector<12x32xf32>
    %118 = vector.shape_cast %115 : vector<12x32xf32> to vector<1x1x12x32xf32>
    tpu.vector_store %arg4[%c0_105, %c8, %c0_106, %c0_107], %118 {strides = array<i32>} : memref<2x12x12x32xf32, #tpu.memory_space<vmem>>, vector<1x1x12x32xf32>,
    %119 = vector.extract_strided_slice %82 {offsets = [144, 0], sizes = [12, 32], strides = [1, 1]} : vector<384x32xf32> to vector<12x32xf32>
    %c0_108 = arith.constant 0 : index
    %c9 = arith.constant 9 : index
    %c0_109 = arith.constant 0 : index
    %c0_110 = arith.constant 0 : index
    %120 = vector.load %arg4[%c0_108, %c9, %c0_109, %c0_110] : memref<2x12x12x32xf32, #tpu.memory_space<vmem>>, vector<1x1x12x32xf32>
    %121 = vector.shape_cast %120 : vector<1x1x12x32xf32> to vector<12x32xf32>
    %122 = vector.shape_cast %119 : vector<12x32xf32> to vector<1x1x12x32xf32>
    tpu.vector_store %arg4[%c0_108, %c9, %c0_109, %c0_110], %122 {strides = array<i32>} : memref<2x12x12x32xf32, #tpu.memory_space<vmem>>, vector<1x1x12x32xf32>,
    %123 = vector.extract_strided_slice %82 {offsets = [160, 0], sizes = [12, 32], strides = [1, 1]} : vector<384x32xf32> to vector<12x32xf32>
    %c0_111 = arith.constant 0 : index
    %c10 = arith.constant 10 : index
    %c0_112 = arith.constant 0 : index
    %c0_113 = arith.constant 0 : index
    %124 = vector.load %arg4[%c0_111, %c10, %c0_112, %c0_113] : memref<2x12x12x32xf32, #tpu.memory_space<vmem>>, vector<1x1x12x32xf32>
    %125 = vector.shape_cast %124 : vector<1x1x12x32xf32> to vector<12x32xf32>
    %126 = vector.shape_cast %123 : vector<12x32xf32> to vector<1x1x12x32xf32>
    tpu.vector_store %arg4[%c0_111, %c10, %c0_112, %c0_113], %126 {strides = array<i32>} : memref<2x12x12x32xf32, #tpu.memory_space<vmem>>, vector<1x1x12x32xf32>,
    %127 = vector.extract_strided_slice %82 {offsets = [176, 0], sizes = [12, 32], strides = [1, 1]} : vector<384x32xf32> to vector<12x32xf32>
    %c0_114 = arith.constant 0 : index
    %c11 = arith.constant 11 : index
    %c0_115 = arith.constant 0 : index
    %c0_116 = arith.constant 0 : index
    %128 = vector.load %arg4[%c0_114, %c11, %c0_115, %c0_116] : memref<2x12x12x32xf32, #tpu.memory_space<vmem>>, vector<1x1x12x32xf32>
    %129 = vector.shape_cast %128 : vector<1x1x12x32xf32> to vector<12x32xf32>
    %130 = vector.shape_cast %127 : vector<12x32xf32> to vector<1x1x12x32xf32>
    tpu.vector_store %arg4[%c0_114, %c11, %c0_115, %c0_116], %130 {strides = array<i32>} : memref<2x12x12x32xf32, #tpu.memory_space<vmem>>, vector<1x1x12x32xf32>,
    %131 = vector.extract_strided_slice %82 {offsets = [192, 0], sizes = [12, 32], strides = [1, 1]} : vector<384x32xf32> to vector<12x32xf32>
    %c1_117 = arith.constant 1 : index
    %c0_118 = arith.constant 0 : index
    %c0_119 = arith.constant 0 : index
    %c0_120 = arith.constant 0 : index
    %132 = vector.load %arg4[%c1_117, %c0_118, %c0_119, %c0_120] : memref<2x12x12x32xf32, #tpu.memory_space<vmem>>, vector<1x1x12x32xf32>
    %133 = vector.shape_cast %132 : vector<1x1x12x32xf32> to vector<12x32xf32>
    %134 = vector.shape_cast %131 : vector<12x32xf32> to vector<1x1x12x32xf32>
    tpu.vector_store %arg4[%c1_117, %c0_118, %c0_119, %c0_120], %134 {strides = array<i32>} : memref<2x12x12x32xf32, #tpu.memory_space<vmem>>, vector<1x1x12x32xf32>,
    %135 = vector.extract_strided_slice %82 {offsets = [208, 0], sizes = [12, 32], strides = [1, 1]} : vector<384x32xf32> to vector<12x32xf32>
    %c1_121 = arith.constant 1 : index
    %c1_122 = arith.constant 1 : index
    %c0_123 = arith.constant 0 : index
    %c0_124 = arith.constant 0 : index
    %136 = vector.load %arg4[%c1_121, %c1_122, %c0_123, %c0_124] : memref<2x12x12x32xf32, #tpu.memory_space<vmem>>, vector<1x1x12x32xf32>
    %137 = vector.shape_cast %136 : vector<1x1x12x32xf32> to vector<12x32xf32>
    %138 = vector.shape_cast %135 : vector<12x32xf32> to vector<1x1x12x32xf32>
    tpu.vector_store %arg4[%c1_121, %c1_122, %c0_123, %c0_124], %138 {strides = array<i32>} : memref<2x12x12x32xf32, #tpu.memory_space<vmem>>, vector<1x1x12x32xf32>,
    %139 = vector.extract_strided_slice %82 {offsets = [224, 0], sizes = [12, 32], strides = [1, 1]} : vector<384x32xf32> to vector<12x32xf32>
    %c1_125 = arith.constant 1 : index
    %c2_126 = arith.constant 2 : index
    %c0_127 = arith.constant 0 : index
    %c0_128 = arith.constant 0 : index
    %140 = vector.load %arg4[%c1_125, %c2_126, %c0_127, %c0_128] : memref<2x12x12x32xf32, #tpu.memory_space<vmem>>, vector<1x1x12x32xf32>
    %141 = vector.shape_cast %140 : vector<1x1x12x32xf32> to vector<12x32xf32>
    %142 = vector.shape_cast %139 : vector<12x32xf32> to vector<1x1x12x32xf32>
    tpu.vector_store %arg4[%c1_125, %c2_126, %c0_127, %c0_128], %142 {strides = array<i32>} : memref<2x12x12x32xf32, #tpu.memory_space<vmem>>, vector<1x1x12x32xf32>,
    %143 = vector.extract_strided_slice %82 {offsets = [240, 0], sizes = [12, 32], strides = [1, 1]} : vector<384x32xf32> to vector<12x32xf32>
    %c1_129 = arith.constant 1 : index
    %c3_130 = arith.constant 3 : index
    %c0_131 = arith.constant 0 : index
    %c0_132 = arith.constant 0 : index
    %144 = vector.load %arg4[%c1_129, %c3_130, %c0_131, %c0_132] : memref<2x12x12x32xf32, #tpu.memory_space<vmem>>, vector<1x1x12x32xf32>
    %145 = vector.shape_cast %144 : vector<1x1x12x32xf32> to vector<12x32xf32>
    %146 = vector.shape_cast %143 : vector<12x32xf32> to vector<1x1x12x32xf32>
    tpu.vector_store %arg4[%c1_129, %c3_130, %c0_131, %c0_132], %146 {strides = array<i32>} : memref<2x12x12x32xf32, #tpu.memory_space<vmem>>, vector<1x1x12x32xf32>,
    %147 = vector.extract_strided_slice %82 {offsets = [256, 0], sizes = [12, 32], strides = [1, 1]} : vector<384x32xf32> to vector<12x32xf32>
    %c1_133 = arith.constant 1 : index
    %c4_134 = arith.constant 4 : index
    %c0_135 = arith.constant 0 : index
    %c0_136 = arith.constant 0 : index
    %148 = vector.load %arg4[%c1_133, %c4_134, %c0_135, %c0_136] : memref<2x12x12x32xf32, #tpu.memory_space<vmem>>, vector<1x1x12x32xf32>
    %149 = vector.shape_cast %148 : vector<1x1x12x32xf32> to vector<12x32xf32>
    %150 = vector.shape_cast %147 : vector<12x32xf32> to vector<1x1x12x32xf32>
    tpu.vector_store %arg4[%c1_133, %c4_134, %c0_135, %c0_136], %150 {strides = array<i32>} : memref<2x12x12x32xf32, #tpu.memory_space<vmem>>, vector<1x1x12x32xf32>,
    %151 = vector.extract_strided_slice %82 {offsets = [272, 0], sizes = [12, 32], strides = [1, 1]} : vector<384x32xf32> to vector<12x32xf32>
    %c1_137 = arith.constant 1 : index
    %c5_138 = arith.constant 5 : index
    %c0_139 = arith.constant 0 : index
    %c0_140 = arith.constant 0 : index
    %152 = vector.load %arg4[%c1_137, %c5_138, %c0_139, %c0_140] : memref<2x12x12x32xf32, #tpu.memory_space<vmem>>, vector<1x1x12x32xf32>
    %153 = vector.shape_cast %152 : vector<1x1x12x32xf32> to vector<12x32xf32>
    %154 = vector.shape_cast %151 : vector<12x32xf32> to vector<1x1x12x32xf32>
    tpu.vector_store %arg4[%c1_137, %c5_138, %c0_139, %c0_140], %154 {strides = array<i32>} : memref<2x12x12x32xf32, #tpu.memory_space<vmem>>, vector<1x1x12x32xf32>,
    %155 = vector.extract_strided_slice %82 {offsets = [288, 0], sizes = [12, 32], strides = [1, 1]} : vector<384x32xf32> to vector<12x32xf32>
    %c1_141 = arith.constant 1 : index
    %c6_142 = arith.constant 6 : index
    %c0_143 = arith.constant 0 : index
    %c0_144 = arith.constant 0 : index
    %156 = vector.load %arg4[%c1_141, %c6_142, %c0_143, %c0_144] : memref<2x12x12x32xf32, #tpu.memory_space<vmem>>, vector<1x1x12x32xf32>
    %157 = vector.shape_cast %156 : vector<1x1x12x32xf32> to vector<12x32xf32>
    %158 = vector.shape_cast %155 : vector<12x32xf32> to vector<1x1x12x32xf32>
    tpu.vector_store %arg4[%c1_141, %c6_142, %c0_143, %c0_144], %158 {strides = array<i32>} : memref<2x12x12x32xf32, #tpu.memory_space<vmem>>, vector<1x1x12x32xf32>,
    %159 = vector.extract_strided_slice %82 {offsets = [304, 0], sizes = [12, 32], strides = [1, 1]} : vector<384x32xf32> to vector<12x32xf32>
    %c1_145 = arith.constant 1 : index
    %c7_146 = arith.constant 7 : index
    %c0_147 = arith.constant 0 : index
    %c0_148 = arith.constant 0 : index
    %160 = vector.load %arg4[%c1_145, %c7_146, %c0_147, %c0_148] : memref<2x12x12x32xf32, #tpu.memory_space<vmem>>, vector<1x1x12x32xf32>
    %161 = vector.shape_cast %160 : vector<1x1x12x32xf32> to vector<12x32xf32>
    %162 = vector.shape_cast %159 : vector<12x32xf32> to vector<1x1x12x32xf32>
    tpu.vector_store %arg4[%c1_145, %c7_146, %c0_147, %c0_148], %162 {strides = array<i32>} : memref<2x12x12x32xf32, #tpu.memory_space<vmem>>, vector<1x1x12x32xf32>,
    %163 = vector.extract_strided_slice %82 {offsets = [320, 0], sizes = [12, 32], strides = [1, 1]} : vector<384x32xf32> to vector<12x32xf32>
    %c1_149 = arith.constant 1 : index
    %c8_150 = arith.constant 8 : index
    %c0_151 = arith.constant 0 : index
    %c0_152 = arith.constant 0 : index
    %164 = vector.load %arg4[%c1_149, %c8_150, %c0_151, %c0_152] : memref<2x12x12x32xf32, #tpu.memory_space<vmem>>, vector<1x1x12x32xf32>
    %165 = vector.shape_cast %164 : vector<1x1x12x32xf32> to vector<12x32xf32>
    %166 = vector.shape_cast %163 : vector<12x32xf32> to vector<1x1x12x32xf32>
    tpu.vector_store %arg4[%c1_149, %c8_150, %c0_151, %c0_152], %166 {strides = array<i32>} : memref<2x12x12x32xf32, #tpu.memory_space<vmem>>, vector<1x1x12x32xf32>,
    %167 = vector.extract_strided_slice %82 {offsets = [336, 0], sizes = [12, 32], strides = [1, 1]} : vector<384x32xf32> to vector<12x32xf32>
    %c1_153 = arith.constant 1 : index
    %c9_154 = arith.constant 9 : index
    %c0_155 = arith.constant 0 : index
    %c0_156 = arith.constant 0 : index
    %168 = vector.load %arg4[%c1_153, %c9_154, %c0_155, %c0_156] : memref<2x12x12x32xf32, #tpu.memory_space<vmem>>, vector<1x1x12x32xf32>
    %169 = vector.shape_cast %168 : vector<1x1x12x32xf32> to vector<12x32xf32>
    %170 = vector.shape_cast %167 : vector<12x32xf32> to vector<1x1x12x32xf32>
    tpu.vector_store %arg4[%c1_153, %c9_154, %c0_155, %c0_156], %170 {strides = array<i32>} : memref<2x12x12x32xf32, #tpu.memory_space<vmem>>, vector<1x1x12x32xf32>,
    %171 = vector.extract_strided_slice %82 {offsets = [352, 0], sizes = [12, 32], strides = [1, 1]} : vector<384x32xf32> to vector<12x32xf32>
    %c1_157 = arith.constant 1 : index
    %c10_158 = arith.constant 10 : index
    %c0_159 = arith.constant 0 : index
    %c0_160 = arith.constant 0 : index
    %172 = vector.load %arg4[%c1_157, %c10_158, %c0_159, %c0_160] : memref<2x12x12x32xf32, #tpu.memory_space<vmem>>, vector<1x1x12x32xf32>
    %173 = vector.shape_cast %172 : vector<1x1x12x32xf32> to vector<12x32xf32>
    %174 = vector.shape_cast %171 : vector<12x32xf32> to vector<1x1x12x32xf32>
    tpu.vector_store %arg4[%c1_157, %c10_158, %c0_159, %c0_160], %174 {strides = array<i32>} : memref<2x12x12x32xf32, #tpu.memory_space<vmem>>, vector<1x1x12x32xf32>,
    %175 = vector.extract_strided_slice %82 {offsets = [368, 0], sizes = [12, 32], strides = [1, 1]} : vector<384x32xf32> to vector<12x32xf32>
    %c1_161 = arith.constant 1 : index
    %c11_162 = arith.constant 11 : index
    %c0_163 = arith.constant 0 : index
    %c0_164 = arith.constant 0 : index
    %176 = vector.load %arg4[%c1_161, %c11_162, %c0_163, %c0_164] : memref<2x12x12x32xf32, #tpu.memory_space<vmem>>, vector<1x1x12x32xf32>
    %177 = vector.shape_cast %176 : vector<1x1x12x32xf32> to vector<12x32xf32>
    %178 = vector.shape_cast %175 : vector<12x32xf32> to vector<1x1x12x32xf32>
    tpu.vector_store %arg4[%c1_161, %c11_162, %c0_163, %c0_164], %178 {strides = array<i32>} : memref<2x12x12x32xf32, #tpu.memory_space<vmem>>, vector<1x1x12x32xf32>,
    return
  }
  func.func @transform_0(%arg0: i32) -> (i32, i32, i32) {
    %c0_i32 = arith.constant 0 : i32
    %c0_i32_0 = arith.constant 0 : i32
    %c0_i32_1 = arith.constant 0 : i32
    return %arg0, %c0_i32, %c0_i32_0 : i32, i32, i32
  }
  func.func @transform_1(%arg0: i32) -> (i32, i32) {
    %c0_i32 = arith.constant 0 : i32
    %c0_i32_0 = arith.constant 0 : i32
    %c0_i32_1 = arith.constant 0 : i32
    return %c0_i32, %c0_i32_0 : i32, i32
  }
  func.func @transform_2(%arg0: i32) -> (i32, i32) {
    %c0_i32 = arith.constant 0 : i32
    %c0_i32_0 = arith.constant 0 : i32
    %c0_i32_1 = arith.constant 0 : i32
    return %c0_i32, %c0_i32_0 : i32, i32
  }
  func.func @transform_3(%arg0: i32) -> (i32, i32, i32, i32) {
    %c0_i32 = arith.constant 0 : i32
    %c0_i32_0 = arith.constant 0 : i32
    %c0_i32_1 = arith.constant 0 : i32
    %c0_i32_2 = arith.constant 0 : i32
    return %arg0, %c0_i32, %c0_i32_0, %c0_i32_1 : i32, i32, i32, i32
  }
}

</mosaic_0001>

<bundles_post_ra>
// kernel: tpu_custom_call.1
= control target key start
LH: loop header
LB: loop body
LE: loop exit
PB: predicated region body
PF: predicated region fallthrough
CT: control target
= control target key end

     0   :  { %vm38_vm0 = vcmask 523264   ;;  %vm3437_vm1 = vcmask 261120   ;;  %vm3439_vm2 = vcmask 257024   ;;  %s6734_s1 = inlined_call_operand.vmem [shape: f32[1152,32], index: 1, kind: input, shape index: {}]   ;;  %s6735_s0 = inlined_call_operand.vmem [shape: f32[2,256,64], index: 0, kind: input, shape index: {}]   ;;  %s6736_s2 = inlined_call_operand.vmem [shape: f32[1,32], index: 2, kind: input, shape index: {}]   ;;  %s6737_s3 = inlined_call_operand.vmem [shape: f32[2,12,12,32], index: 3, kind: output, shape index: {}]  }
   0x1   :  { %v1759_v0 = vld [vmem:[%s6734_s1 + $0x78] sm:$0xff]  ;;  %v1758_v1 = vld [vmem:[%s6734_s1 + $0x70] sm:$0xff]  ;;  %v1757_v2 = vld [vmem:[%s6734_s1 + $0x68] sm:$0xff] }
   0x2   :  { %4208 = vmatpush.msra.mxu1 %v1759_v0  ;;  %4209 = vmatpush.msra.mxu2 %v1759_v0  ;;  %v1756_v3 = vld [vmem:[%s6734_s1 + $0x60] sm:$0xff]  ;;  %v1755_v4 = vld [vmem:[%s6734_s1 + $0x58] sm:$0xff]  ;;  %v1754_v5 = vld [vmem:[%s6734_s1 + $0x50] sm:$0xff] }
   0x3   :  { %4210 = vmatpush.msra.mxu3 %v1759_v0  ;;  %1892 = vmatpush.msra.mxu0 %v1759_v0  ;;  %v1753_v6 = vld [vmem:[%s6734_s1 + $0x48] sm:$0xff]  ;;  %v1752_v7 = vld [vmem:[%s6734_s1 + $0x40] sm:$0xff]  ;;  %v1751_v8 = vld [vmem:[%s6734_s1 + $0x38] sm:$0xff] }
   0x4   :  { %4211 = vmatpush.msra.mxu1 %v1758_v1  ;;  %4212 = vmatpush.msra.mxu2 %v1758_v1  ;;  %v1750_v9 = vld [vmem:[%s6734_s1 + $0x30] sm:$0xff]  ;;  %v1749_v10 = vld [vmem:[%s6734_s1 + $0x28] sm:$0xff]  ;;  %v1748_v11 = vld [vmem:[%s6734_s1 + $0x20] sm:$0xff] }
   0x5   :  { %4213 = vmatpush.msra.mxu3 %v1758_v1  ;;  %1893 = vmatpush.msra.mxu0 %v1758_v1  ;;  %v1747_v12 = vld [vmem:[%s6734_s1 + $0x18] sm:$0xff]  ;;  %v1746_v13 = vld [vmem:[%s6734_s1 + $0x10] sm:$0xff]  ;;  %v1745_v14 = vld [vmem:[%s6734_s1 + $0x8] sm:$0xff] }
   0x6   :  { %4214 = vmatpush.msra.mxu1 %v1757_v2  ;;  %4215 = vmatpush.msra.mxu2 %v1757_v2  ;;  %v1744_v15 = vld [vmem:[%s6734_s1] sm:$0xff]  ;;  %v4329_v16 = vld [vmem:[%s6735_s0 + $0x71] sm:$0xff]  ;;  %v1789_v27 = vld [vmem:[%s6734_s1 + $0x168] sm:$0xff] }
   0x7   :  { %4216 = vmatpush.msra.mxu3 %v1757_v2  ;;  %1894 = vmatpush.msra.mxu0 %v1757_v2  ;;  %v3514_v17 = vld [vmem:[%s6735_s0 + $0x111] sm:$0xff]  ;;  %v1805_v28 = vld [vmem:[%s6734_s1 + $0x1e8] sm:$0xff]  ;;  %v4377_v30 = vld [vmem:[%s6735_s0 + $0x79] sm:$0xff] }
   0x8   :  { %4217 = vmatpush.msra.mxu1 %v1756_v3  ;;  %4218 = vmatpush.msra.mxu2 %v1756_v3  ;;  %v1791_v18 = vld [vmem:[%s6734_s1 + $0x178] sm:$0xff]  ;;  %v1790_v22 = vld [vmem:[%s6734_s1 + $0x170] sm:$0xff]  ;;  %v1773_v29 = vld [vmem:[%s6734_s1 + $0xe8] sm:$0xff] }
   0x9   :  { %4219 = vmatpush.msra.mxu3 %v1756_v3  ;;  %1895 = vmatpush.msra.mxu0 %v1756_v3  ;;  %v3526_v19 = vld [vmem:[%s6735_s0 + $0x171] sm:$0xff]  ;;  %v3515_v31 = vld [vmem:[%s6735_s0 + $0x119] sm:$0xff]  ;;  %v1821_v37 = vld [vmem:[%s6734_s1 + $0x268] sm:$0xff] }
   0xa   :  { %4220 = vmatpush.msra.mxu1 %v1755_v4  ;;  %4221 = vmatpush.msra.mxu2 %v1755_v4  ;;  %v1775_v20 = vld [vmem:[%s6734_s1 + $0xf8] sm:$0xff]  ;;  %v1774_v23 = vld [vmem:[%s6734_s1 + $0xf0] sm:$0xff]  ;;  %v1788_v33 = vld [vmem:[%s6734_s1 + $0x160] sm:$0xff] }
   0xb   :  { %4222 = vmatpush.msra.mxu3 %v1755_v4  ;;  %1896 = vmatpush.msra.mxu0 %v1755_v4  ;;  %v1807_v21 = vld [vmem:[%s6734_s1 + $0x1f8] sm:$0xff]  ;;  %v1806_v24 = vld [vmem:[%s6734_s1 + $0x1f0] sm:$0xff]  ;;  %v1772_v35 = vld [vmem:[%s6734_s1 + $0xe0] sm:$0xff] }
   0xc   :  { %4223 = vmatpush.msra.mxu1 %v1754_v5  ;;  %4224 = vmatpush.msra.mxu2 %v1754_v5  ;;  %v14_v25 = vld [vmem:[%s6735_s0 + $0x11] sm:$0xff]  ;;  %v3527_v34 = vld [vmem:[%s6735_s0 + $0x179] sm:$0xff]  ;;  %v4432_v46 = vld [vmem:[%s6735_s0 + $0x81] sm:$0xff] }
   0xd   :  { %4225 = vmatpush.msra.mxu3 %v1754_v5  ;;  %1897 = vmatpush.msra.mxu0 %v1754_v5  ;;  %v1823_v26 = vld [vmem:[%s6734_s1 + $0x278] sm:$0xff]  ;;  %v1822_v32 = vld [vmem:[%s6734_s1 + $0x270] sm:$0xff]  ;;  %v1804_v36 = vld [vmem:[%s6734_s1 + $0x1e0] sm:$0xff] }
   0xe   :  { %4226 = vmatpush.msra.mxu1 %v1753_v6  ;;  %4227 = vmatpush.msra.mxu2 %v1753_v6  ;;  %v1787_v38 = vld [vmem:[%s6734_s1 + $0x158] sm:$0xff]  ;;  %v1820_v42 = vld [vmem:[%s6734_s1 + $0x260] sm:$0xff]  ;;  %v1786_v43 = vld [vmem:[%s6734_s1 + $0x150] sm:$0xff] }
   0xf   :  { %4228 = vmatpush.msra.mxu3 %v1753_v6  ;;  %1898 = vmatpush.msra.mxu0 %v1753_v6  ;;  %v1771_v39 = vld [vmem:[%s6734_s1 + $0xd8] sm:$0xff]  ;;  %v1802_v44 = vld [vmem:[%s6734_s1 + $0x1d0] sm:$0xff]  ;;  %v3516_v47 = vld [vmem:[%s6735_s0 + $0x121] sm:$0xff] }
  0x10   :  { %4229 = vmatpush.msra.mxu1 %v1752_v7  ;;  %4230 = vmatpush.msra.mxu2 %v1752_v7  ;;  %v15_v40 = vld [vmem:[%s6735_s0 + $0x19] sm:$0xff]  ;;  %v1770_v45 = vld [vmem:[%s6734_s1 + $0xd0] sm:$0xff]  ;;  %v1785_v49 = vld [vmem:[%s6734_s1 + $0x148] sm:$0xff] }
  0x11   :  { %4231 = vmatpush.msra.mxu3 %v1752_v7  ;;  %1899 = vmatpush.msra.mxu0 %v1752_v7  ;;  %v1803_v41 = vld [vmem:[%s6734_s1 + $0x1d8] sm:$0xff]  ;;  %v3528_v50 = vld [vmem:[%s6735_s0 + $0x181] sm:$0xff]  ;;  %v1818_v53 = vld [vmem:[%s6734_s1 + $0x250] sm:$0xff] }
  0x12   :  { %4232 = vmatpush.msra.mxu1 %v1751_v8  ;;  %4233 = vmatpush.msra.mxu2 %v1751_v8  ;;  %v1819_v48 = vld [vmem:[%s6734_s1 + $0x258] sm:$0xff]  ;;  %v1769_v51 = vld [vmem:[%s6734_s1 + $0xc8] sm:$0xff]  ;;  %v1784_v54 = vld [vmem:[%s6734_s1 + $0x140] sm:$0xff] }
  0x13   :  { %4234 = vmatpush.msra.mxu3 %v1751_v8  ;;  %1900 = vmatpush.msra.mxu0 %v1751_v8  ;;  %v1801_v52 = vld [vmem:[%s6734_s1 + $0x1c8] sm:$0xff]  ;;  %v1768_v55 = vld [vmem:[%s6734_s1 + $0xc0] sm:$0xff]  ;;  %v1783_v59 = vld [vmem:[%s6734_s1 + $0x138] sm:$0xff] }
  0x14   :  { %4235 = vmatpush.msra.mxu1 %v1750_v9  ;;  %4236 = vmatpush.msra.mxu2 %v1750_v9  ;;  %v4469_v56 = vld [vmem:[%s6735_s0 + $0x21] sm:$0xff]  ;;  %v1799_v60 = vld [vmem:[%s6734_s1 + $0x1b8] sm:$0xff]  ;;  %v4489_v62 = vld [vmem:[%s6735_s0 + $0x89] sm:$0xff] }
  0x15   :  { %4237 = vmatpush.msra.mxu3 %v1750_v9  ;;  %1901 = vmatpush.msra.mxu0 %v1750_v9  ;;  %v1800_v57 = vld [vmem:[%s6734_s1 + $0x1c0] sm:$0xff]  ;;  %v1817_v58 = vld [vmem:[%s6734_s1 + $0x248] sm:$0xff]  ;;  %v1767_v61 = vld [vmem:[%s6734_s1 + $0xb8] sm:$0xff] }
  0x16   :  { %4238 = vmatpush.msra.mxu1 %v1749_v10  ;;  %4239 = vmatpush.msra.mxu2 %v1749_v10  ;;  %v3517_v63 = vld [vmem:[%s6735_s0 + $0x129] sm:$0xff]  ;;  %v1816_v0 = vld [vmem:[%s6734_s1 + $0x240] sm:$0xff]  ;;  %v1815_v6 = vld [vmem:[%s6734_s1 + $0x238] sm:$0xff] }
  0x17   :  { %4240 = vmatpush.msra.mxu3 %v1749_v10  ;;  %1902 = vmatpush.msra.mxu0 %v1749_v10  ;;  %v1782_v1 = vld [vmem:[%s6734_s1 + $0x130] sm:$0xff]  ;;  %v1781_v7 = vld [vmem:[%s6734_s1 + $0x128] sm:$0xff] }
  0x18   :  { %4241 = vmatpush.msra.mxu1 %v1748_v11  ;;  %4242 = vmatpush.msra.mxu2 %v1748_v11  ;;  %v3529_v2 = vld [vmem:[%s6735_s0 + $0x189] sm:$0xff]  ;;  %v4532_v9 = vld [vmem:[%s6735_s0 + $0x91] sm:$0xff] }
  0x19   :  { %4243 = vmatpush.msra.mxu3 %v1748_v11  ;;  %1903 = vmatpush.msra.mxu0 %v1748_v11  ;;  %v1798_v3 = vld [vmem:[%s6734_s1 + $0x1b0] sm:$0xff]  ;;  %v1797_v8 = vld [vmem:[%s6734_s1 + $0x1a8] sm:$0xff] }
  0x1a   :  { %4244 = vmatpush.msra.mxu1 %v1747_v12  ;;  %4245 = vmatpush.msra.mxu2 %v1747_v12  ;;  %v4514_v4 = vld [vmem:[%s6735_s0 + $0x29] sm:$0xff]  ;;  %v3518_v10 = vld [vmem:[%s6735_s0 + $0x131] sm:$0xff] }
  0x1b   :  { %4246 = vmatpush.msra.mxu3 %v1747_v12  ;;  %1904 = vmatpush.msra.mxu0 %v1747_v12  ;;  %v1766_v5 = vld [vmem:[%s6734_s1 + $0xb0] sm:$0xff]  ;;  %v1765_v12 = vld [vmem:[%s6734_s1 + $0xa8] sm:$0xff] }
  0x1c   :  { %4247 = vmatpush.msra.mxu1 %v1746_v13  ;;  %4248 = vmatpush.msra.mxu2 %v1746_v13  ;;  %v3530_v11 = vld [vmem:[%s6735_s0 + $0x191] sm:$0xff] }
  0x1d   :  { %4249 = vmatpush.msra.mxu3 %v1746_v13  ;;  %1905 = vmatpush.msra.mxu0 %v1746_v13  ;;  %v1814_v13 = vld [vmem:[%s6734_s1 + $0x230] sm:$0xff] }
  0x1e   :  { %4250 = vmatpush.msra.mxu1 %v1745_v14  ;;  %4251 = vmatpush.msra.mxu2 %v1745_v14 }
  0x1f   :  { %4252 = vmatpush.msra.mxu3 %v1745_v14  ;;  %1906 = vmatpush.msra.mxu0 %v1745_v14  ;;  %v4554_v14 = vld [vmem:[%s6735_s0 + $0x31] sm:$0xff] }
  0x20   :  { %4253 = vmatpush.msra.mxu1 %v1744_v15  ;;  %4254 = vmatpush.msra.mxu2 %v1744_v15 }
  0x21   :  { %3788 = vmatmul.msk.f32.vlgmr.msra.gmra.mxu1 %vm38_vm0, %v4329_v16  ;;  %3800 = vmatmul.msk.f32.vlgmr.msra.gmra.mxu2 %vm38_vm0, %v3514_v17  ;;  %v1796_v17 = vld [vmem:[%s6734_s1 + $0x1a0] sm:$0xff] }
  0x22   :  { %2214 = vmatpush.msrb.mxu2 %v1791_v18  ;;  %4255 = vmatpush.msra.mxu3 %v1744_v15  ;;  %v1764_v18 = vld [vmem:[%s6734_s1 + $0xa0] sm:$0xff] }
  0x23   :  { %3812 = vmatmul.msk.f32.vlgmr.msra.gmra.mxu3 %vm38_vm0, %v3526_v19  ;;  %2053 = vmatpush.msrb.mxu1 %v1775_v20  ;;  %v1813_v19 = vld [vmem:[%s6734_s1 + $0x228] sm:$0xff]  ;;  %v4572_v20 = vld [vmem:[%s6735_s0 + $0x99] sm:$0xff] }
  0x24   :  { %2375 = vmatpush.msrb.mxu3 %v1807_v21  ;;  %2215 = vmatpush.msrb.mxu2 %v1790_v22  ;;  %v3519_v21 = vld [vmem:[%s6735_s0 + $0x139] sm:$0xff] }
  0x25   :  { %1907 = vmatpush.msra.mxu0 %v1744_v15  ;;  %2054 = vmatpush.msrb.mxu1 %v1774_v23  ;;  %v1780_v15 = vld [vmem:[%s6734_s1 + $0x120] sm:$0xff]  ;;  %v1779_v23 = vld [vmem:[%s6734_s1 + $0x118] sm:$0xff] }
  0x26   :  { %2376 = vmatpush.msrb.mxu3 %v1806_v24  ;;  %3776 = vmatmul.msk.f32.vlgmr.msra.gmra.mxu0 %vm38_vm0, %v14_v25  ;;  %v3531_v22 = vld [vmem:[%s6735_s0 + $0x199] sm:$0xff] }
  0x27   :  { %2536 = vmatpush.msrb.mxu0 %v1823_v26  ;;  %2216 = vmatpush.msrb.mxu2 %v1789_v27  ;;  %v4591_v24 = vld [vmem:[%s6735_s0 + $0x39] sm:$0xff] }
  0x28   :  { %2377 = vmatpush.msrb.mxu3 %v1805_v28  ;;  %2055 = vmatpush.msrb.mxu1 %v1773_v29  ;;  %v1795_v25 = vld [vmem:[%s6734_s1 + $0x198] sm:$0xff]  ;;  %v1812_v27 = vld [vmem:[%s6734_s1 + $0x220] sm:$0xff]  ;;  %v1778_v28 = vld [vmem:[%s6734_s1 + $0x110] sm:$0xff] }
  0x29   :  { %3789 = vmatmul.msk.f32.gmra.mxu1 %vm38_vm0, %v4377_v30  ;;  %3801 = vmatmul.msk.f32.gmra.mxu2 %vm38_vm0, %v3515_v31  ;;  %v1763_v26 = vld [vmem:[%s6734_s1 + $0x98] sm:$0xff]  ;;  %v4609_v29 = vld [vmem:[%s6735_s0 + $0xa1] sm:$0xff] }
  0x2a   :  { %2537 = vmatpush.msrb.mxu0 %v1822_v32  ;;  %2217 = vmatpush.msrb.mxu2 %v1788_v33  ;;  %v3520_v31 = vld [vmem:[%s6735_s0 + $0x141] sm:$0xff]  ;;  %v1794_v33 = vld [vmem:[%s6734_s1 + $0x190] sm:$0xff] }
  0x2b   :  { %3813 = vmatmul.msk.f32.gmra.mxu3 %vm38_vm0, %v3527_v34  ;;  %2056 = vmatpush.msrb.mxu1 %v1772_v35  ;;  %v3532_v32 = vld [vmem:[%s6735_s0 + $0x1a1] sm:$0xff]  ;;  %v1762_v35 = vld [vmem:[%s6734_s1 + $0x90] sm:$0xff] }
  0x2c   :  { %2378 = vmatpush.msrb.mxu3 %v1804_v36  ;;  %2538 = vmatpush.msrb.mxu0 %v1821_v37  ;;  %v4628_v34 = vld [vmem:[%s6735_s0 + $0x41] sm:$0xff]  ;;  %v1811_v36 = vld [vmem:[%s6734_s1 + $0x218] sm:$0xff] }
  0x2d   :  { %2218 = vmatpush.msrb.mxu2 %v1787_v38  ;;  %2057 = vmatpush.msrb.mxu1 %v1771_v39  ;;  %v1777_v37 = vld [vmem:[%s6734_s1 + $0x108] sm:$0xff] }
  0x2e   :  { %3777 = vmatmul.msk.f32.gmra.mxu0 %vm38_vm0, %v15_v40  ;;  %2379 = vmatpush.msrb.mxu3 %v1803_v41  ;;  %v1793_v38 = vld [vmem:[%s6734_s1 + $0x188] sm:$0xff] }
  0x2f   :  { %2539 = vmatpush.msrb.mxu0 %v1820_v42  ;;  %2219 = vmatpush.msrb.mxu2 %v1786_v43  ;;  %v4646_v39 = vld [vmem:[%s6735_s0 + $0xa9] sm:$0xff] }
  0x30   :  { %2380 = vmatpush.msrb.mxu3 %v1802_v44  ;;  %2058 = vmatpush.msrb.mxu1 %v1770_v45  ;;  %v3521_v40 = vld [vmem:[%s6735_s0 + $0x149] sm:$0xff]  ;;  %v1776_v45 = vld [vmem:[%s6734_s1 + $0x100] sm:$0xff] }
  0x31   :  { %3790 = vmatmul.msk.f32.gmra.mxu1 %vm38_vm0, %v4432_v46  ;;  %3802 = vmatmul.msk.f32.gmra.mxu2 %vm38_vm0, %v3516_v47  ;;  %v3533_v41 = vld [vmem:[%s6735_s0 + $0x1a9] sm:$0xff]  ;;  %v1792_v47 = vld [vmem:[%s6734_s1 + $0x180] sm:$0xff] }
  0x32   :  { %2540 = vmatpush.msrb.mxu0 %v1819_v48  ;;  %2220 = vmatpush.msrb.mxu2 %v1785_v49  ;;  %v1761_v42 = vld [vmem:[%s6734_s1 + $0x88] sm:$0xff]  ;;  %v1810_v43 = vld [vmem:[%s6734_s1 + $0x210] sm:$0xff]  ;;  %v1760_v48 = vld [vmem:[%s6734_s1 + $0x80] sm:$0xff] }
  0x33   :  { %3814 = vmatmul.msk.f32.gmra.mxu3 %vm38_vm0, %v3528_v50  ;;  %2059 = vmatpush.msrb.mxu1 %v1769_v51  ;;  %v4668_v44 = vld [vmem:[%s6735_s0 + $0x49] sm:$0xff]  ;;  %v4686_v50 = vld [vmem:[%s6735_s0 + $0xb1] sm:$0xff] }
  0x34   :  { %2381 = vmatpush.msrb.mxu3 %v1801_v52  ;;  %2541 = vmatpush.msrb.mxu0 %v1818_v53  ;;  %v1809_v49 = vld [vmem:[%s6734_s1 + $0x208] sm:$0xff]  ;;  %v3522_v51 = vld [vmem:[%s6735_s0 + $0x151] sm:$0xff] }
  0x35   :  { %2221 = vmatpush.msrb.mxu2 %v1784_v54  ;;  %2060 = vmatpush.msrb.mxu1 %v1768_v55  ;;  %v3534_v52 = vld [vmem:[%s6735_s0 + $0x1b1] sm:$0xff] }
  0x36   :  { %3778 = vmatmul.msk.f32.gmra.mxu0 %vm38_vm0, %v4469_v56  ;;  %2382 = vmatpush.msrb.mxu3 %v1800_v57  ;;  %v1855_v53 = vld [vmem:[%s6734_s1 + $0x378] sm:$0xff]  ;;  %v1808_v57 = vld [vmem:[%s6734_s1 + $0x200] sm:$0xff] }
  0x37   :  { %2542 = vmatpush.msrb.mxu0 %v1817_v58  ;;  %2222 = vmatpush.msrb.mxu2 %v1783_v59  ;;  %v4705_v54 = vld [vmem:[%s6735_s0 + $0x51] sm:$0xff]  ;;  %v4720_v59 = vld [vmem:[%s6735_s0 + $0xb9] sm:$0xff] }
  0x38   :  { %2383 = vmatpush.msrb.mxu3 %v1799_v60  ;;  %2061 = vmatpush.msrb.mxu1 %v1767_v61  ;;  %v1871_v55 = vld [vmem:[%s6734_s1 + $0x3f8] sm:$0xff] }
  0x39   :  { %3791 = vmatmul.msk.f32.gmra.mxu1 %vm38_vm0, %v4489_v62  ;;  %3803 = vmatmul.msk.f32.gmra.mxu2 %vm38_vm0, %v3517_v63  ;;  %v1839_v58 = vld [vmem:[%s6734_s1 + $0x2f8] sm:$0xff] }
  0x3a   :  { %2543 = vmatpush.msrb.mxu0 %v1816_v0  ;;  %2223 = vmatpush.msrb.mxu2 %v1782_v1  ;;  %v3523_v60 = vld [vmem:[%s6735_s0 + $0x159] sm:$0xff]  ;;  %v4745_v1 = vld [vmem:[%s6735_s0 + $0xc1] sm:$0xff] }
  0x3b   :  { %3815 = vmatmul.msk.f32.gmra.mxu3 %vm38_vm0, %v3529_v2  ;;  %2062 = vmatpush.msrb.mxu1 %v1766_v5  ;;  %v3535_v61 = vld [vmem:[%s6735_s0 + $0x1b9] sm:$0xff]  ;;  %v3524_v2 = vld [vmem:[%s6735_s0 + $0x161] sm:$0xff] }
  0x3c   :  { %2384 = vmatpush.msrb.mxu3 %v1798_v3  ;;  %2544 = vmatpush.msrb.mxu0 %v1815_v6  ;;  %v4737_v63 = vld [vmem:[%s6735_s0 + $0x59] sm:$0xff]  ;;  %v3536_v3 = vld [vmem:[%s6735_s0 + $0x1c1] sm:$0xff]  ;;  %v4767_v6 = vld [vmem:[%s6735_s0 + $0xc9] sm:$0xff] }
  0x3d   :  { %2224 = vmatpush.msrb.mxu2 %v1781_v7  ;;  %2063 = vmatpush.msrb.mxu1 %v1765_v12  ;;  %v1887_v0 = vld [vmem:[%s6734_s1 + $0x478] sm:$0xff]  ;;  %v4762_v5 = vld [vmem:[%s6735_s0 + $0x61] sm:$0xff]  ;;  %v3525_v7 = vld [vmem:[%s6735_s0 + $0x169] sm:$0xff] }
  0x3e   :  { %3779 = vmatmul.msk.f32.gmra.mxu0 %vm38_vm0, %v4514_v4  ;;  %2385 = vmatpush.msrb.mxu3 %v1797_v8  ;;  %v3537_v8 = vld [vmem:[%s6735_s0 + $0x1c9] sm:$0xff] }
  0x3f   :  { %2545 = vmatpush.msrb.mxu0 %v1814_v13  ;;  %2225 = vmatpush.msrb.mxu2 %v1780_v15  ;;  %v1870_v12 = vld [vmem:[%s6734_s1 + $0x3f0] sm:$0xff] }
  0x40   :  { %2386 = vmatpush.msrb.mxu3 %v1796_v17  ;;  %2064 = vmatpush.msrb.mxu1 %v1764_v18  ;;  %v1838_v13 = vld [vmem:[%s6734_s1 + $0x2f0] sm:$0xff]  ;;  %v303_v18 = vld [vmem:[%s6735_s0 + $0x22] sm:$0xff] }
  0x41   :  { %3792 = vmatmul.msk.f32.gmra.mxu1 %vm38_vm0, %v4532_v9  ;;  %3804 = vmatmul.msk.f32.gmra.mxu2 %vm38_vm0, %v3518_v10  ;;  %v1854_v10 = vld [vmem:[%s6734_s1 + $0x370] sm:$0xff] }
  0x42   :  { %2546 = vmatpush.msrb.mxu0 %v1813_v19  ;;  %2226 = vmatpush.msrb.mxu2 %v1779_v23  ;;  %v87_v15 = vld [vmem:[%s6735_s0 + $0x12] sm:$0xff]  ;;  %v161_v23 = vld [vmem:[%s6735_s0 + $0x23] sm:$0xff] }
  0x43   :  { %3816 = vmatmul.msk.f32.gmra.mxu3 %vm38_vm0, %v3530_v11  ;;  %2065 = vmatpush.msrb.mxu1 %v1763_v26  ;;  %v4787_v11 = vld [vmem:[%s6735_s0 + $0x69] sm:$0xff]  ;;  %v159_v17 = vld [vmem:[%s6735_s0 + $0x13] sm:$0xff] }
  0x44   :  { %2387 = vmatpush.msrb.mxu3 %v1795_v25  ;;  %2547 = vmatpush.msrb.mxu0 %v1812_v27  ;;  %v1886_v19 = vld [vmem:[%s6734_s1 + $0x470] sm:$0xff]  ;;  %v1853_v25 = vld [vmem:[%s6734_s1 + $0x368] sm:$0xff] }
  0x45   :  { %2227 = vmatpush.msrb.mxu2 %v1778_v28  ;;  %2066 = vmatpush.msrb.mxu1 %v1762_v35  ;;  %v1869_v26 = vld [vmem:[%s6734_s1 + $0x3e8] sm:$0xff] }
  0x46   :  { %3780 = vmatmul.msk.f32.gmra.mxu0 %vm38_vm0, %v4554_v14  ;;  %2388 = vmatpush.msrb.mxu3 %v1794_v33  ;;  %v1837_v27 = vld [vmem:[%s6734_s1 + $0x2e8] sm:$0xff]  ;;  %v163_v33 = vld [vmem:[%s6735_s0 + $0x33] sm:$0xff] }
  0x47   :  { %2548 = vmatpush.msrb.mxu0 %v1811_v36  ;;  %2228 = vmatpush.msrb.mxu2 %v1777_v37  ;;  %v162_v28 = vld [vmem:[%s6735_s0 + $0x2b] sm:$0xff]  ;;  %v307_v35 = vld [vmem:[%s6735_s0 + $0x42] sm:$0xff] }
  0x48   :  { %2389 = vmatpush.msrb.mxu3 %v1793_v38  ;;  %2067 = vmatpush.msrb.mxu1 %v1761_v42  ;;  %v308_v42 = vld [vmem:[%s6735_s0 + $0x4a] sm:$0xff] }
  0x49   :  { %3793 = vmatmul.msk.f32.gmra.mxu1 %vm38_vm0, %v4572_v20  ;;  %3805 = vmatmul.msk.f32.gmra.mxu2 %vm38_vm0, %v3519_v21  ;;  %v88_v21 = vld [vmem:[%s6735_s0 + $0x1a] sm:$0xff] }
  0x4a   :  { %2549 = vmatpush.msrb.mxu0 %v1810_v43  ;;  %2229 = vmatpush.msrb.mxu2 %v1776_v45  ;;  %v1868_v43 = vld [vmem:[%s6734_s1 + $0x3e0] sm:$0xff] }
  0x4b   :  { %3817 = vmatmul.msk.f32.gmra.mxu3 %vm38_vm0, %v3531_v22  ;;  %2068 = vmatpush.msrb.mxu1 %v1760_v48  ;;  %v160_v22 = vld [vmem:[%s6735_s0 + $0x1b] sm:$0xff] }
  0x4c   :  { %2390 = vmatpush.msrb.mxu3 %v1792_v47  ;;  %2550 = vmatpush.msrb.mxu0 %v1809_v49  ;;  %v1836_v47 = vld [vmem:[%s6734_s1 + $0x2e0] sm:$0xff] }
  0x4d   :  { %2858 = vmatpush.msra.mxu2 %v1855_v53  ;;  %2697 = vmatpush.msra.mxu1 %v1839_v58  ;;  %v165_v49 = vld [vmem:[%s6735_s0 + $0x43] sm:$0xff] }
  0x4e   :  { %3781 = vmatmul.msk.f32.gmra.mxu0 %vm38_vm0, %v4591_v24  ;;  %3019 = vmatpush.msra.mxu3 %v1871_v55  ;;  %v1884_v53 = vld [vmem:[%s6734_s1 + $0x460] sm:$0xff] }
  0x4f   :  { %2551 = vmatpush.msrb.mxu0 %v1808_v57  ;;  %2859 = vmatpush.msra.mxu2 %v1854_v10  ;;  %v311_v10 = vld [vmem:[%s6735_s0 + $0x62] sm:$0xff] }
  0x50   :  { %3020 = vmatpush.msra.mxu3 %v1870_v12  ;;  %2698 = vmatpush.msra.mxu1 %v1838_v13  ;;  %v1867_v12 = vld [vmem:[%s6734_s1 + $0x3d8] sm:$0xff] }
  0x51   :  { %3794 = vmatmul.msk.f32.gmra.mxu1 %vm38_vm0, %v4609_v29  ;;  %3806 = vmatmul.msk.f32.gmra.mxu2 %vm38_vm0, %v3520_v31  ;;  %v1885_v31 = vld [vmem:[%s6734_s1 + $0x468] sm:$0xff] }
  0x52   :  { %3180 = vmatpush.msra.mxu0 %v1887_v0  ;;  %2860 = vmatpush.msra.mxu2 %v1853_v25 }
  0x53   :  { %3818 = vmatmul.msk.f32.gmra.mxu3 %vm38_vm0, %v3532_v32  ;;  %2699 = vmatpush.msra.mxu1 %v1837_v27 }
  0x54   :  { %3181 = vmatpush.msra.mxu0 %v1886_v19  ;;  %3021 = vmatpush.msra.mxu3 %v1869_v26  ;;  %v313_v26 = vld [vmem:[%s6735_s0 + $0x72] sm:$0xff] }
  0x55   :  { %2700 = vmatpush.msra.mxu1 %v1836_v47  ;;  %v171_v47 = vld [vmem:[%s6735_s0 + $0x73] sm:$0xff] }
  0x56   :  { %3782 = vmatmul.msk.f32.gmra.mxu0 %vm38_vm0, %v4628_v34  ;;  %3022 = vmatpush.msra.mxu3 %v1868_v43 }
  0x57   :  { %3182 = vmatpush.msra.mxu0 %v1885_v31  ;;  %v170_v31 = vld [vmem:[%s6735_s0 + $0x6b] sm:$0xff] }
  0x58   :  { %3023 = vmatpush.msra.mxu3 %v1867_v12 }
  0x59   :  { %3795 = vmatmul.msk.f32.gmra.mxu1 %vm38_vm0, %v4646_v39  ;;  %3807 = vmatmul.msk.f32.gmra.mxu2 %vm38_vm0, %v3521_v40  ;;  %v164_v40 = vld [vmem:[%s6735_s0 + $0x3b] sm:$0xff] }
  0x5a   :  { %3183 = vmatpush.msra.mxu0 %v1884_v53  ;;  %v1882_v53 = vld [vmem:[%s6734_s1 + $0x450] sm:$0xff] }
  0x5b   :  { %3819 = vmatmul.msk.f32.gmra.mxu3 %vm38_vm0, %v3533_v41 }
  0x5e   :  { %3783 = vmatmul.msk.f32.gmra.mxu0 %vm38_vm0, %v4668_v44 }
  0x61   :  { %3796 = vmatmul.msk.f32.gmra.mxu1 %vm38_vm0, %v4686_v50  ;;  %3808 = vmatmul.msk.f32.gmra.mxu2 %vm38_vm0, %v3522_v51 }
  0x63   :  { %3820 = vmatmul.msk.f32.gmra.mxu3 %vm38_vm0, %v3534_v52  ;;  %v309_v52 = vld [vmem:[%s6735_s0 + $0x52] sm:$0xff] }
  0x66   :  { %3784 = vmatmul.msk.f32.gmra.mxu0 %vm38_vm0, %v4705_v54 }
  0x69   :  { %3797 = vmatmul.msk.f32.gmra.mxu1 %vm38_vm0, %v4720_v59  ;;  %3809 = vmatmul.msk.f32.gmra.mxu2 %vm38_vm0, %v3523_v60 }
  0x6b   :  { %3821 = vmatmul.msk.f32.gmra.mxu3 %vm38_vm0, %v3535_v61  ;;  %v310_v61 = vld [vmem:[%s6735_s0 + $0x5a] sm:$0xff] }
  0x6e   :  { %3785 = vmatmul.msk.f32.gmra.mxu0 %vm38_vm0, %v4737_v63 }
  0x71   :  { %3798 = vmatmul.msk.f32.gmra.mxu1 %vm38_vm0, %v4745_v1  ;;  %3810 = vmatmul.msk.f32.gmra.mxu2 %vm38_vm0, %v3524_v2 }
  0x73   :  { %3822 = vmatmul.msk.f32.gmra.mxu3 %vm38_vm0, %v3536_v3 }
  0x76   :  { %3786 = vmatmul.msk.f32.gmra.mxu0 %vm38_vm0, %v4762_v5 }
  0x79   :  { %3799 = vmatmul.msk.f32.gmra.mxu1 %vm38_vm0, %v4767_v6  ;;  %3811 = vmatmul.msk.f32.gmra.mxu2 %vm38_vm0, %v3525_v7  ;;  %v167_v7 = vld [vmem:[%s6735_s0 + $0x53] sm:$0xff] }
  0x7b   :  { %3823 = vmatmul.msk.f32.gmra.mxu3 %vm38_vm0, %v3537_v8 }
  0x7e   :  { %3787 = vmatmul.msk.f32.gmra.mxu0 %vm38_vm0, %v4787_v11 }
  0x81   :  { %3824 = vmatmul.msk.f32.vlgmr.msrb.gmra.mxu1 %vm38_vm0, %v87_v15  ;;  %3872 = vmatmul.msk.f32.vlgmr.msrb.gmra.mxu2 %vm38_vm0, %v159_v17  ;;  %v1835_v15 = vld [vmem:[%s6734_s1 + $0x2d8] sm:$0xff] }
  0x82   :  { %2701 = vmatpush.msra.mxu1 %v1835_v15 }
  0x83   :  { %3920 = vmatmul.msk.f32.vlgmr.msrb.gmra.mxu3 %vm38_vm0, %v4469_v56  ;;  %v304_v56 = vld [vmem:[%s6735_s0 + $0x2a] sm:$0xff] }
  0x86   :  { %3968 = vmatmul.msk.f32.vlgmr.msrb.gmra.mxu0 %vm38_vm0, %v303_v18 }
  0x89   :  { %3825 = vmatmul.msk.f32.gmra.mxu1 %vm38_vm0, %v88_v21  ;;  %3873 = vmatmul.msk.f32.gmra.mxu2 %vm38_vm0, %v160_v22  ;;  %v312_v21 = vld [vmem:[%s6735_s0 + $0x6a] sm:$0xff]  ;;  %v1883_v22 = vld [vmem:[%s6734_s1 + $0x458] sm:$0xff] }
  0x8a   :  { %3184 = vmatpush.msra.mxu0 %v1883_v22 }
  0x8b   :  { %3921 = vmatmul.msk.f32.gmra.mxu3 %vm38_vm0, %v4514_v4  ;;  %v305_v4 = vld [vmem:[%s6735_s0 + $0x32] sm:$0xff] }
  0x8c   :  { %3185 = vmatpush.msra.mxu0 %v1882_v53 }
  0x8e   :  { %3969 = vmatmul.msk.f32.gmra.mxu0 %vm38_vm0, %v304_v56 }
  0x91   :  { %3826 = vmatmul.msk.f32.gmra.mxu1 %vm38_vm0, %v303_v18  ;;  %3874 = vmatmul.msk.f32.gmra.mxu2 %vm38_vm0, %v161_v23  ;;  %v168_v18 = vld [vmem:[%s6735_s0 + $0x5b] sm:$0xff] }
  0x93   :  { %3922 = vmatmul.msk.f32.gmra.mxu3 %vm38_vm0, %v4554_v14  ;;  %v306_v14 = vld [vmem:[%s6735_s0 + $0x3a] sm:$0xff] }
  0x96   :  { %3970 = vmatmul.msk.f32.gmra.mxu0 %vm38_vm0, %v305_v4 }
  0x99   :  { %3827 = vmatmul.msk.f32.gmra.mxu1 %vm38_vm0, %v304_v56  ;;  %3875 = vmatmul.msk.f32.gmra.mxu2 %vm38_vm0, %v162_v28 }
  0x9b   :  { %3923 = vmatmul.msk.f32.gmra.mxu3 %vm38_vm0, %v4591_v24 }
  0x9e   :  { %v4861_v32 = vpop.f32.mrf.mxu1  ;;  %3971 = vmatmul.msk.f32.gmra.mxu0 %vm38_vm0, %v306_v14 }
  0xa1   :  { %3828 = vmatmul.msk.f32.gmra.mxu1 %vm38_vm0, %v305_v4  ;;  %3876 = vmatmul.msk.f32.gmra.mxu2 %vm38_vm0, %v163_v33 }
  0xa3   :  { %3924 = vmatmul.msk.f32.gmra.mxu3 %vm38_vm0, %v4628_v34  ;;  %v4871_v24 = vpop.f32.mrf.mxu0  ;;  %v1852_v34 = vld [vmem:[%s6734_s1 + $0x360] sm:$0xff] }
  0xa4   :  { %v4876_v36 = vpop.f32.mrf.mxu2  ;;  %2861 = vmatpush.msra.mxu2 %v1852_v34 }
  0xa6   :  { %v4878_v37 = vpop.f32.mrf.mxu1  ;;  %v4880_v38 = vpop.f32.mrf.mxu3  ;;  %3972 = vmatmul.msk.f32.gmra.mxu0 %vm38_vm0, %v307_v35 }
  0xa9   :  { %3829 = vmatmul.msk.f32.gmra.mxu1 %vm38_vm0, %v306_v14  ;;  %3877 = vmatmul.msk.f32.gmra.mxu2 %vm38_vm0, %v164_v40  ;;  %v1866_v40 = vld [vmem:[%s6734_s1 + $0x3d0] sm:$0xff] }
  0xaa   :  { %3024 = vmatpush.msra.mxu3 %v1866_v40  ;;  %v174_v40 = vld [vmem:[%s6735_s0 + $0x8b] sm:$0xff] }
  0xab   :  { %3925 = vmatmul.msk.f32.gmra.mxu3 %vm38_vm0, %v4668_v44  ;;  %v4893_v41 = vpop.f32.mrf.mxu0 }
  0xac   :  { %v4901_v45 = vpop.f32.mrf.mxu2 }
  0xae   :  { %v4906_v48 = vpop.f32.mrf.mxu1  ;;  %v4908_v44 = vpop.f32.mrf.mxu3  ;;  %3973 = vmatmul.msk.f32.gmra.mxu0 %vm38_vm0, %v308_v42 }
  0xb1   :  { %3830 = vmatmul.msk.f32.gmra.mxu1 %vm38_vm0, %v307_v35  ;;  %3878 = vmatmul.msk.f32.gmra.mxu2 %vm38_vm0, %v165_v49  ;;  %v314_v35 = vld [vmem:[%s6735_s0 + $0x7a] sm:$0xff] }
  0xb3   :  { %3926 = vmatmul.msk.f32.gmra.mxu3 %vm38_vm0, %v4705_v54  ;;  %v4918_v51 = vpop.f32.mrf.mxu0  ;;  %v166_v54 = vld [vmem:[%s6735_s0 + $0x4b] sm:$0xff] }
  0xb4   :  { %v4926_v55 = vpop.f32.mrf.mxu2 }
  0xb6   :  { %v4928_v57 = vpop.f32.mrf.mxu1  ;;  %v4930_v58 = vpop.f32.mrf.mxu3  ;;  %3974 = vmatmul.msk.f32.gmra.mxu0 %vm38_vm0, %v309_v52 }
  0xb9   :  { %3831 = vmatmul.msk.f32.gmra.mxu1 %vm38_vm0, %v308_v42  ;;  %3879 = vmatmul.msk.f32.gmra.mxu2 %vm38_vm0, %v166_v54  ;;  %v1834_v42 = vld [vmem:[%s6734_s1 + $0x2d0] sm:$0xff] }
  0xba   :  { %2702 = vmatpush.msra.mxu1 %v1834_v42 }
  0xbb   :  { %3927 = vmatmul.msk.f32.gmra.mxu3 %vm38_vm0, %v4737_v63  ;;  %v4940_v60 = vpop.f32.mrf.mxu0  ;;  %v1851_v63 = vld [vmem:[%s6734_s1 + $0x358] sm:$0xff] }
  0xbc   :  { %v4945_v0 = vpop.f32.mrf.mxu2  ;;  %2862 = vmatpush.msra.mxu2 %v1851_v63 }
  0xbe   :  { %v4947_v2 = vpop.f32.mrf.mxu1  ;;  %v4949_v3 = vpop.f32.mrf.mxu3  ;;  %3975 = vmatmul.msk.f32.gmra.mxu0 %vm38_vm0, %v310_v61 }
  0xc1   :  { %3832 = vmatmul.msk.f32.gmra.mxu1 %vm38_vm0, %v309_v52  ;;  %3880 = vmatmul.msk.f32.gmra.mxu2 %vm38_vm0, %v167_v7  ;;  %v315_v52 = vld [vmem:[%s6735_s0 + $0x82] sm:$0xff] }
  0xc3   :  { %3928 = vmatmul.msk.f32.gmra.mxu3 %vm38_vm0, %v4762_v5  ;;  %v4962_v8 = vpop.f32.mrf.mxu0 }
  0xc4   :  { %v4970_v13 = vpop.f32.mrf.mxu2 }
  0xc6   :  { %v4975_v17 = vpop.f32.mrf.mxu1  ;;  %v4977_v5 = vpop.f32.mrf.mxu3  ;;  %3976 = vmatmul.msk.f32.gmra.mxu0 %vm38_vm0, %v311_v10 }
  0xc9   :  { %3833 = vmatmul.msk.f32.gmra.mxu1 %vm38_vm0, %v310_v61  ;;  %3881 = vmatmul.msk.f32.gmra.mxu2 %vm38_vm0, %v168_v18 }
  0xcb   :  { %3929 = vmatmul.msk.f32.gmra.mxu3 %vm38_vm0, %v4787_v11  ;;  %v4987_v19 = vpop.f32.mrf.mxu0  ;;  %v169_v11 = vld [vmem:[%s6735_s0 + $0x63] sm:$0xff] }
  0xcc   :  { %v4995_v56 = vpop.f32.mrf.mxu2 }
  0xce   :  { %v4997_v23 = vpop.f32.mrf.mxu1  ;;  %v4999_v25 = vpop.f32.mrf.mxu3  ;;  %3977 = vmatmul.msk.f32.gmra.mxu0 %vm38_vm0, %v312_v21 }
  0xd1   :  { %3834 = vmatmul.msk.f32.gmra.mxu1 %vm38_vm0, %v311_v10  ;;  %3882 = vmatmul.msk.f32.gmra.mxu2 %vm38_vm0, %v169_v11  ;;  %v316_v10 = vld [vmem:[%s6735_s0 + $0x8a] sm:$0xff]  ;;  %v317_v11 = vld [vmem:[%s6735_s0 + $0x92] sm:$0xff] }
  0xd3   :  { %3930 = vmatmul.msk.f32.gmra.mxu3 %vm38_vm0, %v4329_v16  ;;  %v5009_v4 = vpop.f32.mrf.mxu0  ;;  %v1850_v16 = vld [vmem:[%s6734_s1 + $0x350] sm:$0xff] }
  0xd4   :  { %v5014_v27 = vpop.f32.mrf.mxu2  ;;  %2863 = vmatpush.msra.mxu2 %v1850_v16  ;;  %v1833_v16 = vld [vmem:[%s6734_s1 + $0x2c8] sm:$0xff] }
  0xd5   :  { %2703 = vmatpush.msra.mxu1 %v1833_v16 }
  0xd6   :  { %v5016_v28 = vpop.f32.mrf.mxu1  ;;  %v5018_v14 = vpop.f32.mrf.mxu3  ;;  %3978 = vmatmul.msk.f32.gmra.mxu0 %vm38_vm0, %v313_v26 }
  0xd9   :  { %3835 = vmatmul.msk.f32.gmra.mxu1 %vm38_vm0, %v312_v21  ;;  %3883 = vmatmul.msk.f32.gmra.mxu2 %vm38_vm0, %v170_v31  ;;  %v173_v21 = vld [vmem:[%s6735_s0 + $0x83] sm:$0xff] }
  0xdb   :  { %3931 = vmatmul.msk.f32.gmra.mxu3 %vm38_vm0, %v4377_v30  ;;  %v5031_v33 = vpop.f32.mrf.mxu0 }
  0xdc   :  { %v5039_v34 = vpop.f32.mrf.mxu2 }
  0xde   :  { %v5044_v43 = vpop.f32.mrf.mxu1  ;;  %v5046_v30 = vpop.f32.mrf.mxu3  ;;  %3979 = vmatmul.msk.f32.gmra.mxu0 %vm38_vm0, %v314_v35 }
  0xe1   :  { %3836 = vmatmul.msk.f32.gmra.mxu1 %vm38_vm0, %v313_v26  ;;  %3884 = vmatmul.msk.f32.gmra.mxu2 %vm38_vm0, %v171_v47  ;;  %v1865_v26 = vld [vmem:[%s6734_s1 + $0x3c8] sm:$0xff]  ;;  %v318_v47 = vld [vmem:[%s6735_s0 + $0x9a] sm:$0xff] }
  0xe2   :  { %3025 = vmatpush.msra.mxu3 %v1865_v26 }
  0xe3   :  { %3932 = vmatmul.msk.f32.gmra.mxu3 %vm38_vm0, %v4432_v46  ;;  %v5056_v49 = vpop.f32.mrf.mxu0  ;;  %v172_v46 = vld [vmem:[%s6735_s0 + $0x7b] sm:$0xff] }
  0xe4   :  { %v5064_v54 = vpop.f32.mrf.mxu2 }
  0xe6   :  { %v5066_v61 = vpop.f32.mrf.mxu1  ;;  %v5068_v7 = vpop.f32.mrf.mxu3  ;;  %3980 = vmatmul.msk.f32.gmra.mxu0 %vm38_vm0, %v315_v52 }
  0xe9   :  { %3837 = vmatmul.msk.f32.gmra.mxu1 %vm38_vm0, %v314_v35  ;;  %3885 = vmatmul.msk.f32.gmra.mxu2 %vm38_vm0, %v172_v46 }
  0xeb   :  { %3933 = vmatmul.msk.f32.gmra.mxu3 %vm38_vm0, %v4489_v62  ;;  %v5078_v63 = vpop.f32.mrf.mxu0  ;;  %v1849_v62 = vld [vmem:[%s6734_s1 + $0x348] sm:$0xff] }
  0xec   :  { %v5083_v12 = vpop.f32.mrf.mxu2  ;;  %2864 = vmatpush.msra.mxu2 %v1849_v62 }
  0xee   :  { %v5085_v15 = vpop.f32.mrf.mxu1  ;;  %v5087_v18 = vpop.f32.mrf.mxu3  ;;  %3981 = vmatmul.msk.f32.gmra.mxu0 %vm38_vm0, %v316_v10 }
  0xef   :  { %6738 = vst [vmem:[#allocation3_spill] sm:$0xff] %v5087_v18 }
  0xf1   :  { %3838 = vmatmul.msk.f32.gmra.mxu1 %vm38_vm0, %v315_v52  ;;  %3886 = vmatmul.msk.f32.gmra.mxu2 %vm38_vm0, %v173_v21  ;;  %v1881_v52 = vld [vmem:[%s6734_s1 + $0x448] sm:$0xff]  ;;  %v5144_v21 = vld [vmem:[%s6736_s2] ss:$0 sm:$0xff] }
  0xf2   :  { %3186 = vmatpush.msra.mxu0 %v1881_v52  ;;  %v1910_v62 = vadd.f32 %v5144_v21, %v4871_v24  ;;  %v176_v24 = vld [vmem:[%s6735_s0 + $0x9b] sm:$0xff] }
  0xf3   :  { %3934 = vmatmul.msk.f32.gmra.mxu3 %vm38_vm0, %v4532_v9  ;;  %v5100_v22 = vpop.f32.mrf.mxu0 }
  0xf4   :  { %v5108_v31 = vpop.f32.mrf.mxu2 }
  0xf6   :  { %v5113_v35 = vpop.f32.mrf.mxu1  ;;  %v5115_v9 = vpop.f32.mrf.mxu3  ;;  %3982 = vmatmul.msk.f32.gmra.mxu0 %vm38_vm0, %v317_v11 }
  0xf7   :  { %6739 = vst [vmem:[#allocation4_spill] sm:$0xff] %v5115_v9 }
  0xf9   :  { %3839 = vmatmul.msk.f32.gmra.mxu1 %vm38_vm0, %v316_v10  ;;  %3887 = vmatmul.msk.f32.gmra.mxu2 %vm38_vm0, %v174_v40  ;;  %v319_v40 = vld [vmem:[%s6735_s0 + $0xa2] sm:$0xff] }
  0xfb   :  { %3935 = vmatmul.msk.f32.gmra.mxu3 %vm38_vm0, %v4572_v20  ;;  %v5125_v42 = vpop.f32.mrf.mxu0  ;;  %v175_v20 = vld [vmem:[%s6735_s0 + $0x93] sm:$0xff] }
  0xfc   :  { %v5133_v53 = vpop.f32.mrf.mxu2 }
  0xfe   :  { %v5135_v46 = vpop.f32.mrf.mxu3  ;;  %v2070_v10 = vpop.f32.mrf.mxu1  ;;  %3983 = vmatmul.msk.f32.gmra.mxu0 %vm38_vm0, %v318_v47 }
  0xff   :  { %6740 = vst [vmem:[#allocation5_spill] sm:$0xff] %v5135_v46  ;;  %v2071_v26 = vadd.f32 %v2070_v10, %v1910_v62  ;;  %v1913_v10 = vadd.f32 %v5144_v21, %v4893_v41  ;;  %v320_v41 = vld [vmem:[%s6735_s0 + $0xaa] sm:$0xff] }
 0x101   :  { %3840 = vmatmul.msk.f32.gmra.mxu1 %vm38_vm0, %v317_v11  ;;  %3888 = vmatmul.msk.f32.gmra.mxu2 %vm38_vm0, %v175_v20  ;;  %v1848_v20 = vld [vmem:[%s6734_s1 + $0x340] sm:$0xff] }
 0x102   :  { %2865 = vmatpush.msra.mxu2 %v1848_v20 }
 0x103   :  { %3936 = vmatmul.msk.f32.gmra.mxu3 %vm38_vm0, %v4609_v29  ;;  %v2553_v16 = vpop.f32.mrf.mxu0 }
 0x104   :  { %v2231_v52 = vpop.f32.mrf.mxu2 }
 0x105   :  { %v2232_v46 = vadd.f32 %v2231_v52, %v2071_v26 }
 0x106   :  { %v2073_v9 = vpop.f32.mrf.mxu1  ;;  %v2392_v18 = vpop.f32.mrf.mxu3  ;;  %3984 = vmatmul.msk.f32.gmra.mxu0 %vm38_vm0, %v319_v40 }
 0x107   :  { %v2393_v11 = vadd.f32 %v2392_v18, %v2232_v46  ;;  %v2074_v62 = vadd.f32 %v2073_v9, %v1913_v10  ;;  %v1864_v18 = vld [vmem:[%s6734_s1 + $0x3c0] sm:$0xff] }
 0x108   :  { %3026 = vmatpush.msra.mxu3 %v1864_v18  ;;  %v321_v18 = vld [vmem:[%s6735_s0 + $0xb2] sm:$0xff] }
 0x109   :  { %v5161_v29 = vadd.f32 %v2553_v16, %v2393_v11  ;;  %3841 = vmatmul.msk.f32.gmra.mxu1 %vm38_vm0, %v318_v47  ;;  %3889 = vmatmul.msk.f32.gmra.mxu2 %vm38_vm0, %v176_v24  ;;  %v1832_v16 = vld [vmem:[%s6734_s1 + $0x2c0] sm:$0xff]  ;;  %v1916_v11 = vadd.f32 %v5144_v21, %v4918_v51 }
 0x10a   :  { %2704 = vmatpush.msra.mxu1 %v1832_v16  ;;  %v178_v16 = vld [vmem:[%s6735_s0 + $0xab] sm:$0xff] }
 0x10b   :  { %3937 = vmatmul.msk.f32.gmra.mxu3 %vm38_vm0, %v4646_v39  ;;  %v2556_v26 = vpop.f32.mrf.mxu0  ;;  %v177_v39 = vld [vmem:[%s6735_s0 + $0xa3] sm:$0xff] }
 0x10c   :  { %v2234_v47 = vpop.f32.mrf.mxu2 }
 0x10d   :  { %v2235_v46 = vadd.f32 %v2234_v47, %v2074_v62  ;;  %v1880_v47 = vld [vmem:[%s6734_s1 + $0x440] sm:$0xff] }
 0x10e   :  { %v2076_v9 = vpop.f32.mrf.mxu1  ;;  %v2395_v52 = vpop.f32.mrf.mxu3  ;;  %3985 = vmatmul.msk.f32.gmra.mxu0 %vm38_vm0, %v320_v41 }
 0x10f   :  { %v2396_v24 = vadd.f32 %v2395_v52, %v2235_v46  ;;  %v2077_v20 = vadd.f32 %v2076_v9, %v1916_v11  ;;  %3187 = vmatpush.msra.mxu0 %v1880_v47  ;;  %v1919_v9 = vadd.f32 %v5144_v21, %v4940_v60  ;;  %v322_v11 = vld [vmem:[%s6735_s0 + $0xba] sm:$0xff] }
 0x110   :  { %v179_v60 = vld [vmem:[%s6735_s0 + $0xb3] sm:$0xff] }
 0x111   :  { %v5185_v10 = vadd.f32 %v2556_v26, %v2396_v24  ;;  %3842 = vmatmul.msk.f32.gmra.mxu1 %vm38_vm0, %v319_v40  ;;  %3890 = vmatmul.msk.f32.gmra.mxu2 %vm38_vm0, %v177_v39 }
 0x113   :  { %3938 = vmatmul.msk.f32.gmra.mxu3 %vm38_vm0, %v4686_v50  ;;  %v2559_v62 = vpop.f32.mrf.mxu0 }
 0x114   :  { %v2237_v51 = vpop.f32.mrf.mxu2 }
 0x115   :  { %v2238_v26 = vadd.f32 %v2237_v51, %v2077_v20 }
 0x116   :  { %v2079_v46 = vpop.f32.mrf.mxu1  ;;  %v2398_v40 = vpop.f32.mrf.mxu3  ;;  %3986 = vmatmul.msk.f32.gmra.mxu0 %vm38_vm0, %v321_v18 }
 0x117   :  { %v2399_v50 = vadd.f32 %v2398_v40, %v2238_v26  ;;  %v2080_v39 = vadd.f32 %v2079_v46, %v1919_v9  ;;  %v1847_v46 = vld [vmem:[%s6734_s1 + $0x338] sm:$0xff] }
 0x118   :  { %2866 = vmatpush.msra.mxu2 %v1847_v46  ;;  %v1879_v46 = vld [vmem:[%s6734_s1 + $0x438] sm:$0xff] }
 0x119   :  { %v5203_v52 = vadd.f32 %v2559_v62, %v2399_v50  ;;  %3843 = vmatmul.msk.f32.gmra.mxu1 %vm38_vm0, %v320_v41  ;;  %3891 = vmatmul.msk.f32.gmra.mxu2 %vm38_vm0, %v178_v16  ;;  %v1922_v62 = vadd.f32 %v5144_v21, %v4962_v8  ;;  %v323_v8 = vld [vmem:[%s6735_s0 + $0xc2] sm:$0xff] }
 0x11a   :  { %3188 = vmatpush.msra.mxu0 %v1879_v46 }
 0x11b   :  { %3939 = vmatmul.msk.f32.gmra.mxu3 %vm38_vm0, %v4720_v59  ;;  %v2562_v24 = vpop.f32.mrf.mxu0 }
 0x11c   :  { %v2240_v20 = vpop.f32.mrf.mxu2 }
 0x11d   :  { %v2241_v47 = vadd.f32 %v2240_v20, %v2080_v39  ;;  %v1831_v39 = vld [vmem:[%s6734_s1 + $0x2b8] sm:$0xff] }
 0x11e   :  { %v2082_v51 = vpop.f32.mrf.mxu1  ;;  %v2401_v26 = vpop.f32.mrf.mxu3  ;;  %3987 = vmatmul.msk.f32.gmra.mxu0 %vm38_vm0, %v322_v11  ;;  %2705 = vmatpush.msra.mxu1 %v1831_v39 }
 0x11f   :  { %v2402_v41 = vadd.f32 %v2401_v26, %v2241_v47  ;;  %v2083_v40 = vadd.f32 %v2082_v51, %v1922_v62  ;;  %v1925_v51 = vadd.f32 %v5144_v21, %v4987_v19  ;;  %v324_v62 = vld [vmem:[%s6735_s0 + $0xca] sm:$0xff] }
 0x121   :  { %v5218_v59 = vadd.f32 %v2562_v24, %v2402_v41  ;;  %3844 = vmatmul.msk.f32.gmra.mxu1 %vm38_vm0, %v321_v18  ;;  %3892 = vmatmul.msk.f32.gmra.mxu2 %vm38_vm0, %v179_v60  ;;  %v1863_v18 = vld [vmem:[%s6734_s1 + $0x3b8] sm:$0xff] }
 0x122   :  { %3027 = vmatpush.msra.mxu3 %v1863_v18  ;;  %v181_v18 = vld [vmem:[%s6735_s0 + $0xc3] sm:$0xff] }
 0x123   :  { %3940 = vmatmul.msk.f32.gmra.mxu3 %vm38_vm0, %v4745_v1  ;;  %v2565_v16 = vpop.f32.mrf.mxu0  ;;  %v180_v1 = vld [vmem:[%s6735_s0 + $0xbb] sm:$0xff] }
 0x124   :  { %v2243_v50 = vpop.f32.mrf.mxu2 }
 0x125   :  { %v2244_v9 = vadd.f32 %v2243_v50, %v2083_v40  ;;  %v253_v50 = vld [vmem:[%s6735_s0 + $0xd1] sm:$0xff] }
 0x126   :  { %v2085_v24 = vpop.f32.mrf.mxu1  ;;  %v2404_v20 = vpop.f32.mrf.mxu3  ;;  %3988 = vmatmul.msk.f32.gmra.mxu0 %vm38_vm0, %v323_v8 }
 0x127   :  { %v2405_v47 = vadd.f32 %v2404_v20, %v2244_v9  ;;  %v2086_v60 = vadd.f32 %v2085_v24, %v1925_v51  ;;  %v1928_v9 = vadd.f32 %v5144_v21, %v5009_v4  ;;  %v182_v4 = vld [vmem:[%s6735_s0 + $0xcb] sm:$0xff] }
 0x129   :  { %v5242_v26 = vadd.f32 %v2565_v16, %v2405_v47  ;;  %3845 = vmatmul.msk.f32.gmra.mxu1 %vm38_vm0, %v322_v11  ;;  %3893 = vmatmul.msk.f32.gmra.mxu2 %vm38_vm0, %v180_v1  ;;  %v325_v1 = vld [vmem:[%s6735_s0 + $0xd2] sm:$0xff] }
 0x12b   :  { %3941 = vmatmul.msk.f32.gmra.mxu3 %vm38_vm0, %v4767_v6  ;;  %v2568_v41 = vpop.f32.mrf.mxu0 }
 0x12c   :  { %v2246_v19 = vpop.f32.mrf.mxu2 }
 0x12d   :  { %v2247_v40 = vadd.f32 %v2246_v19, %v2086_v60  ;;  %v1931_v19 = vadd.f32 %v5144_v21, %v5031_v33  ;;  %v1862_v33 = vld [vmem:[%s6734_s1 + $0x3b0] sm:$0xff] }
 0x12e   :  { %v2088_v16 = vpop.f32.mrf.mxu1  ;;  %v2407_v11 = vpop.f32.mrf.mxu3  ;;  %3989 = vmatmul.msk.f32.gmra.mxu0 %vm38_vm0, %v324_v62  ;;  %3028 = vmatpush.msra.mxu3 %v1862_v33  ;;  %v3539_v33 = vld [vmem:[%s6735_s0 + $0x11a] sm:$0xff] }
 0x12f   :  { %v2408_v6 = vadd.f32 %v2407_v11, %v2247_v40  ;;  %v2089_v24 = vadd.f32 %v2088_v16, %v1928_v9  ;;  %v1846_v16 = vld [vmem:[%s6734_s1 + $0x330] sm:$0xff] }
 0x130   :  { %2867 = vmatpush.msra.mxu2 %v1846_v16  ;;  %v1830_v9 = vld [vmem:[%s6734_s1 + $0x2b0] sm:$0xff] }
 0x131   :  { %v5263_v39 = vadd.f32 %v2568_v41, %v2408_v6  ;;  %3846 = vmatmul.msk.f32.gmra.mxu1 %vm38_vm0, %v323_v8  ;;  %3894 = vmatmul.msk.f32.gmra.mxu2 %vm38_vm0, %v181_v18  ;;  %v254_v41 = vld [vmem:[%s6735_s0 + $0xd9] sm:$0xff]  ;;  %v1878_v16 = vld [vmem:[%s6734_s1 + $0x430] sm:$0xff] }
 0x132   :  { %v326_v6 = vld [vmem:[%s6735_s0 + $0xda] sm:$0xff]  ;;  %2706 = vmatpush.msra.mxu1 %v1830_v9  ;;  %3189 = vmatpush.msra.mxu0 %v1878_v16  ;;  %v3587_v9 = vld [vmem:[%s6735_s0 + $0x129] sm:$0xff] }
 0x133   :  { %3942 = vmatmul.msk.f32.gmra.mxu3 %vm38_vm0, %v253_v50  ;;  %v2571_v20 = vpop.f32.mrf.mxu0 }
 0x134   :  { %v2249_v47 = vpop.f32.mrf.mxu2 }
 0x135   :  { %v2250_v51 = vadd.f32 %v2249_v47, %v2089_v24  ;;  %v3562_v47 = vld [vmem:[%s6735_s0 + $0x113] sm:$0xff] }
 0x136   :  { %v2091_v60 = vpop.f32.mrf.mxu1  ;;  %v2410_v46 = vpop.f32.mrf.mxu3  ;;  %3990 = vmatmul.msk.f32.gmra.mxu0 %vm38_vm0, %v325_v1  ;;  %v3538_v1 = vld [vmem:[%s6735_s0 + $0x112] sm:$0xff] }
 0x137   :  { %v2411_v8 = vadd.f32 %v2410_v46, %v2250_v51  ;;  %v2092_v11 = vadd.f32 %v2091_v60, %v1931_v19  ;;  %v3586_v60 = vld [vmem:[%s6735_s0 + $0x121] sm:$0xff]  ;;  %v1934_v46 = vadd.f32 %v5144_v21, %v5056_v49 }
 0x138   :  { %v3610_v19 = vld [vmem:[%s6735_s0 + $0x122] sm:$0xff] }
 0x139   :  { %v5280_v40 = vadd.f32 %v2571_v20, %v2411_v8  ;;  %3847 = vmatmul.msk.f32.gmra.mxu1 %vm38_vm0, %v324_v62  ;;  %3895 = vmatmul.msk.f32.gmra.mxu2 %vm38_vm0, %v182_v4 }
 0x13b   :  { %3943 = vmatmul.msk.f32.gmra.mxu3 %vm38_vm0, %v254_v41  ;;  %v2574_v18 = vpop.f32.mrf.mxu0 }
 0x13c   :  { %v2252_v62 = vpop.f32.mrf.mxu2 }
 0x13d   :  { %v2253_v50 = vadd.f32 %v2252_v62, %v2092_v11  ;;  %v3563_v62 = vld [vmem:[%s6735_s0 + $0x11b] sm:$0xff] }
 0x13e   :  { %v2094_v24 = vpop.f32.mrf.mxu1  ;;  %v2413_v20 = vpop.f32.mrf.mxu3  ;;  %3991 = vmatmul.msk.f32.gmra.mxu0 %vm38_vm0, %v326_v6 }
 0x13f   :  { %v2414_v51 = vadd.f32 %v2413_v20, %v2253_v50  ;;  %v2095_v8 = vadd.f32 %v2094_v24, %v1934_v46  ;;  %v1937_v24 = vadd.f32 %v5144_v21, %v5078_v63  ;;  %v3564_v63 = vld [vmem:[%s6735_s0 + $0x123] sm:$0xff] }
 0x141   :  { %v5309_v4 = vadd.f32 %v2574_v18, %v2414_v51  ;;  %3848 = vmatmul.msk.f32.gmra.mxu1 %vm38_vm0, %v3538_v1  ;;  %3896 = vmatmul.msk.f32.gmra.mxu2 %vm38_vm0, %v3562_v47  ;;  %v3611_v51 = vld [vmem:[%s6735_s0 + $0x12a] sm:$0xff] }
 0x143   :  { %3944 = vmatmul.msk.f32.gmra.mxu3 %vm38_vm0, %v3586_v60  ;;  %v2577_v41 = vpop.f32.mrf.mxu0 }
 0x144   :  { %v2255_v11 = vpop.f32.mrf.mxu2 }
 0x145   :  { %v2256_v49 = vadd.f32 %v2255_v11, %v2095_v8  ;;  %v3588_v11 = vld [vmem:[%s6735_s0 + $0x131] sm:$0xff] }
 0x146   :  { %v2097_v18 = vpop.f32.mrf.mxu1  ;;  %v2416_v6 = vpop.f32.mrf.mxu3  ;;  %3992 = vmatmul.msk.f32.gmra.mxu0 %vm38_vm0, %v3610_v19 }
 0x147   :  { %v2417_v50 = vadd.f32 %v2416_v6, %v2256_v49  ;;  %v2098_v1 = vadd.f32 %v2097_v18, %v1937_v24  ;;  %v1940_v49 = vadd.f32 %v5144_v21, %v5100_v22  ;;  %v1845_v6 = vld [vmem:[%s6734_s1 + $0x328] sm:$0xff] }
 0x148   :  { %2868 = vmatpush.msra.mxu2 %v1845_v6  ;;  %v1861_v22 = vld [vmem:[%s6734_s1 + $0x3a8] sm:$0xff] }
 0x149   :  { %v5332_v20 = vadd.f32 %v2577_v41, %v2417_v50  ;;  %3849 = vmatmul.msk.f32.gmra.mxu1 %vm38_vm0, %v3539_v33  ;;  %3897 = vmatmul.msk.f32.gmra.mxu2 %vm38_vm0, %v3563_v62  ;;  %v3612_v50 = vld [vmem:[%s6735_s0 + $0x132] sm:$0xff]  ;;  %v1829_v24 = vld [vmem:[%s6734_s1 + $0x2a8] sm:$0xff] }
 0x14a   :  { %3029 = vmatpush.msra.mxu3 %v1861_v22  ;;  %2707 = vmatpush.msra.mxu1 %v1829_v24  ;;  %v1877_v6 = vld [vmem:[%s6734_s1 + $0x428] sm:$0xff]  ;;  %v1946_v24 = vadd.f32 %v5144_v21, %v4861_v32  ;;  %v3567_v32 = vld [vmem:[%s6735_s0 + $0x13b] sm:$0xff] }
 0x14b   :  { %3945 = vmatmul.msk.f32.gmra.mxu3 %vm38_vm0, %v3587_v9  ;;  %v2580_v47 = vpop.f32.mrf.mxu0  ;;  %3190 = vmatpush.msra.mxu0 %v1877_v6 }
 0x14c   :  { %v2258_v60 = vpop.f32.mrf.mxu2 }
 0x14d   :  { %v2259_v46 = vadd.f32 %v2258_v60, %v2098_v1  ;;  %v3565_v60 = vld [vmem:[%s6735_s0 + $0x12b] sm:$0xff] }
 0x14e   :  { %v2100_v8 = vpop.f32.mrf.mxu1  ;;  %v2419_v16 = vpop.f32.mrf.mxu3  ;;  %3993 = vmatmul.msk.f32.gmra.mxu0 %vm38_vm0, %v3611_v51 }
 0x14f   :  { %v2420_v41 = vadd.f32 %v2419_v16, %v2259_v46  ;;  %v2101_v33 = vadd.f32 %v2100_v8, %v1940_v49  ;;  %v3589_v8 = vld [vmem:[%s6735_s0 + $0x139] sm:$0xff]  ;;  %v1943_v16 = vadd.f32 %v5144_v21, %v5125_v42 }
 0x150   :  { %v3613_v49 = vld [vmem:[%s6735_s0 + $0x13a] sm:$0xff] }
 0x151   :  { %v5349_v18 = vadd.f32 %v2580_v47, %v2420_v41  ;;  %3850 = vmatmul.msk.f32.gmra.mxu1 %vm38_vm0, %v3610_v19  ;;  %3898 = vmatmul.msk.f32.gmra.mxu2 %vm38_vm0, %v3564_v63 }
 0x153   :  { %3946 = vmatmul.msk.f32.gmra.mxu3 %vm38_vm0, %v3588_v11  ;;  %v2583_v62 = vpop.f32.mrf.mxu0 }
 0x154   :  { %v2261_v19 = vpop.f32.mrf.mxu2 }
 0x155   :  { %v2262_v9 = vadd.f32 %v2261_v19, %v2101_v33 }
 0x156   :  { %v2103_v1 = vpop.f32.mrf.mxu1  ;;  %v2422_v47 = vpop.f32.mrf.mxu3  ;;  %3994 = vmatmul.msk.f32.gmra.mxu0 %vm38_vm0, %v3612_v50 }
 0x157   :  { %v2423_v46 = vadd.f32 %v2422_v47, %v2262_v9  ;;  %v2104_v41 = vadd.f32 %v2103_v1, %v1943_v16  ;;  %v3590_v9 = vld [vmem:[%s6735_s0 + $0x141] sm:$0xff] }
 0x159   :  { %v5375_v63 = vadd.f32 %v2583_v62, %v2423_v46  ;;  %3851 = vmatmul.msk.f32.gmra.mxu1 %vm38_vm0, %v3611_v51  ;;  %3899 = vmatmul.msk.f32.gmra.mxu2 %vm38_vm0, %v3565_v60  ;;  %v3566_v51 = vld [vmem:[%s6735_s0 + $0x133] sm:$0xff]  ;;  %v3614_v46 = vld [vmem:[%s6735_s0 + $0x142] sm:$0xff] }
 0x15b   :  { %3947 = vmatmul.msk.f32.gmra.mxu3 %vm38_vm0, %v3589_v8  ;;  %v2586_v11 = vpop.f32.mrf.mxu0 }
 0x15c   :  { %v2264_v33 = vpop.f32.mrf.mxu2 }
 0x15d   :  { %v2265_v42 = vadd.f32 %v2264_v33, %v2104_v41  ;;  %v1949_v33 = vadd.f32 %v5144_v21, %v4878_v37  ;;  %v1860_v37 = vld [vmem:[%s6734_s1 + $0x3a0] sm:$0xff] }
 0x15e   :  { %v2106_v62 = vpop.f32.mrf.mxu1  ;;  %v2425_v22 = vpop.f32.mrf.mxu3  ;;  %3995 = vmatmul.msk.f32.gmra.mxu0 %vm38_vm0, %v3613_v49  ;;  %3030 = vmatpush.msra.mxu3 %v1860_v37 }
 0x15f   :  { %v2426_v19 = vadd.f32 %v2425_v22, %v2265_v42  ;;  %v2107_v47 = vadd.f32 %v2106_v62, %v1946_v24  ;;  %v1844_v62 = vld [vmem:[%s6734_s1 + $0x320] sm:$0xff] }
 0x160   :  { %2869 = vmatpush.msra.mxu2 %v1844_v62  ;;  %v1828_v24 = vld [vmem:[%s6734_s1 + $0x2a0] sm:$0xff] }
 0x161   :  { %v5395_v1 = vadd.f32 %v2586_v11, %v2426_v19  ;;  %3852 = vmatmul.msk.f32.gmra.mxu1 %vm38_vm0, %v3612_v50  ;;  %3900 = vmatmul.msk.f32.gmra.mxu2 %vm38_vm0, %v3566_v51  ;;  %v3591_v11 = vld [vmem:[%s6735_s0 + $0x149] sm:$0xff]  ;;  %v1876_v62 = vld [vmem:[%s6734_s1 + $0x420] sm:$0xff] }
 0x162   :  { %v3615_v19 = vld [vmem:[%s6735_s0 + $0x14a] sm:$0xff]  ;;  %2708 = vmatpush.msra.mxu1 %v1828_v24  ;;  %3191 = vmatpush.msra.mxu0 %v1876_v62  ;;  %v1955_v24 = vadd.f32 %v5144_v21, %v4928_v57  ;;  %v3570_v57 = vld [vmem:[%s6735_s0 + $0x153] sm:$0xff] }
 0x163   :  { %3948 = vmatmul.msk.f32.gmra.mxu3 %vm38_vm0, %v3590_v9  ;;  %v2589_v60 = vpop.f32.mrf.mxu0 }
 0x164   :  { %v2267_v8 = vpop.f32.mrf.mxu2 }
 0x165   :  { %v2268_v16 = vadd.f32 %v2267_v8, %v2107_v47  ;;  %v3568_v8 = vld [vmem:[%s6735_s0 + $0x143] sm:$0xff] }
 0x166   :  { %v2109_v41 = vpop.f32.mrf.mxu1  ;;  %v2428_v6 = vpop.f32.mrf.mxu3  ;;  %3996 = vmatmul.msk.f32.gmra.mxu0 %vm38_vm0, %v3614_v46 }
 0x167   :  { %v2429_v50 = vadd.f32 %v2428_v6, %v2268_v16  ;;  %v2110_v22 = vadd.f32 %v2109_v41, %v1949_v33  ;;  %v3592_v41 = vld [vmem:[%s6735_s0 + $0x151] sm:$0xff]  ;;  %v1952_v6 = vadd.f32 %v5144_v21, %v4906_v48 }
 0x168   :  { %v3616_v33 = vld [vmem:[%s6735_s0 + $0x152] sm:$0xff] }
 0x169   :  { %v5412_v42 = vadd.f32 %v2589_v60, %v2429_v50  ;;  %3853 = vmatmul.msk.f32.gmra.mxu1 %vm38_vm0, %v3613_v49  ;;  %3901 = vmatmul.msk.f32.gmra.mxu2 %vm38_vm0, %v3567_v32 }
 0x16b   :  { %3949 = vmatmul.msk.f32.gmra.mxu3 %vm38_vm0, %v3591_v11  ;;  %v2592_v51 = vpop.f32.mrf.mxu0 }
 0x16c   :  { %v2270_v49 = vpop.f32.mrf.mxu2 }
 0x16d   :  { %v2271_v9 = vadd.f32 %v2270_v49, %v2110_v22 }
 0x16e   :  { %v2112_v47 = vpop.f32.mrf.mxu1  ;;  %v2431_v60 = vpop.f32.mrf.mxu3  ;;  %3997 = vmatmul.msk.f32.gmra.mxu0 %vm38_vm0, %v3615_v19 }
 0x16f   :  { %v2432_v16 = vadd.f32 %v2431_v60, %v2271_v9  ;;  %v2113_v50 = vadd.f32 %v2112_v47, %v1952_v6  ;;  %v3593_v9 = vld [vmem:[%s6735_s0 + $0x159] sm:$0xff] }
 0x171   :  { %v5438_v32 = vadd.f32 %v2592_v51, %v2432_v16  ;;  %3854 = vmatmul.msk.f32.gmra.mxu1 %vm38_vm0, %v3614_v46  ;;  %3902 = vmatmul.msk.f32.gmra.mxu2 %vm38_vm0, %v3568_v8  ;;  %v3569_v46 = vld [vmem:[%s6735_s0 + $0x14b] sm:$0xff]  ;;  %v3617_v16 = vld [vmem:[%s6735_s0 + $0x15a] sm:$0xff] }
 0x173   :  { %3950 = vmatmul.msk.f32.gmra.mxu3 %vm38_vm0, %v3592_v41  ;;  %v2595_v11 = vpop.f32.mrf.mxu0 }
 0x174   :  { %v2273_v22 = vpop.f32.mrf.mxu2 }
 0x175   :  { %v2274_v48 = vadd.f32 %v2273_v22, %v2113_v50  ;;  %v1958_v22 = vadd.f32 %v5144_v21, %v4947_v2  ;;  %v1859_v2 = vld [vmem:[%s6734_s1 + $0x398] sm:$0xff] }
 0x176   :  { %v2115_v51 = vpop.f32.mrf.mxu1  ;;  %v2434_v37 = vpop.f32.mrf.mxu3  ;;  %3998 = vmatmul.msk.f32.gmra.mxu0 %vm38_vm0, %v3616_v33  ;;  %3031 = vmatpush.msra.mxu3 %v1859_v2 }
 0x177   :  { %v2435_v49 = vadd.f32 %v2434_v37, %v2274_v48  ;;  %v2116_v60 = vadd.f32 %v2115_v51, %v1955_v24  ;;  %v1843_v51 = vld [vmem:[%s6734_s1 + $0x318] sm:$0xff] }
 0x178   :  { %2870 = vmatpush.msra.mxu2 %v1843_v51  ;;  %v1827_v24 = vld [vmem:[%s6734_s1 + $0x298] sm:$0xff] }
 0x179   :  { %v5458_v47 = vadd.f32 %v2595_v11, %v2435_v49  ;;  %3855 = vmatmul.msk.f32.gmra.mxu1 %vm38_vm0, %v3615_v19  ;;  %3903 = vmatmul.msk.f32.gmra.mxu2 %vm38_vm0, %v3569_v46  ;;  %v3594_v11 = vld [vmem:[%s6735_s0 + $0x161] sm:$0xff]  ;;  %v1875_v51 = vld [vmem:[%s6734_s1 + $0x418] sm:$0xff] }
 0x17a   :  { %v3618_v49 = vld [vmem:[%s6735_s0 + $0x162] sm:$0xff]  ;;  %2709 = vmatpush.msra.mxu1 %v1827_v24  ;;  %3192 = vmatpush.msra.mxu0 %v1875_v51  ;;  %v1964_v24 = vadd.f32 %v5144_v21, %v4997_v23  ;;  %v3573_v23 = vld [vmem:[%s6735_s0 + $0x16b] sm:$0xff] }
 0x17b   :  { %3951 = vmatmul.msk.f32.gmra.mxu3 %vm38_vm0, %v3593_v9  ;;  %v2598_v8 = vpop.f32.mrf.mxu0 }
 0x17c   :  { %v2276_v41 = vpop.f32.mrf.mxu2 }
 0x17d   :  { %v2277_v6 = vadd.f32 %v2276_v41, %v2116_v60  ;;  %v3571_v41 = vld [vmem:[%s6735_s0 + $0x15b] sm:$0xff] }
 0x17e   :  { %v2118_v50 = vpop.f32.mrf.mxu1  ;;  %v2437_v62 = vpop.f32.mrf.mxu3  ;;  %3999 = vmatmul.msk.f32.gmra.mxu0 %vm38_vm0, %v3617_v16 }
 0x17f   :  { %v2438_v19 = vadd.f32 %v2437_v62, %v2277_v6  ;;  %v2119_v37 = vadd.f32 %v2118_v50, %v1958_v22  ;;  %v3595_v50 = vld [vmem:[%s6735_s0 + $0x169] sm:$0xff]  ;;  %v1961_v62 = vadd.f32 %v5144_v21, %v4975_v17 }
 0x180   :  { %v3619_v22 = vld [vmem:[%s6735_s0 + $0x16a] sm:$0xff] }
 0x181   :  { %v5475_v48 = vadd.f32 %v2598_v8, %v2438_v19  ;;  %3856 = vmatmul.msk.f32.gmra.mxu1 %vm38_vm0, %v3616_v33  ;;  %3904 = vmatmul.msk.f32.gmra.mxu2 %vm38_vm0, %v3570_v57 }
 0x183   :  { %3952 = vmatmul.msk.f32.gmra.mxu3 %vm38_vm0, %v3594_v11  ;;  %v2601_v46 = vpop.f32.mrf.mxu0 }
 0x184   :  { %v2279_v33 = vpop.f32.mrf.mxu2 }
 0x185   :  { %v2280_v9 = vadd.f32 %v2279_v33, %v2119_v37 }
 0x186   :  { %v2121_v60 = vpop.f32.mrf.mxu1  ;;  %v2440_v8 = vpop.f32.mrf.mxu3  ;;  %4000 = vmatmul.msk.f32.gmra.mxu0 %vm38_vm0, %v3618_v49 }
 0x187   :  { %v2441_v6 = vadd.f32 %v2440_v8, %v2280_v9  ;;  %v2122_v19 = vadd.f32 %v2121_v60, %v1961_v62  ;;  %v3596_v9 = vld [vmem:[%s6735_s0 + $0x171] sm:$0xff] }
 0x189   :  { %v5501_v57 = vadd.f32 %v2601_v46, %v2441_v6  ;;  %3857 = vmatmul.msk.f32.gmra.mxu1 %vm38_vm0, %v3617_v16  ;;  %3905 = vmatmul.msk.f32.gmra.mxu2 %vm38_vm0, %v3571_v41  ;;  %v3572_v16 = vld [vmem:[%s6735_s0 + $0x163] sm:$0xff]  ;;  %v3620_v6 = vld [vmem:[%s6735_s0 + $0x172] sm:$0xff] }
 0x18b   :  { %3953 = vmatmul.msk.f32.gmra.mxu3 %vm38_vm0, %v3595_v50  ;;  %v2604_v11 = vpop.f32.mrf.mxu0 }
 0x18c   :  { %v2282_v37 = vpop.f32.mrf.mxu2 }
 0x18d   :  { %v2283_v17 = vadd.f32 %v2282_v37, %v2122_v19  ;;  %v1967_v37 = vadd.f32 %v5144_v21, %v5016_v28  ;;  %v1858_v28 = vld [vmem:[%s6734_s1 + $0x390] sm:$0xff] }
 0x18e   :  { %v2124_v46 = vpop.f32.mrf.mxu1  ;;  %v2443_v2 = vpop.f32.mrf.mxu3  ;;  %4001 = vmatmul.msk.f32.gmra.mxu0 %vm38_vm0, %v3619_v22  ;;  %3032 = vmatpush.msra.mxu3 %v1858_v28 }
 0x18f   :  { %v2444_v33 = vadd.f32 %v2443_v2, %v2283_v17  ;;  %v2125_v8 = vadd.f32 %v2124_v46, %v1964_v24  ;;  %v1842_v46 = vld [vmem:[%s6734_s1 + $0x310] sm:$0xff] }
 0x190   :  { %2871 = vmatpush.msra.mxu2 %v1842_v46  ;;  %v1826_v24 = vld [vmem:[%s6734_s1 + $0x290] sm:$0xff] }
 0x191   :  { %v5521_v60 = vadd.f32 %v2604_v11, %v2444_v33  ;;  %3858 = vmatmul.msk.f32.gmra.mxu1 %vm38_vm0, %v3618_v49  ;;  %3906 = vmatmul.msk.f32.gmra.mxu2 %vm38_vm0, %v3572_v16  ;;  %v3597_v11 = vld [vmem:[%s6735_s0 + $0x179] sm:$0xff]  ;;  %v1874_v46 = vld [vmem:[%s6734_s1 + $0x410] sm:$0xff] }
 0x192   :  { %v3621_v33 = vld [vmem:[%s6735_s0 + $0x17a] sm:$0xff]  ;;  %2710 = vmatpush.msra.mxu1 %v1826_v24  ;;  %3193 = vmatpush.msra.mxu0 %v1874_v46  ;;  %v1973_v24 = vadd.f32 %v5144_v21, %v5066_v61  ;;  %v3576_v61 = vld [vmem:[%s6735_s0 + $0x183] sm:$0xff] }
 0x193   :  { %3954 = vmatmul.msk.f32.gmra.mxu3 %vm38_vm0, %v3596_v9  ;;  %v2607_v41 = vpop.f32.mrf.mxu0 }
 0x194   :  { %v2285_v50 = vpop.f32.mrf.mxu2 }
 0x195   :  { %v2286_v62 = vadd.f32 %v2285_v50, %v2125_v8  ;;  %v3574_v50 = vld [vmem:[%s6735_s0 + $0x173] sm:$0xff] }
 0x196   :  { %v2127_v19 = vpop.f32.mrf.mxu1  ;;  %v2446_v51 = vpop.f32.mrf.mxu3  ;;  %4002 = vmatmul.msk.f32.gmra.mxu0 %vm38_vm0, %v3620_v6 }
 0x197   :  { %v2447_v49 = vadd.f32 %v2446_v51, %v2286_v62  ;;  %v2128_v2 = vadd.f32 %v2127_v19, %v1967_v37  ;;  %v3598_v19 = vld [vmem:[%s6735_s0 + $0x181] sm:$0xff]  ;;  %v1970_v51 = vadd.f32 %v5144_v21, %v5044_v43 }
 0x198   :  { %v3622_v37 = vld [vmem:[%s6735_s0 + $0x182] sm:$0xff] }
 0x199   :  { %v5538_v17 = vadd.f32 %v2607_v41, %v2447_v49  ;;  %3859 = vmatmul.msk.f32.gmra.mxu1 %vm38_vm0, %v3619_v22  ;;  %3907 = vmatmul.msk.f32.gmra.mxu2 %vm38_vm0, %v3573_v23 }
 0x19b   :  { %3955 = vmatmul.msk.f32.gmra.mxu3 %vm38_vm0, %v3597_v11  ;;  %v2610_v16 = vpop.f32.mrf.mxu0 }
 0x19c   :  { %v2288_v22 = vpop.f32.mrf.mxu2 }
 0x19d   :  { %v2289_v9 = vadd.f32 %v2288_v22, %v2128_v2 }
 0x19e   :  { %v2130_v8 = vpop.f32.mrf.mxu1  ;;  %v2449_v41 = vpop.f32.mrf.mxu3  ;;  %4003 = vmatmul.msk.f32.gmra.mxu0 %vm38_vm0, %v3621_v33 }
 0x19f   :  { %v2450_v62 = vadd.f32 %v2449_v41, %v2289_v9  ;;  %v2131_v49 = vadd.f32 %v2130_v8, %v1970_v51  ;;  %v3599_v9 = vld [vmem:[%s6735_s0 + $0x189] sm:$0xff] }
 0x1a1   :  { %v5564_v23 = vadd.f32 %v2610_v16, %v2450_v62  ;;  %3860 = vmatmul.msk.f32.gmra.mxu1 %vm38_vm0, %v3620_v6  ;;  %3908 = vmatmul.msk.f32.gmra.mxu2 %vm38_vm0, %v3574_v50  ;;  %v3575_v6 = vld [vmem:[%s6735_s0 + $0x17b] sm:$0xff]  ;;  %v3623_v62 = vld [vmem:[%s6735_s0 + $0x18a] sm:$0xff] }
 0x1a3   :  { %3956 = vmatmul.msk.f32.gmra.mxu3 %vm38_vm0, %v3598_v19  ;;  %v2613_v11 = vpop.f32.mrf.mxu0 }
 0x1a4   :  { %v2291_v2 = vpop.f32.mrf.mxu2 }
 0x1a5   :  { %v2292_v43 = vadd.f32 %v2291_v2, %v2131_v49  ;;  %v1976_v2 = vadd.f32 %v5144_v21, %v5085_v15  ;;  %v1857_v15 = vld [vmem:[%s6734_s1 + $0x388] sm:$0xff] }
 0x1a6   :  { %v2133_v16 = vpop.f32.mrf.mxu1  ;;  %v2452_v28 = vpop.f32.mrf.mxu3  ;;  %4004 = vmatmul.msk.f32.gmra.mxu0 %vm38_vm0, %v3622_v37  ;;  %3033 = vmatpush.msra.mxu3 %v1857_v15 }
 0x1a7   :  { %v2453_v22 = vadd.f32 %v2452_v28, %v2292_v43  ;;  %v2134_v41 = vadd.f32 %v2133_v16, %v1973_v24  ;;  %v1841_v16 = vld [vmem:[%s6734_s1 + $0x308] sm:$0xff] }
 0x1a8   :  { %2872 = vmatpush.msra.mxu2 %v1841_v16  ;;  %v1825_v24 = vld [vmem:[%s6734_s1 + $0x288] sm:$0xff] }
 0x1a9   :  { %v5584_v8 = vadd.f32 %v2613_v11, %v2453_v22  ;;  %3861 = vmatmul.msk.f32.gmra.mxu1 %vm38_vm0, %v3621_v33  ;;  %3909 = vmatmul.msk.f32.gmra.mxu2 %vm38_vm0, %v3575_v6  ;;  %v3600_v11 = vld [vmem:[%s6735_s0 + $0x191] sm:$0xff]  ;;  %v1873_v16 = vld [vmem:[%s6734_s1 + $0x408] sm:$0xff] }
 0x1aa   :  { %v3624_v22 = vld [vmem:[%s6735_s0 + $0x192] sm:$0xff]  ;;  %2711 = vmatpush.msra.mxu1 %v1825_v24  ;;  %3194 = vmatpush.msra.mxu0 %v1873_v16  ;;  %v1982_v24 = vadd.f32 %v5144_v21, %v4876_v36  ;;  %v3579_v36 = vld [vmem:[%s6735_s0 + $0x19b] sm:$0xff] }
 0x1ab   :  { %3957 = vmatmul.msk.f32.gmra.mxu3 %vm38_vm0, %v3599_v9  ;;  %v2616_v50 = vpop.f32.mrf.mxu0 }
 0x1ac   :  { %v2294_v19 = vpop.f32.mrf.mxu2 }
 0x1ad   :  { %v2295_v51 = vadd.f32 %v2294_v19, %v2134_v41  ;;  %v3577_v19 = vld [vmem:[%s6735_s0 + $0x18b] sm:$0xff] }
 0x1ae   :  { %v2136_v49 = vpop.f32.mrf.mxu1  ;;  %v2455_v46 = vpop.f32.mrf.mxu3  ;;  %4005 = vmatmul.msk.f32.gmra.mxu0 %vm38_vm0, %v3623_v62 }
 0x1af   :  { %v2456_v33 = vadd.f32 %v2455_v46, %v2295_v51  ;;  %v2137_v28 = vadd.f32 %v2136_v49, %v1976_v2  ;;  %v3601_v49 = vld [vmem:[%s6735_s0 + $0x199] sm:$0xff]  ;;  %v1979_v46 = vadd.f32 %v5144_v21, %v5113_v35 }
 0x1b0   :  { %v3625_v2 = vld [vmem:[%s6735_s0 + $0x19a] sm:$0xff] }
 0x1b1   :  { %v5601_v43 = vadd.f32 %v2616_v50, %v2456_v33  ;;  %3862 = vmatmul.msk.f32.gmra.mxu1 %vm38_vm0, %v3622_v37  ;;  %3910 = vmatmul.msk.f32.gmra.mxu2 %vm38_vm0, %v3576_v61 }
 0x1b3   :  { %3958 = vmatmul.msk.f32.gmra.mxu3 %vm38_vm0, %v3600_v11  ;;  %v2619_v6 = vpop.f32.mrf.mxu0 }
 0x1b4   :  { %v2297_v37 = vpop.f32.mrf.mxu2 }
 0x1b5   :  { %v2298_v9 = vadd.f32 %v2297_v37, %v2137_v28 }
 0x1b6   :  { %v2139_v41 = vpop.f32.mrf.mxu1  ;;  %v2458_v50 = vpop.f32.mrf.mxu3  ;;  %4006 = vmatmul.msk.f32.gmra.mxu0 %vm38_vm0, %v3624_v22 }
 0x1b7   :  { %v2459_v51 = vadd.f32 %v2458_v50, %v2298_v9  ;;  %v2140_v33 = vadd.f32 %v2139_v41, %v1979_v46  ;;  %v3602_v9 = vld [vmem:[%s6735_s0 + $0x1a1] sm:$0xff] }
 0x1b9   :  { %v5627_v61 = vadd.f32 %v2619_v6, %v2459_v51  ;;  %3863 = vmatmul.msk.f32.gmra.mxu1 %vm38_vm0, %v3623_v62  ;;  %3911 = vmatmul.msk.f32.gmra.mxu2 %vm38_vm0, %v3577_v19  ;;  %v3578_v62 = vld [vmem:[%s6735_s0 + $0x193] sm:$0xff]  ;;  %v3626_v51 = vld [vmem:[%s6735_s0 + $0x1a2] sm:$0xff] }
 0x1bb   :  { %3959 = vmatmul.msk.f32.gmra.mxu3 %vm38_vm0, %v3601_v49  ;;  %v2622_v11 = vpop.f32.mrf.mxu0 }
 0x1bc   :  { %v2300_v28 = vpop.f32.mrf.mxu2 }
 0x1bd   :  { %v2301_v35 = vadd.f32 %v2300_v28, %v2140_v33  ;;  %v1985_v28 = vadd.f32 %v5144_v21, %v4901_v45  ;;  %v1856_v45 = vld [vmem:[%s6734_s1 + $0x380] sm:$0xff] }
 0x1be   :  { %v2142_v6 = vpop.f32.mrf.mxu1  ;;  %v2461_v15 = vpop.f32.mrf.mxu3  ;;  %4007 = vmatmul.msk.f32.gmra.mxu0 %vm38_vm0, %v3625_v2  ;;  %3034 = vmatpush.msra.mxu3 %v1856_v45 }
 0x1bf   :  { %v2462_v37 = vadd.f32 %v2461_v15, %v2301_v35  ;;  %v2143_v50 = vadd.f32 %v2142_v6, %v1982_v24  ;;  %v1840_v6 = vld [vmem:[%s6734_s1 + $0x300] sm:$0xff] }
 0x1c0   :  { %2873 = vmatpush.msra.mxu2 %v1840_v6  ;;  %v1824_v24 = vld [vmem:[%s6734_s1 + $0x280] sm:$0xff] }
 0x1c1   :  { %v5647_v41 = vadd.f32 %v2622_v11, %v2462_v37  ;;  %3864 = vmatmul.msk.f32.gmra.mxu1 %vm38_vm0, %v3624_v22  ;;  %3912 = vmatmul.msk.f32.gmra.mxu2 %vm38_vm0, %v3578_v62  ;;  %v3603_v11 = vld [vmem:[%s6735_s0 + $0x1a9] sm:$0xff]  ;;  %v1872_v6 = vld [vmem:[%s6734_s1 + $0x400] sm:$0xff] }
 0x1c2   :  { %v3627_v37 = vld [vmem:[%s6735_s0 + $0x1aa] sm:$0xff]  ;;  %2712 = vmatpush.msra.mxu1 %v1824_v24  ;;  %3195 = vmatpush.msra.mxu0 %v1872_v6  ;;  %v1991_v24 = vadd.f32 %v5144_v21, %v4945_v0  ;;  %v3582_v0 = vld [vmem:[%s6735_s0 + $0x1b3] sm:$0xff] }
 0x1c3   :  { %3960 = vmatmul.msk.f32.gmra.mxu3 %vm38_vm0, %v3602_v9  ;;  %v2625_v19 = vpop.f32.mrf.mxu0 }
 0x1c4   :  { %v2303_v49 = vpop.f32.mrf.mxu2 }
 0x1c5   :  { %v2304_v46 = vadd.f32 %v2303_v49, %v2143_v50  ;;  %v3580_v49 = vld [vmem:[%s6735_s0 + $0x1a3] sm:$0xff] }
 0x1c6   :  { %v2145_v33 = vpop.f32.mrf.mxu1  ;;  %v2464_v16 = vpop.f32.mrf.mxu3  ;;  %4008 = vmatmul.msk.f32.gmra.mxu0 %vm38_vm0, %v3626_v51 }
 0x1c7   :  { %v2465_v22 = vadd.f32 %v2464_v16, %v2304_v46  ;;  %v2146_v15 = vadd.f32 %v2145_v33, %v1985_v28  ;;  %v3604_v33 = vld [vmem:[%s6735_s0 + $0x1b1] sm:$0xff]  ;;  %v1988_v16 = vadd.f32 %v5144_v21, %v4926_v55 }
 0x1c8   :  { %v3628_v28 = vld [vmem:[%s6735_s0 + $0x1b2] sm:$0xff] }
 0x1c9   :  { %v5664_v35 = vadd.f32 %v2625_v19, %v2465_v22  ;;  %3865 = vmatmul.msk.f32.gmra.mxu1 %vm38_vm0, %v3625_v2  ;;  %3913 = vmatmul.msk.f32.gmra.mxu2 %vm38_vm0, %v3579_v36 }
 0x1cb   :  { %3961 = vmatmul.msk.f32.gmra.mxu3 %vm38_vm0, %v3603_v11  ;;  %v2628_v62 = vpop.f32.mrf.mxu0 }
 0x1cc   :  { %v2306_v2 = vpop.f32.mrf.mxu2 }
 0x1cd   :  { %v2307_v9 = vadd.f32 %v2306_v2, %v2146_v15 }
 0x1ce   :  { %v2148_v50 = vpop.f32.mrf.mxu1  ;;  %v2467_v19 = vpop.f32.mrf.mxu3  ;;  %4009 = vmatmul.msk.f32.gmra.mxu0 %vm38_vm0, %v3627_v37 }
 0x1cf   :  { %v2468_v46 = vadd.f32 %v2467_v19, %v2307_v9  ;;  %v2149_v22 = vadd.f32 %v2148_v50, %v1988_v16  ;;  %v3605_v9 = vld [vmem:[%s6735_s0 + $0x1b9] sm:$0xff] }
 0x1d1   :  { %v5690_v36 = vadd.f32 %v2628_v62, %v2468_v46  ;;  %3866 = vmatmul.msk.f32.gmra.mxu1 %vm38_vm0, %v3626_v51  ;;  %3914 = vmatmul.msk.f32.gmra.mxu2 %vm38_vm0, %v3580_v49  ;;  %v3581_v51 = vld [vmem:[%s6735_s0 + $0x1ab] sm:$0xff]  ;;  %v3629_v46 = vld [vmem:[%s6735_s0 + $0x1ba] sm:$0xff] }
 0x1d3   :  { %3962 = vmatmul.msk.f32.gmra.mxu3 %vm38_vm0, %v3604_v33  ;;  %v2631_v11 = vpop.f32.mrf.mxu0 }
 0x1d4   :  { %v2309_v15 = vpop.f32.mrf.mxu2 }
 0x1d5   :  { %v2310_v55 = vadd.f32 %v2309_v15, %v2149_v22 }
 0x1d6   :  { %v2151_v62 = vpop.f32.mrf.mxu1  ;;  %v2470_v45 = vpop.f32.mrf.mxu3  ;;  %4010 = vmatmul.msk.f32.gmra.mxu0 %vm38_vm0, %v3628_v28 }
 0x1d7   :  { %v2471_v2 = vadd.f32 %v2470_v45, %v2310_v55  ;;  %v2152_v19 = vadd.f32 %v2151_v62, %v1991_v24 }
 0x1d9   :  { %v5710_v50 = vadd.f32 %v2631_v11, %v2471_v2  ;;  %3867 = vmatmul.msk.f32.gmra.mxu1 %vm38_vm0, %v3627_v37  ;;  %3915 = vmatmul.msk.f32.gmra.mxu2 %vm38_vm0, %v3581_v51  ;;  %v3606_v37 = vld [vmem:[%s6735_s0 + $0x1c1] sm:$0xff]  ;;  %v5728_v11 = vld [vmem:[%s6736_s2] ss:$0 sm:$0xff] }
 0x1da   :  { %v1994_v15 = vadd.f32 %v5728_v11, %v4970_v13  ;;  %v3630_v51 = vld [vmem:[%s6735_s0 + $0x1c2] sm:$0xff] }
 0x1db   :  { %3963 = vmatmul.msk.f32.gmra.mxu3 %vm38_vm0, %v3605_v9  ;;  %v2634_v49 = vpop.f32.mrf.mxu0  ;;  %v3583_v13 = vld [vmem:[%s6735_s0 + $0x1bb] sm:$0xff] }
 0x1dc   :  { %v2312_v33 = vpop.f32.mrf.mxu2 }
 0x1dd   :  { %v2313_v16 = vadd.f32 %v2312_v33, %v2152_v19  ;;  %v1997_v33 = vadd.f32 %v5728_v11, %v4995_v56  ;;  %v3584_v56 = vld [vmem:[%s6735_s0 + $0x1c3] sm:$0xff] }
 0x1de   :  { %v2154_v22 = vpop.f32.mrf.mxu1  ;;  %v2473_v6 = vpop.f32.mrf.mxu3  ;;  %4011 = vmatmul.msk.f32.gmra.mxu0 %vm38_vm0, %v3629_v46 }
 0x1df   :  { %v2474_v21 = vadd.f32 %v2473_v6, %v2313_v16  ;;  %v2155_v62 = vadd.f32 %v2154_v22, %v1994_v15 }
 0x1e1   :  { %v5732_v55 = vadd.f32 %v2634_v49, %v2474_v21  ;;  %3868 = vmatmul.msk.f32.gmra.mxu1 %vm38_vm0, %v3628_v28  ;;  %3916 = vmatmul.msk.f32.gmra.mxu2 %vm38_vm0, %v3582_v0  ;;  %v3607_v49 = vld [vmem:[%s6735_s0 + $0x1c9] sm:$0xff] }
 0x1e2   :  { %v3631_v0 = vld [vmem:[%s6735_s0 + $0x1ca] sm:$0xff] }
 0x1e3   :  { %3964 = vmatmul.msk.f32.gmra.mxu3 %vm38_vm0, %v3606_v37  ;;  %v2637_v45 = vpop.f32.mrf.mxu0 }
 0x1e4   :  { %v2315_v2 = vpop.f32.mrf.mxu2 }
 0x1e5   :  { %v2316_v9 = vadd.f32 %v2315_v2, %v2155_v62  ;;  %v2000_v2 = vadd.f32 %v5728_v11, %v5014_v27  ;;  %v3585_v27 = vld [vmem:[%s6735_s0 + $0x1cb] sm:$0xff] }
 0x1e6   :  { %v2157_v24 = vpop.f32.mrf.mxu1  ;;  %v2476_v19 = vpop.f32.mrf.mxu3  ;;  %4012 = vmatmul.msk.f32.gmra.mxu0 %vm38_vm0, %v3630_v51 }
 0x1e7   :  { %v2477_v28 = vadd.f32 %v2476_v19, %v2316_v9  ;;  %v2158_v22 = vadd.f32 %v2157_v24, %v1997_v33 }
 0x1e9   :  { %v5749_v16 = vadd.f32 %v2637_v45, %v2477_v28  ;;  %3869 = vmatmul.msk.f32.gmra.mxu1 %vm38_vm0, %v3629_v46  ;;  %3917 = vmatmul.msk.f32.gmra.mxu2 %vm38_vm0, %v3583_v13  ;;  %v3608_v45 = vld [vmem:[%s6735_s0 + $0x1d1] sm:$0xff] }
 0x1ea   :  { %v3632_v13 = vld [vmem:[%s6735_s0 + $0x1d2] sm:$0xff] }
 0x1eb   :  { %3965 = vmatmul.msk.f32.gmra.mxu3 %vm38_vm0, %v3607_v49  ;;  %v2640_v6 = vpop.f32.mrf.mxu0 }
 0x1ec   :  { %v2318_v21 = vpop.f32.mrf.mxu2 }
 0x1ed   :  { %v2319_v37 = vadd.f32 %v2318_v21, %v2158_v22  ;;  %v2003_v21 = vadd.f32 %v5728_v11, %v5039_v34  ;;  %v375_v34 = vld [vmem:[%s6735_s0 + $0x23] sm:$0xff] }
 0x1ee   :  { %v2160_v15 = vpop.f32.mrf.mxu1  ;;  %v2479_v62 = vpop.f32.mrf.mxu3  ;;  %4013 = vmatmul.msk.f32.gmra.mxu0 %vm38_vm0, %v3631_v0 }
 0x1ef   :  { %v2480_v46 = vadd.f32 %v2479_v62, %v2319_v37  ;;  %v2161_v24 = vadd.f32 %v2160_v15, %v2000_v2 }
 0x1f1   :  { %v5766_v9 = vadd.f32 %v2640_v6, %v2480_v46  ;;  %3870 = vmatmul.msk.f32.gmra.mxu1 %vm38_vm0, %v3630_v51  ;;  %3918 = vmatmul.msk.f32.gmra.mxu2 %vm38_vm0, %v3584_v56  ;;  %v3609_v6 = vld [vmem:[%s6735_s0 + $0x1d9] sm:$0xff] }
 0x1f2   :  { %v3633_v56 = vld [vmem:[%s6735_s0 + $0x1da] sm:$0xff] }
 0x1f3   :  { %3966 = vmatmul.msk.f32.gmra.mxu3 %vm38_vm0, %v3608_v45  ;;  %v2643_v19 = vpop.f32.mrf.mxu0 }
 0x1f4   :  { %v2321_v28 = vpop.f32.mrf.mxu2 }
 0x1f5   :  { %v2322_v49 = vadd.f32 %v2321_v28, %v2161_v24  ;;  %v2006_v28 = vadd.f32 %v5728_v11, %v5064_v54  ;;  %v376_v54 = vld [vmem:[%s6735_s0 + $0x2b] sm:$0xff] }
 0x1f6   :  { %v2163_v33 = vpop.f32.mrf.mxu1  ;;  %v2482_v22 = vpop.f32.mrf.mxu3  ;;  %4014 = vmatmul.msk.f32.gmra.mxu0 %vm38_vm0, %v3632_v13  ;;  %v519_v13 = vld [vmem:[%s6735_s0 + $0x32] sm:$0xff] }
 0x1f7   :  { %v2483_v51 = vadd.f32 %v2482_v22, %v2322_v49  ;;  %v2164_v15 = vadd.f32 %v2163_v33, %v2003_v21 }
 0x1f9   :  { %v5783_v37 = vadd.f32 %v2643_v19, %v2483_v51  ;;  %3871 = vmatmul.msk.f32.gmra.mxu1 %vm38_vm0, %v3631_v0  ;;  %3919 = vmatmul.msk.f32.gmra.mxu2 %vm38_vm0, %v3585_v27  ;;  %v447_v0 = vld [vmem:[%s6735_s0 + $0x31] sm:$0xff] }
 0x1fa   :  { %v591_v27 = vld [vmem:[%s6735_s0 + $0x33] sm:$0xff] }
 0x1fb   :  { %3967 = vmatmul.msk.f32.gmra.mxu3 %vm38_vm0, %v3609_v6  ;;  %v2646_v62 = vpop.f32.mrf.mxu0 }
 0x1fc   :  { %v2324_v46 = vpop.f32.mrf.mxu2 }
 0x1fd   :  { %v2325_v45 = vadd.f32 %v2324_v46, %v2164_v15  ;;  %v520_v46 = vld [vmem:[%s6735_s0 + $0x3a] sm:$0xff] }
 0x1fe   :  { %v2166_v2 = vpop.f32.mrf.mxu1  ;;  %v2485_v24 = vpop.f32.mrf.mxu3  ;;  %4015 = vmatmul.msk.f32.gmra.mxu0 %vm38_vm0, %v3633_v56 }
 0x1ff   :  { %v2486_v19 = vadd.f32 %v2485_v24, %v2325_v45  ;;  %v2167_v33 = vadd.f32 %v2166_v2, %v2006_v28  ;;  %v2009_v45 = vadd.f32 %v5728_v11, %v5083_v12  ;;  %v449_v12 = vld [vmem:[%s6735_s0 + $0x41] sm:$0xff] }
 0x201   :  { %v5803_v49 = vadd.f32 %v2646_v62, %v2486_v19  ;;  %4016 = vmatmul.msk.f32.vlgmr.msra.gmra.mxu1 %vm38_vm0, %v375_v34  ;;  %4064 = vmatmul.msk.f32.vlgmr.msra.gmra.mxu2 %vm38_vm0, %v447_v0  ;;  %v448_v62 = vld [vmem:[%s6735_s0 + $0x39] sm:$0xff] }
 0x202   :  { %v592_v0 = vld [vmem:[%s6735_s0 + $0x3b] sm:$0xff] }
 0x203   :  { %4112 = vmatmul.msk.f32.vlgmr.msra.gmra.mxu3 %vm38_vm0, %v519_v13  ;;  %v2649_v22 = vpop.f32.mrf.mxu0 }
 0x204   :  { %v2327_v51 = vpop.f32.mrf.mxu2 }
 0x205   :  { %v2328_v6 = vadd.f32 %v2327_v51, %v2167_v33  ;;  %v521_v51 = vld [vmem:[%s6735_s0 + $0x42] sm:$0xff] }
 0x206   :  { %v2169_v21 = vpop.f32.mrf.mxu1  ;;  %v2488_v15 = vpop.f32.mrf.mxu3  ;;  %4160 = vmatmul.msk.f32.vlgmr.msra.gmra.mxu0 %vm38_vm0, %v591_v27 }
 0x207   :  { %v2489_v56 = vadd.f32 %v2488_v15, %v2328_v6  ;;  %v2170_v24 = vadd.f32 %v2169_v21, %v2009_v45  ;;  %v2012_v6 = vadd.f32 %v5728_v11, %v5108_v31  ;;  %v450_v31 = vld [vmem:[%s6735_s0 + $0x49] sm:$0xff] }
 0x209   :  { %v5823_v2 = vadd.f32 %v2649_v22, %v2489_v56  ;;  %4017 = vmatmul.msk.f32.gmra.mxu1 %vm38_vm0, %v376_v54  ;;  %4065 = vmatmul.msk.f32.gmra.mxu2 %vm38_vm0, %v448_v62  ;;  %v593_v62 = vld [vmem:[%s6735_s0 + $0x43] sm:$0xff] }
 0x20b   :  { %4113 = vmatmul.msk.f32.gmra.mxu3 %vm38_vm0, %v520_v46  ;;  %v2652_v34 = vpop.f32.mrf.mxu0 }
 0x20c   :  { %v2330_v19 = vpop.f32.mrf.mxu2 }
 0x20d   :  { %v2331_v13 = vadd.f32 %v2330_v19, %v2170_v24  ;;  %v2015_v19 = vadd.f32 %v5728_v11, %v5133_v53  ;;  %v451_v53 = vld [vmem:[%s6735_s0 + $0x51] sm:$0xff] }
 0x20e   :  { %v2172_v28 = vpop.f32.mrf.mxu1  ;;  %v2491_v33 = vpop.f32.mrf.mxu3  ;;  %4161 = vmatmul.msk.f32.gmra.mxu0 %vm38_vm0, %v592_v0 }
 0x20f   :  { %v2492_v22 = vadd.f32 %v2491_v33, %v2331_v13  ;;  %v2173_v15 = vadd.f32 %v2172_v28, %v2012_v6 }
 0x211   :  { %v5840_v21 = vadd.f32 %v2652_v34, %v2492_v22  ;;  %4018 = vmatmul.msk.f32.gmra.mxu1 %vm38_vm0, %v591_v27  ;;  %4066 = vmatmul.msk.f32.gmra.mxu2 %vm38_vm0, %v449_v12  ;;  %v522_v34 = vld [vmem:[%s6735_s0 + $0x4a] sm:$0xff] }
 0x212   :  { %v594_v12 = vld [vmem:[%s6735_s0 + $0x4b] sm:$0xff] }
 0x213   :  { %4114 = vmatmul.msk.f32.gmra.mxu3 %vm38_vm0, %v521_v51  ;;  %v2655_v54 = vpop.f32.mrf.mxu0 }
 0x214   :  { %v2333_v56 = vpop.f32.mrf.mxu2 }
 0x215   :  { %v2334_v46 = vadd.f32 %v2333_v56, %v2173_v15  ;;  %v2018_v56 = vadd.f32 %v5728_v11, %v4880_v38  ;;  %v452_v38 = vld [vmem:[%s6735_s0 + $0x59] sm:$0xff] }
 0x216   :  { %v2175_v45 = vpop.f32.mrf.mxu1  ;;  %v2494_v24 = vpop.f32.mrf.mxu3  ;;  %4162 = vmatmul.msk.f32.gmra.mxu0 %vm38_vm0, %v593_v62 }
 0x217   :  { %v2495_v27 = vadd.f32 %v2494_v24, %v2334_v46  ;;  %v2176_v28 = vadd.f32 %v2175_v45, %v2015_v19 }
 0x219   :  { %v5857_v13 = vadd.f32 %v2655_v54, %v2495_v27  ;;  %4019 = vmatmul.msk.f32.gmra.mxu1 %vm38_vm0, %v592_v0  ;;  %4067 = vmatmul.msk.f32.gmra.mxu2 %vm38_vm0, %v450_v31  ;;  %v523_v54 = vld [vmem:[%s6735_s0 + $0x52] sm:$0xff] }
 0x21a   :  { %v595_v31 = vld [vmem:[%s6735_s0 + $0x53] sm:$0xff] }
 0x21b   :  { %4115 = vmatmul.msk.f32.gmra.mxu3 %vm38_vm0, %v522_v34  ;;  %v2658_v33 = vpop.f32.mrf.mxu0 }
 0x21c   :  { %v2336_v22 = vpop.f32.mrf.mxu2 }
 0x21d   :  { %v2337_v51 = vadd.f32 %v2336_v22, %v2176_v28  ;;  %v2021_v22 = vadd.f32 %v5728_v11, %v4908_v44  ;;  %v453_v44 = vld [vmem:[%s6735_s0 + $0x61] sm:$0xff] }
 0x21e   :  { %v2178_v6 = vpop.f32.mrf.mxu1  ;;  %v2497_v15 = vpop.f32.mrf.mxu3  ;;  %4163 = vmatmul.msk.f32.gmra.mxu0 %vm38_vm0, %v594_v12 }
 0x21f   :  { %v2498_v0 = vadd.f32 %v2497_v15, %v2337_v51  ;;  %v2179_v45 = vadd.f32 %v2178_v6, %v2018_v56 }
 0x221   :  { %v5874_v46 = vadd.f32 %v2658_v33, %v2498_v0  ;;  %4020 = vmatmul.msk.f32.gmra.mxu1 %vm38_vm0, %v593_v62  ;;  %4068 = vmatmul.msk.f32.gmra.mxu2 %vm38_vm0, %v451_v53  ;;  %v524_v33 = vld [vmem:[%s6735_s0 + $0x5a] sm:$0xff] }
 0x222   :  { %v596_v53 = vld [vmem:[%s6735_s0 + $0x5b] sm:$0xff] }
 0x223   :  { %4116 = vmatmul.msk.f32.gmra.mxu3 %vm38_vm0, %v523_v54  ;;  %v2661_v24 = vpop.f32.mrf.mxu0 }
 0x224   :  { %v2339_v27 = vpop.f32.mrf.mxu2 }
 0x225   :  { %v2340_v34 = vadd.f32 %v2339_v27, %v2179_v45  ;;  %v2024_v27 = vadd.f32 %v5728_v11, %v4930_v58  ;;  %v454_v58 = vld [vmem:[%s6735_s0 + $0x69] sm:$0xff] }
 0x226   :  { %v2181_v19 = vpop.f32.mrf.mxu1  ;;  %v2500_v28 = vpop.f32.mrf.mxu3  ;;  %4164 = vmatmul.msk.f32.gmra.mxu0 %vm38_vm0, %v595_v31 }
 0x227   :  { %v2501_v62 = vadd.f32 %v2500_v28, %v2340_v34  ;;  %v2182_v6 = vadd.f32 %v2181_v19, %v2021_v22 }
 0x229   :  { %v5891_v51 = vadd.f32 %v2661_v24, %v2501_v62  ;;  %4021 = vmatmul.msk.f32.gmra.mxu1 %vm38_vm0, %v594_v12  ;;  %4069 = vmatmul.msk.f32.gmra.mxu2 %vm38_vm0, %v452_v38  ;;  %v525_v24 = vld [vmem:[%s6735_s0 + $0x62] sm:$0xff] }
 0x22a   :  { %v597_v38 = vld [vmem:[%s6735_s0 + $0x63] sm:$0xff] }
 0x22b   :  { %4117 = vmatmul.msk.f32.gmra.mxu3 %vm38_vm0, %v524_v33  ;;  %v2664_v15 = vpop.f32.mrf.mxu0 }
 0x22c   :  { %v2342_v0 = vpop.f32.mrf.mxu2 }
 0x22d   :  { %v2343_v54 = vadd.f32 %v2342_v0, %v2182_v6  ;;  %v2027_v0 = vadd.f32 %v5728_v11, %v4949_v3  ;;  %v455_v3 = vld [vmem:[%s6735_s0 + $0x71] sm:$0xff] }
 0x22e   :  { %v2184_v56 = vpop.f32.mrf.mxu1  ;;  %v2503_v45 = vpop.f32.mrf.mxu3  ;;  %4165 = vmatmul.msk.f32.gmra.mxu0 %vm38_vm0, %v596_v53 }
 0x22f   :  { %v2504_v12 = vadd.f32 %v2503_v45, %v2343_v54  ;;  %v2185_v19 = vadd.f32 %v2184_v56, %v2024_v27 }
 0x231   :  { %v5908_v34 = vadd.f32 %v2664_v15, %v2504_v12  ;;  %4022 = vmatmul.msk.f32.gmra.mxu1 %vm38_vm0, %v595_v31  ;;  %4070 = vmatmul.msk.f32.gmra.mxu2 %vm38_vm0, %v453_v44  ;;  %v526_v15 = vld [vmem:[%s6735_s0 + $0x6a] sm:$0xff] }
 0x232   :  { %v598_v44 = vld [vmem:[%s6735_s0 + $0x6b] sm:$0xff] }
 0x233   :  { %4118 = vmatmul.msk.f32.gmra.mxu3 %vm38_vm0, %v525_v24  ;;  %v2667_v28 = vpop.f32.mrf.mxu0 }
 0x234   :  { %v2345_v62 = vpop.f32.mrf.mxu2 }
 0x235   :  { %v2346_v33 = vadd.f32 %v2345_v62, %v2185_v19  ;;  %v2030_v62 = vadd.f32 %v5728_v11, %v4977_v5  ;;  %v456_v5 = vld [vmem:[%s6735_s0 + $0x79] sm:$0xff] }
 0x236   :  { %v2187_v22 = vpop.f32.mrf.mxu1  ;;  %v2506_v6 = vpop.f32.mrf.mxu3  ;;  %4166 = vmatmul.msk.f32.gmra.mxu0 %vm38_vm0, %v597_v38 }
 0x237   :  { %v2507_v31 = vadd.f32 %v2506_v6, %v2346_v33  ;;  %v2188_v56 = vadd.f32 %v2187_v22, %v2027_v0 }
 0x239   :  { %v5925_v54 = vadd.f32 %v2667_v28, %v2507_v31  ;;  %4023 = vmatmul.msk.f32.gmra.mxu1 %vm38_vm0, %v596_v53  ;;  %4071 = vmatmul.msk.f32.gmra.mxu2 %vm38_vm0, %v454_v58  ;;  %v527_v28 = vld [vmem:[%s6735_s0 + $0x72] sm:$0xff] }
 0x23a   :  { %v599_v58 = vld [vmem:[%s6735_s0 + $0x73] sm:$0xff] }
 0x23b   :  { %4119 = vmatmul.msk.f32.gmra.mxu3 %vm38_vm0, %v526_v15  ;;  %v2670_v45 = vpop.f32.mrf.mxu0 }
 0x23c   :  { %v2348_v12 = vpop.f32.mrf.mxu2 }
 0x23d   :  { %v2349_v24 = vadd.f32 %v2348_v12, %v2188_v56  ;;  %v2033_v12 = vadd.f32 %v5728_v11, %v4999_v25  ;;  %v457_v25 = vld [vmem:[%s6735_s0 + $0x81] sm:$0xff] }
 0x23e   :  { %v2190_v27 = vpop.f32.mrf.mxu1  ;;  %v2509_v19 = vpop.f32.mrf.mxu3  ;;  %4167 = vmatmul.msk.f32.gmra.mxu0 %vm38_vm0, %v598_v44 }
 0x23f   :  { %v2510_v53 = vadd.f32 %v2509_v19, %v2349_v24  ;;  %v2191_v22 = vadd.f32 %v2190_v27, %v2030_v62 }
 0x241   :  { %v5942_v33 = vadd.f32 %v2670_v45, %v2510_v53  ;;  %4024 = vmatmul.msk.f32.gmra.mxu1 %vm38_vm0, %v597_v38  ;;  %4072 = vmatmul.msk.f32.gmra.mxu2 %vm38_vm0, %v455_v3  ;;  %v528_v45 = vld [vmem:[%s6735_s0 + $0x7a] sm:$0xff] }
 0x242   :  { %v600_v3 = vld [vmem:[%s6735_s0 + $0x7b] sm:$0xff] }
 0x243   :  { %4120 = vmatmul.msk.f32.gmra.mxu3 %vm38_vm0, %v527_v28  ;;  %v2673_v6 = vpop.f32.mrf.mxu0 }
 0x244   :  { %v2351_v31 = vpop.f32.mrf.mxu2 }
 0x245   :  { %v2352_v15 = vadd.f32 %v2351_v31, %v2191_v22  ;;  %v2036_v31 = vadd.f32 %v5728_v11, %v5018_v14  ;;  %v458_v14 = vld [vmem:[%s6735_s0 + $0x89] sm:$0xff] }
 0x246   :  { %v2193_v0 = vpop.f32.mrf.mxu1  ;;  %v2512_v56 = vpop.f32.mrf.mxu3  ;;  %4168 = vmatmul.msk.f32.gmra.mxu0 %vm38_vm0, %v599_v58 }
 0x247   :  { %v2513_v38 = vadd.f32 %v2512_v56, %v2352_v15  ;;  %v2194_v27 = vadd.f32 %v2193_v0, %v2033_v12 }
 0x249   :  { %v5959_v24 = vadd.f32 %v2673_v6, %v2513_v38  ;;  %4025 = vmatmul.msk.f32.gmra.mxu1 %vm38_vm0, %v598_v44  ;;  %4073 = vmatmul.msk.f32.gmra.mxu2 %vm38_vm0, %v456_v5  ;;  %v529_v6 = vld [vmem:[%s6735_s0 + $0x82] sm:$0xff] }
 0x24a   :  { %v601_v5 = vld [vmem:[%s6735_s0 + $0x83] sm:$0xff] }
 0x24b   :  { %4121 = vmatmul.msk.f32.gmra.mxu3 %vm38_vm0, %v528_v45  ;;  %v2676_v19 = vpop.f32.mrf.mxu0 }
 0x24c   :  { %v2354_v53 = vpop.f32.mrf.mxu2 }
 0x24d   :  { %v2355_v28 = vadd.f32 %v2354_v53, %v2194_v27  ;;  %v2039_v53 = vadd.f32 %v5728_v11, %v5046_v30  ;;  %v459_v30 = vld [vmem:[%s6735_s0 + $0x91] sm:$0xff] }
 0x24e   :  { %v2196_v62 = vpop.f32.mrf.mxu1  ;;  %v2515_v22 = vpop.f32.mrf.mxu3  ;;  %4169 = vmatmul.msk.f32.gmra.mxu0 %vm38_vm0, %v600_v3 }
 0x24f   :  { %v2516_v44 = vadd.f32 %v2515_v22, %v2355_v28  ;;  %v2197_v0 = vadd.f32 %v2196_v62, %v2036_v31 }
 0x251   :  { %v5976_v15 = vadd.f32 %v2676_v19, %v2516_v44  ;;  %4026 = vmatmul.msk.f32.gmra.mxu1 %vm38_vm0, %v599_v58  ;;  %4074 = vmatmul.msk.f32.gmra.mxu2 %vm38_vm0, %v457_v25  ;;  %v530_v19 = vld [vmem:[%s6735_s0 + $0x8a] sm:$0xff] }
 0x252   :  { %v602_v25 = vld [vmem:[%s6735_s0 + $0x8b] sm:$0xff] }
 0x253   :  { %4122 = vmatmul.msk.f32.gmra.mxu3 %vm38_vm0, %v529_v6  ;;  %v2679_v56 = vpop.f32.mrf.mxu0 }
 0x254   :  { %v2357_v38 = vpop.f32.mrf.mxu2 }
 0x255   :  { %v2358_v45 = vadd.f32 %v2357_v38, %v2197_v0  ;;  %v2042_v38 = vadd.f32 %v5728_v11, %v5068_v7  ;;  %v460_v7 = vld [vmem:[%s6735_s0 + $0x99] sm:$0xff] }
 0x256   :  { %v2199_v12 = vpop.f32.mrf.mxu1  ;;  %v2518_v27 = vpop.f32.mrf.mxu3  ;;  %4170 = vmatmul.msk.f32.gmra.mxu0 %vm38_vm0, %v601_v5 }
 0x257   :  { %v2519_v58 = vadd.f32 %v2518_v27, %v2358_v45  ;;  %v2200_v62 = vadd.f32 %v2199_v12, %v2039_v53 }
 0x259   :  { %v5993_v28 = vadd.f32 %v2679_v56, %v2519_v58  ;;  %4027 = vmatmul.msk.f32.gmra.mxu1 %vm38_vm0, %v600_v3  ;;  %4075 = vmatmul.msk.f32.gmra.mxu2 %vm38_vm0, %v458_v14  ;;  %v531_v56 = vld [vmem:[%s6735_s0 + $0x92] sm:$0xff] }
 0x25a   :  { %v603_v14 = vld [vmem:[%s6735_s0 + $0x93] sm:$0xff] }
 0x25b   :  { %4123 = vmatmul.msk.f32.gmra.mxu3 %vm38_vm0, %v530_v19  ;;  %v2682_v22 = vpop.f32.mrf.mxu0 }
 0x25c   :  { %v2360_v44 = vpop.f32.mrf.mxu2 }
 0x25d   :  { %v2361_v6 = vadd.f32 %v2360_v44, %v2200_v62  ;;  %v6741_v44 = vld [vmem:[#allocation3_spill] sm:$0xff] }
 0x25e   :  { %v2202_v31 = vpop.f32.mrf.mxu1  ;;  %v2521_v0 = vpop.f32.mrf.mxu3  ;;  %4171 = vmatmul.msk.f32.gmra.mxu0 %vm38_vm0, %v602_v25 }
 0x25f   :  { %v2522_v3 = vadd.f32 %v2521_v0, %v2361_v6  ;;  %v2203_v12 = vadd.f32 %v2202_v31, %v2042_v38  ;;  %v2045_v6 = vadd.f32 %v5728_v11, %v6741_v44  ;;  %v605_v44 = vld [vmem:[%s6735_s0 + $0xa3] sm:$0xff] }
 0x261   :  { %v6010_v45 = vadd.f32 %v2682_v22, %v2522_v3  ;;  %4028 = vmatmul.msk.f32.gmra.mxu1 %vm38_vm0, %v601_v5  ;;  %4076 = vmatmul.msk.f32.gmra.mxu2 %vm38_vm0, %v459_v30  ;;  %v532_v22 = vld [vmem:[%s6735_s0 + $0x9a] sm:$0xff] }
 0x262   :  { %v604_v3 = vld [vmem:[%s6735_s0 + $0x9b] sm:$0xff] }
 0x263   :  { %4124 = vmatmul.msk.f32.gmra.mxu3 %vm38_vm0, %v531_v56  ;;  %v2685_v27 = vpop.f32.mrf.mxu0 }
 0x264   :  { %v2363_v58 = vpop.f32.mrf.mxu2 }
 0x265   :  { %v2364_v19 = vadd.f32 %v2363_v58, %v2203_v12 }
 0x266   :  { %v2205_v53 = vpop.f32.mrf.mxu1  ;;  %v2524_v62 = vpop.f32.mrf.mxu3  ;;  %4172 = vmatmul.msk.f32.gmra.mxu0 %vm38_vm0, %v603_v14 }
 0x267   :  { %v2525_v5 = vadd.f32 %v2524_v62, %v2364_v19  ;;  %v2206_v0 = vadd.f32 %v2205_v53, %v2045_v6  ;;  %v533_v19 = vld [vmem:[%s6735_s0 + $0xa2] sm:$0xff] }
 0x268   :  { %v6742_v53 = vld [vmem:[#allocation4_spill] sm:$0xff] }
 0x269   :  { %v6027_v31 = vadd.f32 %v2685_v27, %v2525_v5  ;;  %4029 = vmatmul.msk.f32.gmra.mxu1 %vm38_vm0, %v602_v25  ;;  %4077 = vmatmul.msk.f32.gmra.mxu2 %vm38_vm0, %v460_v7  ;;  %v461_v27 = vld [vmem:[%s6735_s0 + $0xa1] sm:$0xff]  ;;  %v2048_v62 = vadd.f32 %v5728_v11, %v6742_v53 }
 0x26b   :  { %4125 = vmatmul.msk.f32.gmra.mxu3 %vm38_vm0, %v532_v22  ;;  %v2688_v30 = vpop.f32.mrf.mxu0 }
 0x26c   :  { %v2366_v56 = vpop.f32.mrf.mxu2 }
 0x26d   :  { %v2367_v38 = vadd.f32 %v2366_v56, %v2206_v0 }
 0x26e   :  { %v2208_v12 = vpop.f32.mrf.mxu1  ;;  %v2527_v58 = vpop.f32.mrf.mxu3  ;;  %4173 = vmatmul.msk.f32.gmra.mxu0 %vm38_vm0, %v604_v3 }
 0x26f   :  { %v2528_v25 = vadd.f32 %v2527_v58, %v2367_v38  ;;  %v2209_v5 = vadd.f32 %v2208_v12, %v2048_v62  ;;  %v534_v12 = vld [vmem:[%s6735_s0 + $0xaa] sm:$0xff] }
 0x270   :  { %v6743_v58 = vld [vmem:[#allocation5_spill] sm:$0xff] }
 0x271   :  { %v6044_v7 = vadd.f32 %v2688_v30, %v2528_v25  ;;  %4030 = vmatmul.msk.f32.gmra.mxu1 %vm38_vm0, %v603_v14  ;;  %4078 = vmatmul.msk.f32.gmra.mxu2 %vm38_vm0, %v461_v27  ;;  %v462_v30 = vld [vmem:[%s6735_s0 + $0xa9] sm:$0xff]  ;;  %v2051_v27 = vadd.f32 %v5728_v11, %v6743_v58  ;;  %v463_v11 = vld [vmem:[%s6735_s0 + $0xb1] sm:$0xff] }
 0x272   :  { %v606_v62 = vld [vmem:[%s6735_s0 + $0xab] sm:$0xff] }
 0x273   :  { %4126 = vmatmul.msk.f32.gmra.mxu3 %vm38_vm0, %v533_v19  ;;  %v2691_v22 = vpop.f32.mrf.mxu0 }
 0x274   :  { %v2369_v6 = vpop.f32.mrf.mxu2 }
 0x275   :  { %v2370_v0 = vadd.f32 %v2369_v6, %v2209_v5 }
 0x276   :  { %v2211_v56 = vpop.f32.mrf.mxu1  ;;  %v2530_v38 = vpop.f32.mrf.mxu3  ;;  %4174 = vmatmul.msk.f32.gmra.mxu0 %vm38_vm0, %v605_v44 }
 0x277   :  { %v2531_v14 = vadd.f32 %v2530_v38, %v2370_v0  ;;  %v2212_v19 = vadd.f32 %v2211_v56, %v2051_v27 }
 0x279   :  { %v6061_v25 = vadd.f32 %v2691_v22, %v2531_v14  ;;  %4031 = vmatmul.msk.f32.gmra.mxu1 %vm38_vm0, %v604_v3  ;;  %4079 = vmatmul.msk.f32.gmra.mxu2 %vm38_vm0, %v462_v30  ;;  %v535_v22 = vld [vmem:[%s6735_s0 + $0xb2] sm:$0xff] }
 0x27b   :  { %4127 = vmatmul.msk.f32.gmra.mxu3 %vm38_vm0, %v534_v12  ;;  %v2694_v53 = vpop.f32.mrf.mxu0  ;;  %v607_v12 = vld [vmem:[%s6735_s0 + $0xb3] sm:$0xff] }
 0x27c   :  { %v2372_v5 = vpop.f32.mrf.mxu2 }
 0x27d   :  { %v2373_v6 = vadd.f32 %v2372_v5, %v2212_v19 }
 0x27e   :  { %v2533_v0 = vpop.f32.mrf.mxu3  ;;  %v2714_v38 = vpop.f32.mrf.mxu1  ;;  %4175 = vmatmul.msk.f32.gmra.mxu0 %vm38_vm0, %v606_v62 }
 0x27f   :  { %v2534_v3 = vadd.f32 %v2533_v0, %v2373_v6  ;;  %v2715_v30 = vadd.f32 %v2714_v38, %v5161_v29  ;;  %v536_v29 = vld [vmem:[%s6735_s0 + $0xba] sm:$0xff] }
 0x281   :  { %v6076_v56 = vadd.f32 %v2694_v53, %v2534_v3  ;;  %4032 = vmatmul.msk.f32.gmra.mxu1 %vm38_vm0, %v605_v44  ;;  %4080 = vmatmul.msk.f32.gmra.mxu2 %vm38_vm0, %v463_v11  ;;  %v464_v53 = vld [vmem:[%s6735_s0 + $0xb9] sm:$0xff] }
 0x282   :  { %v608_v3 = vld [vmem:[%s6735_s0 + $0xbb] sm:$0xff] }
 0x283   :  { %4128 = vmatmul.msk.f32.gmra.mxu3 %vm38_vm0, %v535_v22  ;;  %v3197_v14 = vpop.f32.mrf.mxu0 }
 0x284   :  { %v2875_v58 = vpop.f32.mrf.mxu2 }
 0x285   :  { %v2876_v27 = vadd.f32 %v2875_v58, %v2715_v30 }
 0x286   :  { %v2717_v19 = vpop.f32.mrf.mxu1  ;;  %v3036_v5 = vpop.f32.mrf.mxu3  ;;  %4176 = vmatmul.msk.f32.gmra.mxu0 %vm38_vm0, %v607_v12 }
 0x287   :  { %v3037_v44 = vadd.f32 %v3036_v5, %v2876_v27  ;;  %v2718_v0 = vadd.f32 %v2717_v19, %v5185_v10  ;;  %v537_v19 = vld [vmem:[%s6735_s0 + $0xc2] sm:$0xff] }
 0x289   :  { %v3198_v6 = vadd.f32 %v3197_v14, %v3037_v44  ;;  %4033 = vmatmul.msk.f32.gmra.mxu1 %vm38_vm0, %v606_v62  ;;  %4081 = vmatmul.msk.f32.gmra.mxu2 %vm38_vm0, %v464_v53  ;;  %v465_v62 = vld [vmem:[%s6735_s0 + $0xc1] sm:$0xff] }
 0x28b   :  { %v3341_v38 = vmax.f32 %v3198_v6, -0.5  ;;  %4129 = vmatmul.msk.f32.gmra.mxu3 %vm38_vm0, %v536_v29  ;;  %v3200_v11 = vpop.f32.mrf.mxu0  ;;  %v609_v6 = vld [vmem:[%s6735_s0 + $0xc3] sm:$0xff] }
 0x28c   :  { %v2878_v22 = vpop.f32.mrf.mxu2 }
 0x28d   :  { %v3389_v30 = vmin.f32 %v3341_v38, 1.0  ;;  %v2879_v58 = vadd.f32 %v2878_v22, %v2718_v0 }
 0x28e   :  { %v2720_v27 = vpop.f32.mrf.mxu1  ;;  %v3039_v14 = vpop.f32.mrf.mxu3  ;;  %4177 = vmatmul.msk.f32.gmra.mxu0 %vm38_vm0, %v608_v3 }
 0x28f   :  { %3438 = vst.msk [vmem:[%s6737_s3] sm:$0xff] %vm3437_vm1, %v3389_v30  ;;  %v3040_v10 = vadd.f32 %v3039_v14, %v2879_v58  ;;  %v2721_v53 = vadd.f32 %v2720_v27, %v5203_v52  ;;  %v538_v58 = vld [vmem:[%s6735_s0 + $0xca] sm:$0xff] }
 0x291   :  { %v3201_v5 = vadd.f32 %v3200_v11, %v3040_v10  ;;  %4034 = vmatmul.msk.f32.gmra.mxu1 %vm38_vm0, %v607_v12  ;;  %4082 = vmatmul.msk.f32.gmra.mxu2 %vm38_vm0, %v465_v62  ;;  %v466_v12 = vld [vmem:[%s6735_s0 + $0xc9] sm:$0xff] }
 0x293   :  { %v3342_v44 = vmax.f32 %v3201_v5, -0.5  ;;  %4130 = vmatmul.msk.f32.gmra.mxu3 %vm38_vm0, %v537_v19  ;;  %v3203_v29 = vpop.f32.mrf.mxu0  ;;  %v610_v19 = vld [vmem:[%s6735_s0 + $0xcb] sm:$0xff] }
 0x294   :  { %v2881_v0 = vpop.f32.mrf.mxu2 }
 0x295   :  { %v3390_v38 = vmin.f32 %v3342_v44, 1.0  ;;  %v2882_v22 = vadd.f32 %v2881_v0, %v2721_v53 }
 0x296   :  { %v2723_v30 = vpop.f32.mrf.mxu1  ;;  %v3042_v11 = vpop.f32.mrf.mxu3  ;;  %4178 = vmatmul.msk.f32.gmra.mxu0 %vm38_vm0, %v609_v6 }
 0x297   :  { %3440 = vst.msk [vmem:[%s6737_s3 + $0x8] sm:$0xf] %vm3439_vm2, %v3390_v38  ;;  %v3043_v52 = vadd.f32 %v3042_v11, %v2882_v22  ;;  %v2724_v14 = vadd.f32 %v2723_v30, %v5218_v59 }
 0x299   :  { %v3204_v27 = vadd.f32 %v3203_v29, %v3043_v52  ;;  %4035 = vmatmul.msk.f32.gmra.mxu1 %vm38_vm0, %v608_v3  ;;  %4083 = vmatmul.msk.f32.gmra.mxu2 %vm38_vm0, %v466_v12  ;;  %v467_v3 = vld [vmem:[%s6735_s0 + $0xd1] sm:$0xff] }
 0x29a   :  { %v539_v29 = vld [vmem:[%s6735_s0 + $0xd2] sm:$0xff] }
 0x29b   :  { %v3343_v62 = vmax.f32 %v3204_v27, -0.5  ;;  %4131 = vmatmul.msk.f32.gmra.mxu3 %vm38_vm0, %v538_v58  ;;  %v3206_v10 = vpop.f32.mrf.mxu0  ;;  %v611_v52 = vld [vmem:[%s6735_s0 + $0xd3] sm:$0xff] }
 0x29c   :  { %v2884_v5 = vpop.f32.mrf.mxu2 }
 0x29d   :  { %v3391_v53 = vmin.f32 %v3343_v62, 1.0  ;;  %v2885_v44 = vadd.f32 %v2884_v5, %v2724_v14 }
 0x29e   :  { %v2726_v0 = vpop.f32.mrf.mxu1  ;;  %v3045_v38 = vpop.f32.mrf.mxu3  ;;  %4179 = vmatmul.msk.f32.gmra.mxu0 %vm38_vm0, %v610_v19 }
 0x29f   :  { %3730 = vst.msk [vmem:[%s6737_s3 + $0x10] sm:$0xff] %vm3437_vm1, %v3391_v53  ;;  %v3046_v59 = vadd.f32 %v3045_v38, %v2885_v44  ;;  %v2727_v30 = vadd.f32 %v2726_v0, %v5242_v26 }
 0x2a1   :  { %v3207_v22 = vadd.f32 %v3206_v10, %v3046_v59  ;;  %4036 = vmatmul.msk.f32.gmra.mxu1 %vm38_vm0, %v609_v6  ;;  %4084 = vmatmul.msk.f32.gmra.mxu2 %vm38_vm0, %v467_v3  ;;  %v468_v6 = vld [vmem:[%s6735_s0 + $0xd9] sm:$0xff] }
 0x2a2   :  { %v540_v10 = vld [vmem:[%s6735_s0 + $0xda] sm:$0xff] }
 0x2a3   :  { %v3344_v11 = vmax.f32 %v3207_v22, -0.5  ;;  %4132 = vmatmul.msk.f32.gmra.mxu3 %vm38_vm0, %v539_v29  ;;  %v3209_v12 = vpop.f32.mrf.mxu0  ;;  %v612_v3 = vld [vmem:[%s6735_s0 + $0xdb] sm:$0xff] }
 0x2a4   :  { %v2887_v58 = vpop.f32.mrf.mxu2 }
 0x2a5   :  { %v3392_v27 = vmin.f32 %v3344_v11, 1.0  ;;  %v2888_v14 = vadd.f32 %v2887_v58, %v2727_v30 }
 0x2a6   :  { %v2729_v62 = vpop.f32.mrf.mxu1  ;;  %v3048_v5 = vpop.f32.mrf.mxu3  ;;  %4180 = vmatmul.msk.f32.gmra.mxu0 %vm38_vm0, %v611_v52 }
 0x2a7   :  { %3731 = vst.msk [vmem:[%s6737_s3 + $0x18] sm:$0xf] %vm3439_vm2, %v3392_v27  ;;  %v3049_v26 = vadd.f32 %v3048_v5, %v2888_v14  ;;  %v2730_v44 = vadd.f32 %v2729_v62, %v5263_v39  ;;  %v613_v5 = vld [vmem:[%s6735_s0 + $0xe3] sm:$0xff] }
 0x2a9   :  { %v3210_v53 = vadd.f32 %v3209_v12, %v3049_v26  ;;  %4037 = vmatmul.msk.f32.gmra.mxu1 %vm38_vm0, %v610_v19  ;;  %4085 = vmatmul.msk.f32.gmra.mxu2 %vm38_vm0, %v468_v6  ;;  %v469_v19 = vld [vmem:[%s6735_s0 + $0xe1] sm:$0xff] }
 0x2aa   :  { %v541_v12 = vld [vmem:[%s6735_s0 + $0xe2] sm:$0xff] }
 0x2ab   :  { %v3345_v0 = vmax.f32 %v3210_v53, -0.5  ;;  %4133 = vmatmul.msk.f32.gmra.mxu3 %vm38_vm0, %v540_v10  ;;  %v3212_v38 = vpop.f32.mrf.mxu0 }
 0x2ac   :  { %v2890_v59 = vpop.f32.mrf.mxu2 }
 0x2ad   :  { %v3393_v29 = vmin.f32 %v3345_v0, 1.0  ;;  %v2891_v22 = vadd.f32 %v2890_v59, %v2730_v44  ;;  %v542_v0 = vld [vmem:[%s6735_s0 + $0xea] sm:$0xff] }
 0x2ae   :  { %v2732_v30 = vpop.f32.mrf.mxu1  ;;  %v3051_v11 = vpop.f32.mrf.mxu3  ;;  %4181 = vmatmul.msk.f32.gmra.mxu0 %vm38_vm0, %v612_v3 }
 0x2af   :  { %3732 = vst.msk [vmem:[%s6737_s3 + $0x20] sm:$0xff] %vm3437_vm1, %v3393_v29  ;;  %v3052_v39 = vadd.f32 %v3051_v11, %v2891_v22  ;;  %v2733_v27 = vadd.f32 %v2732_v30, %v5280_v40  ;;  %v614_v30 = vld [vmem:[%s6735_s0 + $0xeb] sm:$0xff] }
 0x2b1   :  { %v3213_v58 = vadd.f32 %v3212_v38, %v3052_v39  ;;  %4038 = vmatmul.msk.f32.gmra.mxu1 %vm38_vm0, %v611_v52  ;;  %4086 = vmatmul.msk.f32.gmra.mxu2 %vm38_vm0, %v469_v19  ;;  %v470_v52 = vld [vmem:[%s6735_s0 + $0xe9] sm:$0xff] }
 0x2b3   :  { %v3346_v14 = vmax.f32 %v3213_v58, -0.5  ;;  %4134 = vmatmul.msk.f32.gmra.mxu3 %vm38_vm0, %v541_v12  ;;  %v3215_v62 = vpop.f32.mrf.mxu0 }
 0x2b4   :  { %v2893_v6 = vpop.f32.mrf.mxu2 }
 0x2b5   :  { %v3394_v26 = vmin.f32 %v3346_v14, 1.0  ;;  %v2894_v10 = vadd.f32 %v2893_v6, %v2733_v27  ;;  %v3682_v14 = vld [vmem:[%s6735_s0 + $0x132] sm:$0xff] }
 0x2b6   :  { %v2735_v53 = vpop.f32.mrf.mxu1  ;;  %v3054_v44 = vpop.f32.mrf.mxu3  ;;  %4182 = vmatmul.msk.f32.gmra.mxu0 %vm38_vm0, %v613_v5 }
 0x2b7   :  { %3733 = vst.msk [vmem:[%s6737_s3 + $0x28] sm:$0xf] %vm3439_vm2, %v3394_v26  ;;  %v3055_v40 = vadd.f32 %v3054_v44, %v2894_v10  ;;  %v2736_v59 = vadd.f32 %v2735_v53, %v5309_v4  ;;  %v3658_v4 = vld [vmem:[%s6735_s0 + $0x131] sm:$0xff] }
 0x2b8   :  { %v3706_v10 = vld [vmem:[%s6735_s0 + $0x133] sm:$0xff] }
 0x2b9   :  { %v3216_v38 = vadd.f32 %v3215_v62, %v3055_v40  ;;  %4039 = vmatmul.msk.f32.gmra.mxu1 %vm38_vm0, %v612_v3  ;;  %4087 = vmatmul.msk.f32.gmra.mxu2 %vm38_vm0, %v470_v52  ;;  %v3634_v3 = vld [vmem:[%s6735_s0 + $0x123] sm:$0xff] }
 0x2bb   :  { %v3347_v29 = vmax.f32 %v3216_v38, -0.5  ;;  %4135 = vmatmul.msk.f32.gmra.mxu3 %vm38_vm0, %v542_v0  ;;  %v3218_v22 = vpop.f32.mrf.mxu0  ;;  %v3635_v38 = vld [vmem:[%s6735_s0 + $0x12b] sm:$0xff] }
 0x2bc   :  { %v2896_v11 = vpop.f32.mrf.mxu2 }
 0x2bd   :  { %v3395_v19 = vmin.f32 %v3347_v29, 1.0  ;;  %v2897_v39 = vadd.f32 %v2896_v11, %v2736_v59  ;;  %v3683_v29 = vld [vmem:[%s6735_s0 + $0x13a] sm:$0xff] }
 0x2be   :  { %v2738_v12 = vpop.f32.mrf.mxu1  ;;  %v3057_v58 = vpop.f32.mrf.mxu3  ;;  %4183 = vmatmul.msk.f32.gmra.mxu0 %vm38_vm0, %v614_v30 }
 0x2bf   :  { %3734 = vst.msk [vmem:[%s6737_s3 + $0x30] sm:$0xff] %vm3437_vm1, %v3395_v19  ;;  %v3058_v27 = vadd.f32 %v3057_v58, %v2897_v39  ;;  %v2739_v5 = vadd.f32 %v2738_v12, %v5332_v20  ;;  %v3659_v20 = vld [vmem:[%s6735_s0 + $0x139] sm:$0xff] }
 0x2c0   :  { %v3707_v39 = vld [vmem:[%s6735_s0 + $0x13b] sm:$0xff] }
 0x2c1   :  { %v3219_v62 = vadd.f32 %v3218_v22, %v3058_v27  ;;  %4040 = vmatmul.msk.f32.gmra.mxu1 %vm38_vm0, %v3634_v3  ;;  %4088 = vmatmul.msk.f32.gmra.mxu2 %vm38_vm0, %v3658_v4 }
 0x2c3   :  { %v3348_v6 = vmax.f32 %v3219_v62, -0.5  ;;  %4136 = vmatmul.msk.f32.gmra.mxu3 %vm38_vm0, %v3682_v14  ;;  %v3221_v26 = vpop.f32.mrf.mxu0  ;;  %v3660_v14 = vld [vmem:[%s6735_s0 + $0x141] sm:$0xff] }
 0x2c4   :  { %v2899_v53 = vpop.f32.mrf.mxu2  ;;  %v3684_v62 = vld [vmem:[%s6735_s0 + $0x142] sm:$0xff] }
 0x2c5   :  { %v3396_v44 = vmin.f32 %v3348_v6, 1.0  ;;  %v2900_v52 = vadd.f32 %v2899_v53, %v2739_v5 }
 0x2c6   :  { %v2741_v40 = vpop.f32.mrf.mxu1  ;;  %v3060_v0 = vpop.f32.mrf.mxu3  ;;  %4184 = vmatmul.msk.f32.gmra.mxu0 %vm38_vm0, %v3706_v10 }
 0x2c7   :  { %3735 = vst.msk [vmem:[%s6737_s3 + $0x38] sm:$0xf] %vm3439_vm2, %v3396_v44  ;;  %v3061_v59 = vadd.f32 %v3060_v0, %v2900_v52  ;;  %v2742_v30 = vadd.f32 %v2741_v40, %v5349_v18  ;;  %v3708_v44 = vld [vmem:[%s6735_s0 + $0x143] sm:$0xff] }
 0x2c9   :  { %v3222_v22 = vadd.f32 %v3221_v26, %v3061_v59  ;;  %4041 = vmatmul.msk.f32.gmra.mxu1 %vm38_vm0, %v3635_v38  ;;  %4089 = vmatmul.msk.f32.gmra.mxu2 %vm38_vm0, %v3659_v20  ;;  %v3685_v59 = vld [vmem:[%s6735_s0 + $0x14a] sm:$0xff] }
 0x2cb   :  { %v3349_v11 = vmax.f32 %v3222_v22, -0.5  ;;  %4137 = vmatmul.msk.f32.gmra.mxu3 %vm38_vm0, %v3683_v29  ;;  %v3224_v19 = vpop.f32.mrf.mxu0 }
 0x2cc   :  { %v2902_v12 = vpop.f32.mrf.mxu2 }
 0x2cd   :  { %v3397_v58 = vmin.f32 %v3349_v11, 1.0  ;;  %v2903_v3 = vadd.f32 %v2902_v12, %v2742_v30 }
 0x2ce   :  { %v2744_v4 = vpop.f32.mrf.mxu1  ;;  %v3063_v27 = vpop.f32.mrf.mxu3  ;;  %4185 = vmatmul.msk.f32.gmra.mxu0 %vm38_vm0, %v3707_v39 }
 0x2cf   :  { %3736 = vst.msk [vmem:[%s6737_s3 + $0x40] sm:$0xff] %vm3437_vm1, %v3397_v58  ;;  %v3064_v18 = vadd.f32 %v3063_v27, %v2903_v3  ;;  %v2745_v6 = vadd.f32 %v2744_v4, %v5375_v63 }
 0x2d1   :  { %v3225_v5 = vadd.f32 %v3224_v19, %v3064_v18  ;;  %4042 = vmatmul.msk.f32.gmra.mxu1 %vm38_vm0, %v3706_v10  ;;  %4090 = vmatmul.msk.f32.gmra.mxu2 %vm38_vm0, %v3660_v14  ;;  %v3661_v10 = vld [vmem:[%s6735_s0 + $0x149] sm:$0xff]  ;;  %v3686_v14 = vld [vmem:[%s6735_s0 + $0x152] sm:$0xff] }
 0x2d2   :  { %v3709_v19 = vld [vmem:[%s6735_s0 + $0x14b] sm:$0xff] }
 0x2d3   :  { %v3350_v26 = vmax.f32 %v3225_v5, -0.5  ;;  %4138 = vmatmul.msk.f32.gmra.mxu3 %vm38_vm0, %v3684_v62  ;;  %v3227_v53 = vpop.f32.mrf.mxu0 }
 0x2d4   :  { %v2905_v52 = vpop.f32.mrf.mxu2 }
 0x2d5   :  { %v3398_v40 = vmin.f32 %v3350_v26, 1.0  ;;  %v2906_v0 = vadd.f32 %v2905_v52, %v2745_v6  ;;  %v3710_v26 = vld [vmem:[%s6735_s0 + $0x153] sm:$0xff] }
 0x2d6   :  { %v2747_v38 = vpop.f32.mrf.mxu1  ;;  %v3066_v20 = vpop.f32.mrf.mxu3  ;;  %4186 = vmatmul.msk.f32.gmra.mxu0 %vm38_vm0, %v3708_v44 }
 0x2d7   :  { %3737 = vst.msk [vmem:[%s6737_s3 + $0x48] sm:$0xf] %vm3439_vm2, %v3398_v40  ;;  %v3067_v63 = vadd.f32 %v3066_v20, %v2906_v0  ;;  %v2748_v22 = vadd.f32 %v2747_v38, %v5395_v1  ;;  %v3687_v20 = vld [vmem:[%s6735_s0 + $0x15a] sm:$0xff] }
 0x2d9   :  { %v3228_v29 = vadd.f32 %v3227_v53, %v3067_v63  ;;  %4043 = vmatmul.msk.f32.gmra.mxu1 %vm38_vm0, %v3707_v39  ;;  %4091 = vmatmul.msk.f32.gmra.mxu2 %vm38_vm0, %v3661_v10  ;;  %v3662_v39 = vld [vmem:[%s6735_s0 + $0x151] sm:$0xff] }
 0x2db   :  { %v3351_v30 = vmax.f32 %v3228_v29, -0.5  ;;  %4139 = vmatmul.msk.f32.gmra.mxu3 %vm38_vm0, %v3685_v59  ;;  %v3230_v11 = vpop.f32.mrf.mxu0 }
 0x2dc   :  { %v2908_v12 = vpop.f32.mrf.mxu2 }
 0x2dd   :  { %v3399_v58 = vmin.f32 %v3351_v30, 1.0  ;;  %v2909_v3 = vadd.f32 %v2908_v12, %v2748_v22  ;;  %v3711_v22 = vld [vmem:[%s6735_s0 + $0x15b] sm:$0xff] }
 0x2de   :  { %v2750_v4 = vpop.f32.mrf.mxu1  ;;  %v3069_v27 = vpop.f32.mrf.mxu3  ;;  %4187 = vmatmul.msk.f32.gmra.mxu0 %vm38_vm0, %v3709_v19 }
 0x2df   :  { %3738 = vst.msk [vmem:[%s6737_s3 + $0x50] sm:$0xff] %vm3437_vm1, %v3399_v58  ;;  %v3070_v1 = vadd.f32 %v3069_v27, %v2909_v3  ;;  %v2751_v62 = vadd.f32 %v2750_v4, %v5412_v42  ;;  %v3688_v4 = vld [vmem:[%s6735_s0 + $0x162] sm:$0xff] }
 0x2e1   :  { %v3231_v18 = vadd.f32 %v3230_v11, %v3070_v1  ;;  %4044 = vmatmul.msk.f32.gmra.mxu1 %vm38_vm0, %v3708_v44  ;;  %4092 = vmatmul.msk.f32.gmra.mxu2 %vm38_vm0, %v3662_v39  ;;  %v3663_v44 = vld [vmem:[%s6735_s0 + $0x159] sm:$0xff] }
 0x2e3   :  { %v3352_v5 = vmax.f32 %v3231_v18, -0.5  ;;  %4140 = vmatmul.msk.f32.gmra.mxu3 %vm38_vm0, %v3686_v14  ;;  %v3233_v6 = vpop.f32.mrf.mxu0  ;;  %v3712_v18 = vld [vmem:[%s6735_s0 + $0x163] sm:$0xff] }
 0x2e4   :  { %v2911_v53 = vpop.f32.mrf.mxu2 }
 0x2e5   :  { %v3400_v52 = vmin.f32 %v3352_v5, 1.0  ;;  %v2912_v40 = vadd.f32 %v2911_v53, %v2751_v62 }
 0x2e6   :  { %v2753_v0 = vpop.f32.mrf.mxu1  ;;  %v3072_v38 = vpop.f32.mrf.mxu3  ;;  %4188 = vmatmul.msk.f32.gmra.mxu0 %vm38_vm0, %v3710_v26 }
 0x2e7   :  { %3739 = vst.msk [vmem:[%s6737_s3 + $0x58] sm:$0xf] %vm3439_vm2, %v3400_v52  ;;  %v3073_v42 = vadd.f32 %v3072_v38, %v2912_v40  ;;  %v2754_v63 = vadd.f32 %v2753_v0, %v5438_v32  ;;  %v3689_v40 = vld [vmem:[%s6735_s0 + $0x16a] sm:$0xff] }
 0x2e9   :  { %v3234_v10 = vadd.f32 %v3233_v6, %v3073_v42  ;;  %4045 = vmatmul.msk.f32.gmra.mxu1 %vm38_vm0, %v3709_v19  ;;  %4093 = vmatmul.msk.f32.gmra.mxu2 %vm38_vm0, %v3663_v44  ;;  %v3664_v19 = vld [vmem:[%s6735_s0 + $0x161] sm:$0xff] }
 0x2eb   :  { %v3353_v59 = vmax.f32 %v3234_v10, -0.5  ;;  %4141 = vmatmul.msk.f32.gmra.mxu3 %vm38_vm0, %v3687_v20  ;;  %v3236_v29 = vpop.f32.mrf.mxu0  ;;  %v3713_v20 = vld [vmem:[%s6735_s0 + $0x16b] sm:$0xff] }
 0x2ec   :  { %v2914_v30 = vpop.f32.mrf.mxu2 }
 0x2ed   :  { %v3401_v11 = vmin.f32 %v3353_v59, 1.0  ;;  %v2915_v12 = vadd.f32 %v2914_v30, %v2754_v63 }
 0x2ee   :  { %v2756_v58 = vpop.f32.mrf.mxu1  ;;  %v3075_v3 = vpop.f32.mrf.mxu3  ;;  %4189 = vmatmul.msk.f32.gmra.mxu0 %vm38_vm0, %v3711_v22 }
 0x2ef   :  { %3740 = vst.msk [vmem:[%s6737_s3 + $0x60] sm:$0xff] %vm3437_vm1, %v3401_v11  ;;  %v3076_v32 = vadd.f32 %v3075_v3, %v2915_v12  ;;  %v2757_v39 = vadd.f32 %v2756_v58, %v5458_v47  ;;  %v3690_v11 = vld [vmem:[%s6735_s0 + $0x172] sm:$0xff] }
 0x2f1   :  { %v3237_v27 = vadd.f32 %v3236_v29, %v3076_v32  ;;  %4046 = vmatmul.msk.f32.gmra.mxu1 %vm38_vm0, %v3710_v26  ;;  %4094 = vmatmul.msk.f32.gmra.mxu2 %vm38_vm0, %v3664_v19  ;;  %v3665_v26 = vld [vmem:[%s6735_s0 + $0x169] sm:$0xff]  ;;  %v3714_v32 = vld [vmem:[%s6735_s0 + $0x173] sm:$0xff] }
 0x2f3   :  { %v3354_v1 = vmax.f32 %v3237_v27, -0.5  ;;  %4142 = vmatmul.msk.f32.gmra.mxu3 %vm38_vm0, %v3688_v4  ;;  %v3239_v14 = vpop.f32.mrf.mxu0 }
 0x2f4   :  { %v2917_v62 = vpop.f32.mrf.mxu2 }
 0x2f5   :  { %v3402_v5 = vmin.f32 %v3354_v1, 1.0  ;;  %v2918_v6 = vadd.f32 %v2917_v62, %v2757_v39  ;;  %v3691_v62 = vld [vmem:[%s6735_s0 + $0x17a] sm:$0xff] }
 0x2f6   :  { %v2759_v53 = vpop.f32.mrf.mxu1  ;;  %v3078_v52 = vpop.f32.mrf.mxu3  ;;  %4190 = vmatmul.msk.f32.gmra.mxu0 %vm38_vm0, %v3712_v18 }
 0x2f7   :  { %3741 = vst.msk [vmem:[%s6737_s3 + $0x68] sm:$0xf] %vm3439_vm2, %v3402_v5  ;;  %v3079_v47 = vadd.f32 %v3078_v52, %v2918_v6  ;;  %v2760_v38 = vadd.f32 %v2759_v53, %v5475_v48 }
 0x2f9   :  { %v3240_v0 = vadd.f32 %v3239_v14, %v3079_v47  ;;  %4047 = vmatmul.msk.f32.gmra.mxu1 %vm38_vm0, %v3711_v22  ;;  %4095 = vmatmul.msk.f32.gmra.mxu2 %vm38_vm0, %v3665_v26  ;;  %v3666_v22 = vld [vmem:[%s6735_s0 + $0x171] sm:$0xff]  ;;  %v3715_v26 = vld [vmem:[%s6735_s0 + $0x17b] sm:$0xff] }
 0x2fb   :  { %v3355_v44 = vmax.f32 %v3240_v0, -0.5  ;;  %4143 = vmatmul.msk.f32.gmra.mxu3 %vm38_vm0, %v3689_v40  ;;  %v3242_v42 = vpop.f32.mrf.mxu0 }
 0x2fc   :  { %v2920_v10 = vpop.f32.mrf.mxu2 }
 0x2fd   :  { %v3403_v63 = vmin.f32 %v3355_v44, 1.0  ;;  %v2921_v59 = vadd.f32 %v2920_v10, %v2760_v38 }
 0x2fe   :  { %v2762_v29 = vpop.f32.mrf.mxu1  ;;  %v3081_v30 = vpop.f32.mrf.mxu3  ;;  %4191 = vmatmul.msk.f32.gmra.mxu0 %vm38_vm0, %v3713_v20 }
 0x2ff   :  { %3742 = vst.msk [vmem:[%s6737_s3 + $0x70] sm:$0xff] %vm3437_vm1, %v3403_v63  ;;  %v3082_v48 = vadd.f32 %v3081_v30, %v2921_v59  ;;  %v2763_v58 = vadd.f32 %v2762_v29, %v5501_v57  ;;  %v3716_v30 = vld [vmem:[%s6735_s0 + $0x183] sm:$0xff] }
 0x301   :  { %v3243_v12 = vadd.f32 %v3242_v42, %v3082_v48  ;;  %4048 = vmatmul.msk.f32.gmra.mxu1 %vm38_vm0, %v3712_v18  ;;  %4096 = vmatmul.msk.f32.gmra.mxu2 %vm38_vm0, %v3666_v22  ;;  %v3667_v18 = vld [vmem:[%s6735_s0 + $0x179] sm:$0xff]  ;;  %v3668_v42 = vld [vmem:[%s6735_s0 + $0x181] sm:$0xff] }
 0x303   :  { %v3356_v3 = vmax.f32 %v3243_v12, -0.5  ;;  %4144 = vmatmul.msk.f32.gmra.mxu3 %vm38_vm0, %v3690_v11  ;;  %v3245_v19 = vpop.f32.mrf.mxu0 }
 0x304   :  { %v2923_v4 = vpop.f32.mrf.mxu2 }
 0x305   :  { %v3404_v27 = vmin.f32 %v3356_v3, 1.0  ;;  %v2924_v39 = vadd.f32 %v2923_v4, %v2763_v58  ;;  %v3669_v3 = vld [vmem:[%s6735_s0 + $0x189] sm:$0xff] }
 0x306   :  { %v2765_v1 = vpop.f32.mrf.mxu1  ;;  %v3084_v14 = vpop.f32.mrf.mxu3  ;;  %4192 = vmatmul.msk.f32.gmra.mxu0 %vm38_vm0, %v3714_v32 }
 0x307   :  { %3743 = vst.msk [vmem:[%s6737_s3 + $0x78] sm:$0xf] %vm3439_vm2, %v3404_v27  ;;  %v3085_v57 = vadd.f32 %v3084_v14, %v2924_v39  ;;  %v2766_v6 = vadd.f32 %v2765_v1, %v5521_v60  ;;  %v3717_v1 = vld [vmem:[%s6735_s0 + $0x18b] sm:$0xff] }
 0x309   :  { %v3246_v5 = vadd.f32 %v3245_v19, %v3085_v57  ;;  %4049 = vmatmul.msk.f32.gmra.mxu1 %vm38_vm0, %v3713_v20  ;;  %4097 = vmatmul.msk.f32.gmra.mxu2 %vm38_vm0, %v3667_v18  ;;  %v3692_v20 = vld [vmem:[%s6735_s0 + $0x182] sm:$0xff]  ;;  %v3693_v19 = vld [vmem:[%s6735_s0 + $0x18a] sm:$0xff] }
 0x30b   :  { %v3357_v53 = vmax.f32 %v3246_v5, -0.5  ;;  %4145 = vmatmul.msk.f32.gmra.mxu3 %vm38_vm0, %v3691_v62  ;;  %v3248_v52 = vpop.f32.mrf.mxu0 }
 0x30c   :  { %v2926_v47 = vpop.f32.mrf.mxu2 }
 0x30d   :  { %v3405_v40 = vmin.f32 %v3357_v53, 1.0  ;;  %v2927_v0 = vadd.f32 %v2926_v47, %v2766_v6  ;;  %v3670_v6 = vld [vmem:[%s6735_s0 + $0x191] sm:$0xff] }
 0x30e   :  { %v2768_v38 = vpop.f32.mrf.mxu1  ;;  %v3087_v44 = vpop.f32.mrf.mxu3  ;;  %4193 = vmatmul.msk.f32.gmra.mxu0 %vm38_vm0, %v3715_v26  ;;  %v3694_v53 = vld [vmem:[%s6735_s0 + $0x192] sm:$0xff] }
 0x30f   :  { %3744 = vst.msk [vmem:[%s6737_s3 + $0x80] sm:$0xff] %vm3437_vm1, %v3405_v40  ;;  %v3088_v60 = vadd.f32 %v3087_v44, %v2927_v0  ;;  %v2769_v63 = vadd.f32 %v2768_v38, %v5538_v17  ;;  %v3718_v0 = vld [vmem:[%s6735_s0 + $0x193] sm:$0xff] }
 0x311   :  { %v3249_v10 = vadd.f32 %v3248_v52, %v3088_v60  ;;  %4050 = vmatmul.msk.f32.gmra.mxu1 %vm38_vm0, %v3714_v32  ;;  %4098 = vmatmul.msk.f32.gmra.mxu2 %vm38_vm0, %v3668_v42 }
 0x313   :  { %v3358_v59 = vmax.f32 %v3249_v10, -0.5  ;;  %4146 = vmatmul.msk.f32.gmra.mxu3 %vm38_vm0, %v3692_v20  ;;  %v3251_v29 = vpop.f32.mrf.mxu0  ;;  %v3671_v10 = vld [vmem:[%s6735_s0 + $0x199] sm:$0xff] }
 0x314   :  { %v2929_v22 = vpop.f32.mrf.mxu2 }
 0x315   :  { %v3406_v48 = vmin.f32 %v3358_v59, 1.0  ;;  %v2930_v11 = vadd.f32 %v2929_v22, %v2769_v63  ;;  %v3695_v63 = vld [vmem:[%s6735_s0 + $0x19a] sm:$0xff] }
 0x316   :  { %v2771_v12 = vpop.f32.mrf.mxu1  ;;  %v3090_v58 = vpop.f32.mrf.mxu3  ;;  %4194 = vmatmul.msk.f32.gmra.mxu0 %vm38_vm0, %v3716_v30 }
 0x317   :  { %3745 = vst.msk [vmem:[%s6737_s3 + $0x88] sm:$0xf] %vm3439_vm2, %v3406_v48  ;;  %v3091_v17 = vadd.f32 %v3090_v58, %v2930_v11  ;;  %v2772_v4 = vadd.f32 %v2771_v12, %v5564_v23  ;;  %v3719_v48 = vld [vmem:[%s6735_s0 + $0x19b] sm:$0xff] }
 0x319   :  { %v3252_v32 = vadd.f32 %v3251_v29, %v3091_v17  ;;  %4051 = vmatmul.msk.f32.gmra.mxu1 %vm38_vm0, %v3715_v26  ;;  %4099 = vmatmul.msk.f32.gmra.mxu2 %vm38_vm0, %v3669_v3 }
 0x31b   :  { %v3359_v27 = vmax.f32 %v3252_v32, -0.5  ;;  %4147 = vmatmul.msk.f32.gmra.mxu3 %vm38_vm0, %v3693_v19  ;;  %v3254_v39 = vpop.f32.mrf.mxu0  ;;  %v3672_v19 = vld [vmem:[%s6735_s0 + $0x1a1] sm:$0xff] }
 0x31c   :  { %v2932_v14 = vpop.f32.mrf.mxu2  ;;  %v3696_v32 = vld [vmem:[%s6735_s0 + $0x1a2] sm:$0xff] }
 0x31d   :  { %v3407_v18 = vmin.f32 %v3359_v27, 1.0  ;;  %v2933_v57 = vadd.f32 %v2932_v14, %v2772_v4  ;;  %v3720_v14 = vld [vmem:[%s6735_s0 + $0x1a3] sm:$0xff] }
 0x31e   :  { %v2774_v62 = vpop.f32.mrf.mxu1  ;;  %v3093_v5 = vpop.f32.mrf.mxu3  ;;  %4195 = vmatmul.msk.f32.gmra.mxu0 %vm38_vm0, %v3717_v1 }
 0x31f   :  { %3746 = vst.msk [vmem:[%s6737_s3 + $0x90] sm:$0xff] %vm3437_vm1, %v3407_v18  ;;  %v3094_v23 = vadd.f32 %v3093_v5, %v2933_v57  ;;  %v2775_v26 = vadd.f32 %v2774_v62, %v5584_v8 }
 0x321   :  { %v3255_v52 = vadd.f32 %v3254_v39, %v3094_v23  ;;  %4052 = vmatmul.msk.f32.gmra.mxu1 %vm38_vm0, %v3716_v30  ;;  %4100 = vmatmul.msk.f32.gmra.mxu2 %vm38_vm0, %v3670_v6  ;;  %v3673_v23 = vld [vmem:[%s6735_s0 + $0x1a9] sm:$0xff] }
 0x323   :  { %v3360_v47 = vmax.f32 %v3255_v52, -0.5  ;;  %4148 = vmatmul.msk.f32.gmra.mxu3 %vm38_vm0, %v3694_v53  ;;  %v3257_v40 = vpop.f32.mrf.mxu0  ;;  %v3697_v53 = vld [vmem:[%s6735_s0 + $0x1aa] sm:$0xff] }
 0x324   :  { %v2935_v38 = vpop.f32.mrf.mxu2 }
 0x325   :  { %v3408_v44 = vmin.f32 %v3360_v47, 1.0  ;;  %v2936_v42 = vadd.f32 %v2935_v38, %v2775_v26 }
 0x326   :  { %v2777_v60 = vpop.f32.mrf.mxu1  ;;  %v3096_v20 = vpop.f32.mrf.mxu3  ;;  %4196 = vmatmul.msk.f32.gmra.mxu0 %vm38_vm0, %v3718_v0 }
 0x327   :  { %3747 = vst.msk [vmem:[%s6737_s3 + $0x98] sm:$0xf] %vm3439_vm2, %v3408_v44  ;;  %v3097_v8 = vadd.f32 %v3096_v20, %v2936_v42  ;;  %v2778_v29 = vadd.f32 %v2777_v60, %v5601_v43 }
 0x329   :  { %v3258_v59 = vadd.f32 %v3257_v40, %v3097_v8  ;;  %4053 = vmatmul.msk.f32.gmra.mxu1 %vm38_vm0, %v3717_v1  ;;  %4101 = vmatmul.msk.f32.gmra.mxu2 %vm38_vm0, %v3671_v10  ;;  %v3674_v10 = vld [vmem:[%s6735_s0 + $0x1b1] sm:$0xff] }
 0x32a   :  { %v3698_v8 = vld [vmem:[%s6735_s0 + $0x1b2] sm:$0xff] }
 0x32b   :  { %v3361_v30 = vmax.f32 %v3258_v59, -0.5  ;;  %4149 = vmatmul.msk.f32.gmra.mxu3 %vm38_vm0, %v3695_v63  ;;  %v3260_v22 = vpop.f32.mrf.mxu0 }
 0x32c   :  { %v2938_v11 = vpop.f32.mrf.mxu2 }
 0x32d   :  { %v3409_v12 = vmin.f32 %v3361_v30, 1.0  ;;  %v2939_v58 = vadd.f32 %v2938_v11, %v2778_v29 }
 0x32e   :  { %v2780_v3 = vpop.f32.mrf.mxu1  ;;  %v3099_v17 = vpop.f32.mrf.mxu3  ;;  %4197 = vmatmul.msk.f32.gmra.mxu0 %vm38_vm0, %v3719_v48 }
 0x32f   :  { %3748 = vst.msk [vmem:[%s6737_s3 + $0xa0] sm:$0xff] %vm3437_vm1, %v3409_v12  ;;  %v3100_v43 = vadd.f32 %v3099_v17, %v2939_v58  ;;  %v2781_v27 = vadd.f32 %v2780_v3, %v5627_v61  ;;  %v3675_v17 = vld [vmem:[%s6735_s0 + $0x1b9] sm:$0xff] }
 0x331   :  { %v3261_v4 = vadd.f32 %v3260_v22, %v3100_v43  ;;  %4054 = vmatmul.msk.f32.gmra.mxu1 %vm38_vm0, %v3718_v0  ;;  %4102 = vmatmul.msk.f32.gmra.mxu2 %vm38_vm0, %v3672_v19  ;;  %v3721_v0 = vld [vmem:[%s6735_s0 + $0x1ab] sm:$0xff]  ;;  %v3722_v22 = vld [vmem:[%s6735_s0 + $0x1b3] sm:$0xff] }
 0x332   :  { %v3699_v19 = vld [vmem:[%s6735_s0 + $0x1ba] sm:$0xff] }
 0x333   :  { %v3362_v39 = vmax.f32 %v3261_v4, -0.5  ;;  %4150 = vmatmul.msk.f32.gmra.mxu3 %vm38_vm0, %v3696_v32  ;;  %v3263_v1 = vpop.f32.mrf.mxu0 }
 0x334   :  { %v2941_v18 = vpop.f32.mrf.mxu2 }
 0x335   :  { %v3410_v57 = vmin.f32 %v3362_v39, 1.0  ;;  %v2942_v62 = vadd.f32 %v2941_v18, %v2781_v27  ;;  %v3723_v39 = vld [vmem:[%s6735_s0 + $0x1bb] sm:$0xff] }
 0x336   :  { %v2783_v5 = vpop.f32.mrf.mxu1  ;;  %v3102_v6 = vpop.f32.mrf.mxu3  ;;  %4198 = vmatmul.msk.f32.gmra.mxu0 %vm38_vm0, %v3720_v14 }
 0x337   :  { %3749 = vst.msk [vmem:[%s6737_s3 + $0xa8] sm:$0xf] %vm3439_vm2, %v3410_v57  ;;  %v3103_v61 = vadd.f32 %v3102_v6, %v2942_v62  ;;  %v2784_v26 = vadd.f32 %v2783_v5, %v5647_v41  ;;  %v3676_v5 = vld [vmem:[%s6735_s0 + $0x1c1] sm:$0xff] }
 0x338   :  { %v3700_v6 = vld [vmem:[%s6735_s0 + $0x1c2] sm:$0xff] }
 0x339   :  { %v3264_v52 = vadd.f32 %v3263_v1, %v3103_v61  ;;  %4055 = vmatmul.msk.f32.gmra.mxu1 %vm38_vm0, %v3719_v48  ;;  %4103 = vmatmul.msk.f32.gmra.mxu2 %vm38_vm0, %v3673_v23 }
 0x33b   :  { %v3363_v47 = vmax.f32 %v3264_v52, -0.5  ;;  %4151 = vmatmul.msk.f32.gmra.mxu3 %vm38_vm0, %v3697_v53  ;;  %v3266_v40 = vpop.f32.mrf.mxu0 }
 0x33c   :  { %v2944_v38 = vpop.f32.mrf.mxu2 }
 0x33d   :  { %v3411_v44 = vmin.f32 %v3363_v47, 1.0  ;;  %v2945_v42 = vadd.f32 %v2944_v38, %v2784_v26  ;;  %v3724_v26 = vld [vmem:[%s6735_s0 + $0x1c3] sm:$0xff] }
 0x33e   :  { %v2786_v60 = vpop.f32.mrf.mxu1  ;;  %v3105_v20 = vpop.f32.mrf.mxu3  ;;  %4199 = vmatmul.msk.f32.gmra.mxu0 %vm38_vm0, %v3721_v0 }
 0x33f   :  { %3750 = vst.msk [vmem:[%s6737_s3 + $0xb0] sm:$0xff] %vm3437_vm1, %v3411_v44  ;;  %v3106_v41 = vadd.f32 %v3105_v20, %v2945_v42  ;;  %v2787_v59 = vadd.f32 %v2786_v60, %v5664_v35  ;;  %v3677_v42 = vld [vmem:[%s6735_s0 + $0x1c9] sm:$0xff] }
 0x340   :  { %v3701_v60 = vld [vmem:[%s6735_s0 + $0x1ca] sm:$0xff] }
 0x341   :  { %v3267_v63 = vadd.f32 %v3266_v40, %v3106_v41  ;;  %4056 = vmatmul.msk.f32.gmra.mxu1 %vm38_vm0, %v3720_v14  ;;  %4104 = vmatmul.msk.f32.gmra.mxu2 %vm38_vm0, %v3674_v10 }
 0x343   :  { %v3364_v29 = vmax.f32 %v3267_v63, -0.5  ;;  %4152 = vmatmul.msk.f32.gmra.mxu3 %vm38_vm0, %v3698_v8  ;;  %v3269_v30 = vpop.f32.mrf.mxu0  ;;  %v3725_v63 = vld [vmem:[%s6735_s0 + $0x1cb] sm:$0xff] }
 0x344   :  { %v2947_v48 = vpop.f32.mrf.mxu2 }
 0x345   :  { %v3412_v11 = vmin.f32 %v3364_v29, 1.0  ;;  %v2948_v12 = vadd.f32 %v2947_v48, %v2787_v59 }
 0x346   :  { %v2789_v58 = vpop.f32.mrf.mxu1  ;;  %v3108_v3 = vpop.f32.mrf.mxu3  ;;  %4200 = vmatmul.msk.f32.gmra.mxu0 %vm38_vm0, %v3722_v22 }
 0x347   :  { %3751 = vst.msk [vmem:[%s6737_s3 + $0xb8] sm:$0xf] %vm3439_vm2, %v3412_v11  ;;  %v3109_v35 = vadd.f32 %v3108_v3, %v2948_v12  ;;  %v2790_v32 = vadd.f32 %v2789_v58, %v5690_v36  ;;  %v3678_v11 = vld [vmem:[%s6735_s0 + $0x1d1] sm:$0xff] }
 0x348   :  { %v3702_v12 = vld [vmem:[%s6735_s0 + $0x1d2] sm:$0xff] }
 0x349   :  { %v3270_v43 = vadd.f32 %v3269_v30, %v3109_v35  ;;  %4057 = vmatmul.msk.f32.gmra.mxu1 %vm38_vm0, %v3721_v0  ;;  %4105 = vmatmul.msk.f32.gmra.mxu2 %vm38_vm0, %v3675_v17 }
 0x34b   :  { %v3365_v4 = vmax.f32 %v3270_v43, -0.5  ;;  %4153 = vmatmul.msk.f32.gmra.mxu3 %vm38_vm0, %v3699_v19  ;;  %v3272_v27 = vpop.f32.mrf.mxu0  ;;  %v3726_v19 = vld [vmem:[%s6735_s0 + $0x1d3] sm:$0xff] }
 0x34c   :  { %v2950_v1 = vpop.f32.mrf.mxu2 }
 0x34d   :  { %v3413_v14 = vmin.f32 %v3365_v4, 1.0  ;;  %v2951_v18 = vadd.f32 %v2950_v1, %v2790_v32  ;;  %v3679_v1 = vld [vmem:[%s6735_s0 + $0x1d9] sm:$0xff] }
 0x34e   :  { %v2792_v57 = vpop.f32.mrf.mxu1  ;;  %v3111_v62 = vpop.f32.mrf.mxu3  ;;  %4201 = vmatmul.msk.f32.gmra.mxu0 %vm38_vm0, %v3723_v39 }
 0x34f   :  { %3752 = vst.msk [vmem:[%s6737_s3 + $0xc0] sm:$0xff] %vm3437_vm1, %v3413_v14  ;;  %v3112_v36 = vadd.f32 %v3111_v62, %v2951_v18  ;;  %v2793_v61 = vadd.f32 %v2792_v57, %v5710_v50  ;;  %v3703_v14 = vld [vmem:[%s6735_s0 + $0x1da] sm:$0xff] }
 0x351   :  { %v3273_v23 = vadd.f32 %v3272_v27, %v3112_v36  ;;  %4058 = vmatmul.msk.f32.gmra.mxu1 %vm38_vm0, %v3722_v22  ;;  %4106 = vmatmul.msk.f32.gmra.mxu2 %vm38_vm0, %v3676_v5  ;;  %v3727_v36 = vld [vmem:[%s6735_s0 + $0x1db] sm:$0xff] }
 0x353   :  { %v3366_v53 = vmax.f32 %v3273_v23, -0.5  ;;  %4154 = vmatmul.msk.f32.gmra.mxu3 %vm38_vm0, %v3700_v6  ;;  %v3275_v52 = vpop.f32.mrf.mxu0 }
 0x354   :  { %v2953_v47 = vpop.f32.mrf.mxu2 }
 0x355   :  { %v3414_v40 = vmin.f32 %v3366_v53, 1.0  ;;  %v2954_v0 = vadd.f32 %v2953_v47, %v2793_v61  ;;  %v3704_v47 = vld [vmem:[%s6735_s0 + $0x1e2] sm:$0xff] }
 0x356   :  { %v2795_v38 = vpop.f32.mrf.mxu1  ;;  %v3114_v44 = vpop.f32.mrf.mxu3  ;;  %4202 = vmatmul.msk.f32.gmra.mxu0 %vm38_vm0, %v3724_v26 }
 0x357   :  { %3753 = vst.msk [vmem:[%s6737_s3 + $0xc8] sm:$0xf] %vm3439_vm2, %v3414_v40  ;;  %v3115_v50 = vadd.f32 %v3114_v44, %v2954_v0  ;;  %v2796_v10 = vadd.f32 %v2795_v38, %v5732_v55 }
 0x359   :  { %v3276_v20 = vadd.f32 %v3275_v52, %v3115_v50  ;;  %4059 = vmatmul.msk.f32.gmra.mxu1 %vm38_vm0, %v3723_v39  ;;  %4107 = vmatmul.msk.f32.gmra.mxu2 %vm38_vm0, %v3677_v42  ;;  %v3728_v42 = vld [vmem:[%s6735_s0 + $0x1e3] sm:$0xff] }
 0x35b   :  { %v3367_v41 = vmax.f32 %v3276_v20, -0.5  ;;  %4155 = vmatmul.msk.f32.gmra.mxu3 %vm38_vm0, %v3701_v60  ;;  %v3278_v8 = vpop.f32.mrf.mxu0 }
 0x35c   :  { %v2956_v59 = vpop.f32.mrf.mxu2 }
 0x35d   :  { %v3415_v29 = vmin.f32 %v3367_v41, 1.0  ;;  %v2957_v30 = vadd.f32 %v2956_v59, %v2796_v10 }
 0x35e   :  { %v2798_v22 = vpop.f32.mrf.mxu1  ;;  %v3117_v48 = vpop.f32.mrf.mxu3  ;;  %4203 = vmatmul.msk.f32.gmra.mxu0 %vm38_vm0, %v3725_v63 }
 0x35f   :  { %3754 = vst.msk [vmem:[%s6737_s3 + $0xd0] sm:$0xff] %vm3437_vm1, %v3415_v29  ;;  %v3118_v55 = vadd.f32 %v3117_v48, %v2957_v30  ;;  %v2799_v3 = vadd.f32 %v2798_v22, %v5749_v16  ;;  %v3729_v48 = vld [vmem:[%s6735_s0 + $0x1eb] sm:$0xff] }
 0x361   :  { %v3279_v58 = vadd.f32 %v3278_v8, %v3118_v55  ;;  %4060 = vmatmul.msk.f32.gmra.mxu1 %vm38_vm0, %v3724_v26  ;;  %4108 = vmatmul.msk.f32.gmra.mxu2 %vm38_vm0, %v3678_v11  ;;  %v3680_v26 = vld [vmem:[%s6735_s0 + $0x1e1] sm:$0xff]  ;;  %v3681_v8 = vld [vmem:[%s6735_s0 + $0x1e9] sm:$0xff] }
 0x363   :  { %v3368_v17 = vmax.f32 %v3279_v58, -0.5  ;;  %4156 = vmatmul.msk.f32.gmra.mxu3 %vm38_vm0, %v3702_v12  ;;  %v3281_v35 = vpop.f32.mrf.mxu0 }
 0x364   :  { %v2959_v43 = vpop.f32.mrf.mxu2 }
 0x365   :  { %v3416_v32 = vmin.f32 %v3368_v17, 1.0  ;;  %v2960_v4 = vadd.f32 %v2959_v43, %v2799_v3 }
 0x366   :  { %v2801_v27 = vpop.f32.mrf.mxu1  ;;  %v3120_v39 = vpop.f32.mrf.mxu3  ;;  %4204 = vmatmul.msk.f32.gmra.mxu0 %vm38_vm0, %v3726_v19 }
 0x367   :  { %3755 = vst.msk [vmem:[%s6737_s3 + $0xd8] sm:$0xf] %vm3439_vm2, %v3416_v32  ;;  %v3121_v16 = vadd.f32 %v3120_v39, %v2960_v4  ;;  %v2802_v57 = vadd.f32 %v2801_v27, %v5766_v9 }
 0x369   :  { %v3282_v18 = vadd.f32 %v3281_v35, %v3121_v16  ;;  %4061 = vmatmul.msk.f32.gmra.mxu1 %vm38_vm0, %v3725_v63  ;;  %4109 = vmatmul.msk.f32.gmra.mxu2 %vm38_vm0, %v3679_v1  ;;  %v3705_v63 = vld [vmem:[%s6735_s0 + $0x1ea] sm:$0xff] }
 0x36b   :  { %v3369_v62 = vmax.f32 %v3282_v18, -0.5  ;;  %4157 = vmatmul.msk.f32.gmra.mxu3 %vm38_vm0, %v3703_v14  ;;  %v3284_v5 = vpop.f32.mrf.mxu0 }
 0x36c   :  { %v2962_v6 = vpop.f32.mrf.mxu2 }
 0x36d   :  { %v3417_v23 = vmin.f32 %v3369_v62, 1.0  ;;  %v2963_v61 = vadd.f32 %v2962_v6, %v2802_v57 }
 0x36e   :  { %v2804_v53 = vpop.f32.mrf.mxu1  ;;  %v3123_v52 = vpop.f32.mrf.mxu3  ;;  %4205 = vmatmul.msk.f32.gmra.mxu0 %vm38_vm0, %v3727_v36 }
 0x36f   :  { %3756 = vst.msk [vmem:[%s6737_s3 + $0xe0] sm:$0xff] %vm3437_vm1, %v3417_v23  ;;  %v3124_v9 = vadd.f32 %v3123_v52, %v2963_v61  ;;  %v2805_v0 = vadd.f32 %v2804_v53, %v5783_v37 }
 0x371   :  { %v3285_v40 = vadd.f32 %v3284_v5, %v3124_v9  ;;  %4062 = vmatmul.msk.f32.gmra.mxu1 %vm38_vm0, %v3726_v19  ;;  %4110 = vmatmul.msk.f32.gmra.mxu2 %vm38_vm0, %v3680_v26 }
 0x373   :  { %v3370_v38 = vmax.f32 %v3285_v40, -0.5  ;;  %4158 = vmatmul.msk.f32.gmra.mxu3 %vm38_vm0, %v3704_v47  ;;  %v3287_v44 = vpop.f32.mrf.mxu0 }
 0x374   :  { %v2965_v50 = vpop.f32.mrf.mxu2 }
 0x375   :  { %v3418_v60 = vmin.f32 %v3370_v38, 1.0  ;;  %v2966_v20 = vadd.f32 %v2965_v50, %v2805_v0 }
 0x376   :  { %v2807_v10 = vpop.f32.mrf.mxu1  ;;  %v3126_v41 = vpop.f32.mrf.mxu3  ;;  %4206 = vmatmul.msk.f32.gmra.mxu0 %vm38_vm0, %v3728_v42 }
 0x377   :  { %3757 = vst.msk [vmem:[%s6737_s3 + $0xe8] sm:$0xf] %vm3439_vm2, %v3418_v60  ;;  %v3127_v37 = vadd.f32 %v3126_v41, %v2966_v20  ;;  %v2808_v29 = vadd.f32 %v2807_v10, %v5803_v49 }
 0x379   :  { %v3288_v59 = vadd.f32 %v3287_v44, %v3127_v37  ;;  %4063 = vmatmul.msk.f32.gmra.mxu1 %vm38_vm0, %v3727_v36  ;;  %4111 = vmatmul.msk.f32.gmra.mxu2 %vm38_vm0, %v3681_v8 }
 0x37b   :  { %v3371_v30 = vmax.f32 %v3288_v59, -0.5  ;;  %4159 = vmatmul.msk.f32.gmra.mxu3 %vm38_vm0, %v3705_v63  ;;  %v3290_v22 = vpop.f32.mrf.mxu0 }
 0x37c   :  { %v2968_v11 = vpop.f32.mrf.mxu2 }
 0x37d   :  { %v3419_v55 = vmin.f32 %v3371_v30, 1.0  ;;  %v2969_v12 = vadd.f32 %v2968_v11, %v2808_v29 }
 0x37e   :  { %v2810_v58 = vpop.f32.mrf.mxu1  ;;  %v3129_v3 = vpop.f32.mrf.mxu3  ;;  %4207 = vmatmul.msk.f32.gmra.mxu0 %vm38_vm0, %v3729_v48 }
 0x37f   :  { %3758 = vst.msk [vmem:[%s6737_s3 + $0xf0] sm:$0xff] %vm3437_vm1, %v3419_v55  ;;  %v3130_v49 = vadd.f32 %v3129_v3, %v2969_v12  ;;  %v2811_v35 = vadd.f32 %v2810_v58, %v5823_v2 }
 0x381   :  { %v3291_v17 = vadd.f32 %v3290_v22, %v3130_v49 }
 0x383   :  { %v3372_v19 = vmax.f32 %v3291_v17, -0.5  ;;  %v3293_v43 = vpop.f32.mrf.mxu0 }
 0x384   :  { %v2971_v32 = vpop.f32.mrf.mxu2 }
 0x385   :  { %v3420_v4 = vmin.f32 %v3372_v19, 1.0  ;;  %v2972_v27 = vadd.f32 %v2971_v32, %v2811_v35 }
 0x386   :  { %v2813_v39 = vpop.f32.mrf.mxu1  ;;  %v3132_v1 = vpop.f32.mrf.mxu3 }
 0x387   :  { %3759 = vst.msk [vmem:[%s6737_s3 + $0xf8] sm:$0xf] %vm3439_vm2, %v3420_v4  ;;  %v3133_v16 = vadd.f32 %v3132_v1, %v2972_v27  ;;  %v2814_v18 = vadd.f32 %v2813_v39, %v5840_v21 }
 0x389   :  { %v3294_v14 = vadd.f32 %v3293_v43, %v3133_v16 }
 0x38b   :  { %v3373_v57 = vmax.f32 %v3294_v14, -0.5  ;;  %v3296_v62 = vpop.f32.mrf.mxu0 }
 0x38c   :  { %v2974_v5 = vpop.f32.mrf.mxu2 }
 0x38d   :  { %v3421_v2 = vmin.f32 %v3373_v57, 1.0  ;;  %v2975_v36 = vadd.f32 %v2974_v5, %v2814_v18 }
 0x38e   :  { %v2816_v6 = vpop.f32.mrf.mxu1  ;;  %v3135_v23 = vpop.f32.mrf.mxu3 }
 0x38f   :  { %3760 = vst.msk [vmem:[%s6737_s3 + $0x100] sm:$0xff] %vm3437_vm1, %v3421_v2  ;;  %v3136_v61 = vadd.f32 %v3135_v23, %v2975_v36  ;;  %v2817_v52 = vadd.f32 %v2816_v6, %v5857_v13 }
 0x391   :  { %v3297_v53 = vadd.f32 %v3296_v62, %v3136_v61 }
 0x393   :  { %v3374_v26 = vmax.f32 %v3297_v53, -0.5  ;;  %v3299_v9 = vpop.f32.mrf.mxu0 }
 0x394   :  { %v2977_v47 = vpop.f32.mrf.mxu2 }
 0x395   :  { %v3422_v21 = vmin.f32 %v3374_v26, 1.0  ;;  %v2978_v40 = vadd.f32 %v2977_v47, %v2817_v52 }
 0x396   :  { %v2819_v0 = vpop.f32.mrf.mxu1  ;;  %v3138_v38 = vpop.f32.mrf.mxu3 }
 0x397   :  { %3761 = vst.msk [vmem:[%s6737_s3 + $0x108] sm:$0xf] %vm3439_vm2, %v3422_v21  ;;  %v3139_v44 = vadd.f32 %v3138_v38, %v2978_v40  ;;  %v2820_v50 = vadd.f32 %v2819_v0, %v5874_v46 }
 0x399   :  { %v3300_v42 = vadd.f32 %v3299_v9, %v3139_v44 }
 0x39b   :  { %v3375_v60 = vmax.f32 %v3300_v42, -0.5  ;;  %v3302_v20 = vpop.f32.mrf.mxu0 }
 0x39c   :  { %v2980_v10 = vpop.f32.mrf.mxu2 }
 0x39d   :  { %v3423_v13 = vmin.f32 %v3375_v60, 1.0  ;;  %v2981_v41 = vadd.f32 %v2980_v10, %v2820_v50 }
 0x39e   :  { %v2822_v8 = vpop.f32.mrf.mxu1  ;;  %v3141_v37 = vpop.f32.mrf.mxu3 }
 0x39f   :  { %3762 = vst.msk [vmem:[%s6737_s3 + $0x110] sm:$0xff] %vm3437_vm1, %v3423_v13  ;;  %v3142_v63 = vadd.f32 %v3141_v37, %v2981_v41  ;;  %v2823_v29 = vadd.f32 %v2822_v8, %v5891_v51 }
 0x3a1   :  { %v3303_v59 = vadd.f32 %v3302_v20, %v3142_v63 }
 0x3a3   :  { %v3376_v30 = vmax.f32 %v3303_v59, -0.5  ;;  %v3305_v22 = vpop.f32.mrf.mxu0 }
 0x3a4   :  { %v2983_v48 = vpop.f32.mrf.mxu2 }
 0x3a5   :  { %v3424_v46 = vmin.f32 %v3376_v30, 1.0  ;;  %v2984_v11 = vadd.f32 %v2983_v48, %v2823_v29 }
 0x3a6   :  { %v2825_v55 = vpop.f32.mrf.mxu1  ;;  %v3144_v12 = vpop.f32.mrf.mxu3 }
 0x3a7   :  { %3763 = vst.msk [vmem:[%s6737_s3 + $0x118] sm:$0xf] %vm3439_vm2, %v3424_v46  ;;  %v3145_v58 = vadd.f32 %v3144_v12, %v2984_v11  ;;  %v2826_v49 = vadd.f32 %v2825_v55, %v5908_v34 }
 0x3a9   :  { %v3306_v3 = vadd.f32 %v3305_v22, %v3145_v58 }
 0x3ab   :  { %v3377_v17 = vmax.f32 %v3306_v3, -0.5  ;;  %v3308_v35 = vpop.f32.mrf.mxu0 }
 0x3ac   :  { %v2986_v19 = vpop.f32.mrf.mxu2 }
 0x3ad   :  { %v3425_v51 = vmin.f32 %v3377_v17, 1.0  ;;  %v2987_v43 = vadd.f32 %v2986_v19, %v2826_v49 }
 0x3ae   :  { %v2828_v32 = vpop.f32.mrf.mxu1  ;;  %v3147_v4 = vpop.f32.mrf.mxu3 }
 0x3af   :  { %3764 = vst.msk [vmem:[%s6737_s3 + $0x120] sm:$0xff] %vm3437_vm1, %v3425_v51  ;;  %v3148_v27 = vadd.f32 %v3147_v4, %v2987_v43  ;;  %v2829_v1 = vadd.f32 %v2828_v32, %v5925_v54 }
 0x3b1   :  { %v3309_v39 = vadd.f32 %v3308_v35, %v3148_v27 }
 0x3b3   :  { %v3378_v16 = vmax.f32 %v3309_v39, -0.5  ;;  %v3311_v14 = vpop.f32.mrf.mxu0 }
 0x3b4   :  { %v2989_v18 = vpop.f32.mrf.mxu2 }
 0x3b5   :  { %v3426_v34 = vmin.f32 %v3378_v16, 1.0  ;;  %v2990_v57 = vadd.f32 %v2989_v18, %v2829_v1 }
 0x3b6   :  { %v2831_v62 = vpop.f32.mrf.mxu1  ;;  %v3150_v5 = vpop.f32.mrf.mxu3 }
 0x3b7   :  { %3765 = vst.msk [vmem:[%s6737_s3 + $0x128] sm:$0xf] %vm3439_vm2, %v3426_v34  ;;  %v3151_v2 = vadd.f32 %v3150_v5, %v2990_v57  ;;  %v2832_v6 = vadd.f32 %v2831_v62, %v5942_v33 }
 0x3b9   :  { %v3312_v36 = vadd.f32 %v3311_v14, %v3151_v2 }
 0x3bb   :  { %v3379_v23 = vmax.f32 %v3312_v36, -0.5  ;;  %v3314_v61 = vpop.f32.mrf.mxu0 }
 0x3bc   :  { %v2992_v53 = vpop.f32.mrf.mxu2 }
 0x3bd   :  { %v3427_v54 = vmin.f32 %v3379_v23, 1.0  ;;  %v2993_v52 = vadd.f32 %v2992_v53, %v2832_v6 }
 0x3be   :  { %v2834_v26 = vpop.f32.mrf.mxu1  ;;  %v3153_v9 = vpop.f32.mrf.mxu3 }
 0x3bf   :  { %3766 = vst.msk [vmem:[%s6737_s3 + $0x130] sm:$0xff] %vm3437_vm1, %v3427_v54  ;;  %v3154_v47 = vadd.f32 %v3153_v9, %v2993_v52  ;;  %v2835_v40 = vadd.f32 %v2834_v26, %v5959_v24 }
 0x3c1   :  { %v3315_v21 = vadd.f32 %v3314_v61, %v3154_v47 }
 0x3c3   :  { %v3380_v0 = vmax.f32 %v3315_v21, -0.5  ;;  %v3317_v38 = vpop.f32.mrf.mxu0 }
 0x3c4   :  { %v2995_v44 = vpop.f32.mrf.mxu2 }
 0x3c5   :  { %v3428_v33 = vmin.f32 %v3380_v0, 1.0  ;;  %v2996_v42 = vadd.f32 %v2995_v44, %v2835_v40 }
 0x3c6   :  { %v2837_v50 = vpop.f32.mrf.mxu1  ;;  %v3156_v60 = vpop.f32.mrf.mxu3 }
 0x3c7   :  { %3767 = vst.msk [vmem:[%s6737_s3 + $0x138] sm:$0xf] %vm3439_vm2, %v3428_v33  ;;  %v3157_v20 = vadd.f32 %v3156_v60, %v2996_v42  ;;  %v2838_v13 = vadd.f32 %v2837_v50, %v5976_v15 }
 0x3c9   :  { %v3318_v10 = vadd.f32 %v3317_v38, %v3157_v20 }
 0x3cb   :  { %v3381_v41 = vmax.f32 %v3318_v10, -0.5  ;;  %v3320_v8 = vpop.f32.mrf.mxu0 }
 0x3cc   :  { %v2998_v37 = vpop.f32.mrf.mxu2 }
 0x3cd   :  { %v3429_v24 = vmin.f32 %v3381_v41, 1.0  ;;  %v2999_v63 = vadd.f32 %v2998_v37, %v2838_v13 }
 0x3ce   :  { %v2840_v59 = vpop.f32.mrf.mxu1  ;;  %v3159_v29 = vpop.f32.mrf.mxu3 }
 0x3cf   :  { %3768 = vst.msk [vmem:[%s6737_s3 + $0x140] sm:$0xff] %vm3437_vm1, %v3429_v24  ;;  %v3160_v30 = vadd.f32 %v3159_v29, %v2999_v63  ;;  %v2841_v48 = vadd.f32 %v2840_v59, %v5993_v28 }
 0x3d1   :  { %v3321_v22 = vadd.f32 %v3320_v8, %v3160_v30 }
 0x3d3   :  { %v3382_v46 = vmax.f32 %v3321_v22, -0.5  ;;  %v3323_v11 = vpop.f32.mrf.mxu0 }
 0x3d4   :  { %v3001_v55 = vpop.f32.mrf.mxu2 }
 0x3d5   :  { %v3430_v15 = vmin.f32 %v3382_v46, 1.0  ;;  %v3002_v12 = vadd.f32 %v3001_v55, %v2841_v48 }
 0x3d6   :  { %v2843_v58 = vpop.f32.mrf.mxu1  ;;  %v3162_v3 = vpop.f32.mrf.mxu3 }
 0x3d7   :  { %3769 = vst.msk [vmem:[%s6737_s3 + $0x148] sm:$0xf] %vm3439_vm2, %v3430_v15  ;;  %v3163_v49 = vadd.f32 %v3162_v3, %v3002_v12  ;;  %v2844_v35 = vadd.f32 %v2843_v58, %v6010_v45 }
 0x3d9   :  { %v3324_v17 = vadd.f32 %v3323_v11, %v3163_v49 }
 0x3db   :  { %v3383_v19 = vmax.f32 %v3324_v17, -0.5  ;;  %v3326_v51 = vpop.f32.mrf.mxu0 }
 0x3dc   :  { %v3004_v43 = vpop.f32.mrf.mxu2 }
 0x3dd   :  { %v3431_v28 = vmin.f32 %v3383_v19, 1.0  ;;  %v3005_v32 = vadd.f32 %v3004_v43, %v2844_v35 }
 0x3de   :  { %v2846_v4 = vpop.f32.mrf.mxu1  ;;  %v3165_v27 = vpop.f32.mrf.mxu3 }
 0x3df   :  { %3770 = vst.msk [vmem:[%s6737_s3 + $0x150] sm:$0xff] %vm3437_vm1, %v3431_v28  ;;  %v3166_v39 = vadd.f32 %v3165_v27, %v3005_v32  ;;  %v2847_v16 = vadd.f32 %v2846_v4, %v6027_v31 }
 0x3e1   :  { %v3327_v1 = vadd.f32 %v3326_v51, %v3166_v39 }
 0x3e3   :  { %v3384_v14 = vmax.f32 %v3327_v1, -0.5  ;;  %v3329_v18 = vpop.f32.mrf.mxu0 }
 0x3e4   :  { %v3007_v34 = vpop.f32.mrf.mxu2 }
 0x3e5   :  { %v3432_v45 = vmin.f32 %v3384_v14, 1.0  ;;  %v3008_v57 = vadd.f32 %v3007_v34, %v2847_v16 }
 0x3e6   :  { %v2849_v62 = vpop.f32.mrf.mxu1  ;;  %v3168_v5 = vpop.f32.mrf.mxu3 }
 0x3e7   :  { %3771 = vst.msk [vmem:[%s6737_s3 + $0x158] sm:$0xf] %vm3439_vm2, %v3432_v45  ;;  %v3169_v2 = vadd.f32 %v3168_v5, %v3008_v57  ;;  %v2850_v6 = vadd.f32 %v2849_v62, %v6044_v7 }
 0x3e9   :  { %v3330_v36 = vadd.f32 %v3329_v18, %v3169_v2 }
 0x3eb   :  { %v3385_v23 = vmax.f32 %v3330_v36, -0.5  ;;  %v3332_v61 = vpop.f32.mrf.mxu0 }
 0x3ec   :  { %v3010_v53 = vpop.f32.mrf.mxu2 }
 0x3ed   :  { %v3433_v31 = vmin.f32 %v3385_v23, 1.0  ;;  %v3011_v54 = vadd.f32 %v3010_v53, %v2850_v6 }
 0x3ee   :  { %v2852_v52 = vpop.f32.mrf.mxu1  ;;  %v3171_v26 = vpop.f32.mrf.mxu3 }
 0x3ef   :  { %3772 = vst.msk [vmem:[%s6737_s3 + $0x160] sm:$0xff] %vm3437_vm1, %v3433_v31  ;;  %v3172_v9 = vadd.f32 %v3171_v26, %v3011_v54  ;;  %v2853_v21 = vadd.f32 %v2852_v52, %v6061_v25 }
 0x3f1   :  { %v3333_v47 = vadd.f32 %v3332_v61, %v3172_v9 }
 0x3f3   :  { %v3386_v40 = vmax.f32 %v3333_v47, -0.5  ;;  %v3335_v38 = vpop.f32.mrf.mxu0 }
 0x3f4   :  { %v3013_v0 = vpop.f32.mrf.mxu2 }
 0x3f5   :  { %v3434_v7 = vmin.f32 %v3386_v40, 1.0  ;;  %v3014_v44 = vadd.f32 %v3013_v0, %v2853_v21 }
 0x3f6   :  { %v3174_v33 = vpop.f32.mrf.mxu3  ;;  %v2855_v50 = vpop.f32.mrf.mxu1 }
 0x3f7   :  { %3773 = vst.msk [vmem:[%s6737_s3 + $0x168] sm:$0xf] %vm3439_vm2, %v3434_v7  ;;  %v3175_v42 = vadd.f32 %v3174_v33, %v3014_v44  ;;  %v2856_v20 = vadd.f32 %v2855_v50, %v6076_v56 }
 0x3f9   :  { %v3336_v60 = vadd.f32 %v3335_v38, %v3175_v42 }
 0x3fb   :  { %v3387_v10 = vmax.f32 %v3336_v60, -0.5  ;;  %v3338_v37 = vpop.f32.mrf.mxu0 }
 0x3fc   :  { %v3016_v13 = vpop.f32.mrf.mxu2 }
 0x3fd   :  { %v3435_v41 = vmin.f32 %v3387_v10, 1.0  ;;  %v3017_v25 = vadd.f32 %v3016_v13, %v2856_v20 }
 0x3fe   :  { %v3177_v8 = vpop.f32.mrf.mxu3 }
 0x3ff   :  { %3774 = vst.msk [vmem:[%s6737_s3 + $0x170] sm:$0xff] %vm3437_vm1, %v3435_v41  ;;  %v3178_v24 = vadd.f32 %v3177_v8, %v3017_v25 }
 0x401   :  { %v3339_v63 = vadd.f32 %v3338_v37, %v3178_v24 }
 0x403   :  { %v3388_v59 = vmax.f32 %v3339_v63, -0.5 }
 0x405   :  { %v3436_v29 = vmin.f32 %v3388_v59, 1.0 }
 0x407   :  { %3775 = vst.msk [vmem:[%s6737_s3 + $0x178] sm:$0xf] %vm3439_vm2, %v3436_v29 }

</bundles_post_ra>
